<compile_context>
chip_gen: v5e
topology: v5e:2x2
jax: 0.10.0
libtpu: 0.0.40
codegen_flags: <defaults>
</compile_context>

<pallas_src>
import functools

import jax
import jax.numpy as jnp
from jax import lax
from jax.experimental import pallas as pl
from jax.experimental.pallas import tpu as pltpu


_LANE = 128


def _layernorm(x, gamma, beta, eps=1e-5):
    inv_c = 1.0 / x.shape[-1]
    mean = jnp.sum(x, axis=-1, keepdims=True) * inv_c
    xc = x - mean
    var = jnp.sum(xc * xc, axis=-1, keepdims=True) * inv_c
    return xc * lax.rsqrt(var + eps) * gamma + beta


def encoder_layer_kernel(
    alpha_ref,              # SMEM (1, H) f32        per-head mixing parameter
    src_ref,                # VMEM (Bt, Np, C)
    ln0_g_ref, ln0_b_ref,   # (1, C) f32
    wqkv_ref,               # (C, 3C) bf16  head-major cols [q_h|k_h|v_h], scale folded in q
    wproj_ref, bproj_ref,   # (C, C) bf16, (1, C) f32
    ln1_g_ref, ln1_b_ref,   # (1, C) f32
    w1_ref, b1_ref,         # (C, F) bf16, (1, F) f32
    w2_ref, b2_ref,         # (F, C) bf16, (1, C) f32
    out_ref,                # VMEM (Bt, Np, C)
    attn_ref,               # VMEM scratch (Bt*Np, C) bf16: per-head outputs at lane offsets
    *, num_heads, n_real, f_chunk,
):
    Bt, Np, C = src_ref.shape
    M = Bt * Np
    H = num_heads
    dh = C // H
    F = w1_ref.shape[1]
    eps_attn = 1e-8
    inv_n = 1.0 / n_real

    x = src_ref[...].astype(jnp.float32).reshape(M, C)       # (M, C)

    # ---- pre-norm (f32) ----
    xn = _layernorm(x, ln0_g_ref[0], ln0_b_ref[0])

    # Zero the padded token rows once: padded keys/values then contribute exactly 0 to both
    # the ReLU branch (relu(0)=0 -> rowsum unchanged) and the scaled branch (0 * v = 0).
    if Np != n_real:
        pos = lax.broadcasted_iota(jnp.int32, (Bt, Np, 1), 1).reshape(M, 1)
        xn = jnp.where(pos < n_real, xn, 0.0)

    # ---- fused QKV projection: one (M,C)@(C,3C) GEMM, single bf16 cast ----
    qkv = jnp.dot(xn.astype(jnp.bfloat16), wqkv_ref[...],
                  preferred_element_type=jnp.float32)         # (M, 3C) f32
    qkv_bf = qkv.astype(jnp.bfloat16).reshape(Bt, Np, 3 * C)  # leading-dim split (layout-safe)

    # ---- per-head mixed ReLU / scaled attention, batched over the batch tile ----
    # Static head loop (small: H bodies); results go into the (M, C) scratch at lane offset
    # h*dh so the output projection below is a single full-depth GEMM.
    for h in range(H):
        base = 3 * h * dh
        q = qkv_bf[:, :, base:base + dh]                      # (Bt, Np, dh) bf16
        k = qkv_bf[:, :, base + dh:base + 2 * dh]
        v = qkv_bf[:, :, base + 2 * dh:base + 3 * dh]
        a = alpha_ref[0, h]                                   # f32 scalar (SMEM)

        s = jnp.einsum('bnd,bmd->bnm', q, k,
                       preferred_element_type=jnp.float32)    # (Bt, Np, Np); scale pre-folded
        sr = jnp.maximum(s, 0.0)                              # ReLU branch
        sr = sr / (jnp.sum(sr, axis=-1, keepdims=True) + eps_attn)
        p = a * sr + ((1.0 - a) * inv_n) * s                  # 1/N folded into mixing weight
        ho = jnp.einsum('bnm,bmd->bnd', p.astype(jnp.bfloat16), v,
                        preferred_element_type=jnp.float32)   # (Bt, Np, dh)
        attn_ref[:, h * dh:(h + 1) * dh] = ho.reshape(M, dh).astype(jnp.bfloat16)

    # ---- single full-depth output projection (M,C)@(C,C) ----
    proj = jnp.dot(attn_ref[...], wproj_ref[...],
                   preferred_element_type=jnp.float32) + bproj_ref[0]

    # ---- residual + norm1 (attn_drop / proj_drop / drop_path = identity) ----
    x1 = x + proj
    x1n = _layernorm(x1, ln1_g_ref[0], ln1_b_ref[0])
    x1n_bf = x1n.astype(jnp.bfloat16)

    # ---- MLP tiled over the feed-forward dimension ----
    h2 = jnp.zeros((M, C), jnp.float32)
    for c0 in range(0, F, f_chunk):
        h1c = jnp.dot(x1n_bf, w1_ref[:, c0:c0 + f_chunk],
                      preferred_element_type=jnp.float32) + b1_ref[0, c0:c0 + f_chunk]
        g = jax.nn.gelu(h1c, approximate=True)                # EUP tanh-GELU
        h2 = h2 + jnp.dot(g.astype(jnp.bfloat16), w2_ref[c0:c0 + f_chunk, :],
                          preferred_element_type=jnp.float32)
    h2 = h2 + b2_ref[0]

    # NOTE: out = x1n + h2 (residual on the *normalized* value) matches the PyTorch forward.
    out_ref[...] = (x1n + h2).reshape(Bt, Np, C).astype(out_ref.dtype)


def _round_up(x, m):
    return (x + m - 1) // m * m


def _choose_f_chunk(F, max_chunk=2048):
    """Largest chunk <= max_chunk that divides F (multiple of 128 when possible)."""
    if F <= max_chunk:
        return F
    for fc in range(max_chunk, 127, -128):
        if F % fc == 0:
            return fc
    return F


def _tile_vmem_bytes(bt, n_pad, C, F, f_chunk, weight_bytes, weight_buffers):
    """Rough per-grid-step VMEM estimate used for tile sizing (weights counted once if
    single-buffered; only the streamed src/out blocks counted double-buffered)."""
    m = bt * n_pad
    io = 2 * 2 * (4 * bt * n_pad * C)             # src + out blocks, double-buffered (f32)
    act = (6 * m * 3 * C                          # qkv f32 + bf16
           + 4 * 6 * m * C                        # x, xn, x1, x1n, proj, h2 (f32)
           + 2 * m * C                            # attention-output scratch (bf16)
           + 3 * 4 * bt * n_pad * n_pad           # score / relu / mixed tiles (f32)
           + 6 * m * f_chunk)                     # MLP chunk activations
    return weight_buffers * weight_bytes + io + act


def _choose_batch_tile(B, n_pad, tile_bytes, vmem_budget, target_rows=1024):
    divisors = [d for d in range(1, B + 1) if B % d == 0]
    fitting = [d for d in divisors
               if tile_bytes(d) <= vmem_budget and d * n_pad <= max(target_rows, n_pad)]
    bt = max(fitting) if fitting else 1
    # Keep >= 2 grid steps (when B allows) so the "parallel" batch axis can shard across the
    # two v7x TensorCores; on 1-TC chips the extra step costs ~0.35us and reuses resident weights.
    if B >= 2 and B // bt < 2:
        smaller = [d for d in divisors if d < bt and B // d >= 2]
        if smaller:
            bt = max(smaller)
    return bt


def transformer_encoder_layer(src, params, num_heads):
    B, N, C = src.shape
    F = params["w1"].shape[1]
    dh = C // num_heads
    scale = dh ** (-0.5)

    # ---- host-side weight prep ----
    # Wqkv -> head-major columns [q_h | k_h | v_h] with the attention scale folded into q.
    w = params["wqkv"].reshape(C, 3, num_heads, dh)
    w = w.at[:, 0].multiply(scale)
    wqkv_bf = jnp.transpose(w, (0, 2, 1, 3)).reshape(C, 3 * C).astype(jnp.bfloat16)
    wproj_bf = params["wproj"].astype(jnp.bfloat16)
    w1_bf = params["w1"].astype(jnp.bfloat16)
    w2_bf = params["w2"].astype(jnp.bfloat16)

    # ---- pad tokens to a lane-dense multiple of 128 (masked inside the kernel) ----
    n_pad = _round_up(N, _LANE)
    src_p = jnp.pad(src, ((0, 0), (0, n_pad - N), (0, 0))) if n_pad != N else src

    # ---- generation-aware VMEM budget ----
    try:
        vmem_cap = int(pltpu.get_tpu_info().vmem_capacity_bytes)
    except Exception:
        vmem_cap = 64 << 20                       # conservative fallback (v7x per-TC size)
    big_weight_bytes = 2 * (C * 3 * C + C * C + 2 * C * F)    # bf16 matmul weights
    weight_bytes = big_weight_bytes + 4 * (6 * C + F)         # + f32 LN/bias vectors
    # Single-buffer the resident (constant index-map) weights only when double-buffering
    # them would consume a meaningful slice of VMEM (the v7x 64 MiB case).
    weight_buffers = 1 if 2 * big_weight_bytes > int(0.15 * vmem_cap) else 2

    f_chunk = _choose_f_chunk(F)
    tile_bytes = functools.partial(_tile_vmem_bytes, n_pad=n_pad, C=C, F=F,
                                   f_chunk=f_chunk, weight_bytes=weight_bytes,
                                   weight_buffers=weight_buffers)
    bt = _choose_batch_tile(B, n_pad, tile_bytes, int(0.75 * vmem_cap))
    vmem_limit = int(min(0.92 * vmem_cap, max(tile_bytes(bt) + (8 << 20), 32 << 20)))
    grid = (B // bt,)
    m_rows = bt * n_pad

    kernel = functools.partial(encoder_layer_kernel, num_heads=num_heads,
                               n_real=N, f_chunk=f_chunk)

    def w_spec(shape):
        if weight_buffers == 1:
            return pl.BlockSpec(shape, lambda b: (0,) * len(shape),
                                pipeline_mode=pl.Buffered(1))
        return pl.BlockSpec(shape, lambda b: (0,) * len(shape))

    out_p = pl.pallas_call(
        kernel,
        grid=grid,
        in_specs=[
            pl.BlockSpec(memory_space=pltpu.MemorySpace.SMEM),      # alpha (1, H)
            pl.BlockSpec((bt, n_pad, C), lambda b: (b, 0, 0)),      # src
            w_spec((1, C)), w_spec((1, C)),                         # ln0 gamma / beta
            w_spec((C, 3 * C)),                                     # Wqkv (bf16, head-major)
            w_spec((C, C)), w_spec((1, C)),                         # Wproj / bproj
            w_spec((1, C)), w_spec((1, C)),                         # ln1 gamma / beta
            w_spec((C, F)), w_spec((1, F)),                         # W1 / b1
            w_spec((F, C)), w_spec((1, C)),                         # W2 / b2
        ],
        out_specs=pl.BlockSpec((bt, n_pad, C), lambda b: (b, 0, 0)),
        out_shape=jax.ShapeDtypeStruct((B, n_pad, C), src.dtype),
        scratch_shapes=[pltpu.VMEM((m_rows, C), jnp.bfloat16)],
        compiler_params=pltpu.CompilerParams(
            dimension_semantics=("parallel",),
            vmem_limit_bytes=vmem_limit,
        ),
    )(
        params["alpha"], src_p,
        params["ln0_g"], params["ln0_b"],
        wqkv_bf,
        wproj_bf, params["bproj"],
        params["ln1_g"], params["ln1_b"],
        w1_bf, params["b1"],
        w2_bf, params["b2"],
    )
    return out_p[:, :N, :] if n_pad != N else out_p


def ref_forward(src, p, num_heads):
    """Pure-JAX f32 reference mirroring the PyTorch forward (eval mode, exact GELU)."""
    B, N, C = src.shape
    dh = C // num_heads

    def ln(x, g, b):
        m = x.mean(-1, keepdims=True)
        v = ((x - m) ** 2).mean(-1, keepdims=True)
        return (x - m) / jnp.sqrt(v + 1e-5) * g + b

    xn = ln(src, p["ln0_g"][0], p["ln0_b"][0])
    qkv = xn @ p["wqkv"]
    qkv = qkv.reshape(B, N, 3, num_heads, dh).transpose(2, 0, 3, 1, 4)
    q, k, v = qkv[0], qkv[1], qkv[2]
    attn = jnp.einsum("bhnd,bhmd->bhnm", q, k) * dh ** (-0.5)
    scal = attn / N
    ar = jnp.maximum(attn, 0.0)
    ar = ar / (ar.sum(-1, keepdims=True) + 1e-8)
    alpha = p["alpha"].reshape(1, num_heads, 1, 1)
    a = alpha * ar + (1.0 - alpha) * scal
    x = jnp.einsum("bhnm,bhmd->bhnd", a, v).transpose(0, 2, 1, 3).reshape(B, N, C)
    x = x @ p["wproj"] + p["bproj"][0]
    x1 = src + x
    x1n = ln(x1, p["ln1_g"][0], p["ln1_b"][0])
    h1 = x1n @ p["w1"] + p["b1"][0]
    g = 0.5 * h1 * (1.0 + lax.erf(h1 / jnp.sqrt(2.0)))
    h2 = g @ p["w2"] + p["b2"][0]
    return x1n + h2


def init_params(key, d_model, nhead, dim_feedforward):
    ks = jax.random.split(key, 8)
    s = 0.02
    return {
        "alpha": jnp.ones((1, nhead), jnp.float32),
        "ln0_g": jnp.ones((1, d_model), jnp.float32),
        "ln0_b": jnp.zeros((1, d_model), jnp.float32),
        "wqkv": jax.random.normal(ks[0], (d_model, 3 * d_model), jnp.float32) * s,
        "wproj": jax.random.normal(ks[1], (d_model, d_model), jnp.float32) * s,
        "bproj": jax.random.normal(ks[2], (1, d_model), jnp.float32) * s,
        "ln1_g": jnp.ones((1, d_model), jnp.float32),
        "ln1_b": jnp.zeros((1, d_model), jnp.float32),
        "w1": jax.random.normal(ks[3], (d_model, dim_feedforward), jnp.float32) * s,
        "b1": jax.random.normal(ks[4], (1, dim_feedforward), jnp.float32) * s,
        "w2": jax.random.normal(ks[5], (dim_feedforward, d_model), jnp.float32) * s,
        "b2": jax.random.normal(ks[6], (1, d_model), jnp.float32) * s,
    }


if __name__ == "__main__":
    # Small shapes; N=8 < 128 deliberately exercises the token-padding / masking path.
    B, N, d_model, nhead, dim_ff = 2, 8, 32, 4, 64

    key = jax.random.PRNGKey(0)
    kx, kp = jax.random.split(key)
    src = jax.random.normal(kx, (B, N, d_model), jnp.float32)
    params = init_params(kp, d_model, nhead, dim_ff)

    out = transformer_encoder_layer(src, params, nhead)
    out = jax.block_until_ready(out)

    ref = ref_forward(src, params, nhead)
    assert out.shape == (B, N, d_model)
    max_err = float(jnp.max(jnp.abs(out - ref)))
    # bf16 matmuls + tanh-GELU vs exact f32/erf reference -> relaxed tolerance.
    assert jnp.allclose(out, ref, atol=2e-2, rtol=2e-2), f"mismatch vs. reference (max_err={max_err})"

    print("KERNEL_OK")
</pallas_src>

<mosaic_0001>
module attributes {stable_mosaic.version = 11 : i64} {
  func.func @encoder_layer_kernel(%arg0: i32, %arg1: memref<1x4xf32, #tpu.memory_space<smem>>, %arg2: memref<1x128x32xf32, #tpu.memory_space<vmem>>, %arg3: memref<1x32xf32, #tpu.memory_space<vmem>>, %arg4: memref<1x32xf32, #tpu.memory_space<vmem>>, %arg5: memref<32x96xbf16, #tpu.memory_space<vmem>>, %arg6: memref<32x32xbf16, #tpu.memory_space<vmem>>, %arg7: memref<1x32xf32, #tpu.memory_space<vmem>>, %arg8: memref<1x32xf32, #tpu.memory_space<vmem>>, %arg9: memref<1x32xf32, #tpu.memory_space<vmem>>, %arg10: memref<32x64xbf16, #tpu.memory_space<vmem>>, %arg11: memref<1x64xf32, #tpu.memory_space<vmem>>, %arg12: memref<64x32xbf16, #tpu.memory_space<vmem>>, %arg13: memref<1x32xf32, #tpu.memory_space<vmem>>, %arg14: memref<1x128x32xf32, #tpu.memory_space<vmem>>, %arg15: memref<128x32xbf16, #tpu.memory_space<vmem>>) attributes {dimension_semantics = [#tpu.dimension_semantics<parallel>], iteration_bounds = array<i64: 2>, scalar_prefetch = 0 : i64, scratch_operands = 1 : i64, tpu.core_type = #tpu.core_type<tc>, window_params = [{transform_indices = @transform_0, window_bounds = array<i64: 1, 4>}, {transform_indices = @transform_1, window_bounds = array<i64: 1, 128, 32>}, {pipeline_mode = #tpu.pipeline_mode<synchronous>, transform_indices = @transform_2, window_bounds = array<i64: 1, 32>}, {pipeline_mode = #tpu.pipeline_mode<synchronous>, transform_indices = @transform_3, window_bounds = array<i64: 1, 32>}, {pipeline_mode = #tpu.pipeline_mode<synchronous>, transform_indices = @transform_4, window_bounds = array<i64: 32, 96>}, {pipeline_mode = #tpu.pipeline_mode<synchronous>, transform_indices = @transform_5, window_bounds = array<i64: 32, 32>}, {pipeline_mode = #tpu.pipeline_mode<synchronous>, transform_indices = @transform_6, window_bounds = array<i64: 1, 32>}, {pipeline_mode = #tpu.pipeline_mode<synchronous>, transform_indices = @transform_7, window_bounds = array<i64: 1, 32>}, {pipeline_mode = #tpu.pipeline_mode<synchronous>, transform_indices = @transform_8, window_bounds = array<i64: 1, 32>}, {pipeline_mode = #tpu.pipeline_mode<synchronous>, transform_indices = @transform_9, window_bounds = array<i64: 32, 64>}, {pipeline_mode = #tpu.pipeline_mode<synchronous>, transform_indices = @transform_10, window_bounds = array<i64: 1, 64>}, {pipeline_mode = #tpu.pipeline_mode<synchronous>, transform_indices = @transform_11, window_bounds = array<i64: 64, 32>}, {pipeline_mode = #tpu.pipeline_mode<synchronous>, transform_indices = @transform_12, window_bounds = array<i64: 1, 32>}, {transform_indices = @transform_13, window_bounds = array<i64: 1, 128, 32>}]} {
    %c0 = arith.constant 0 : index
    %c0_0 = arith.constant 0 : index
    %c0_1 = arith.constant 0 : index
    %0 = vector.load %arg2[%c0, %c0_0, %c0_1] : memref<1x128x32xf32, #tpu.memory_space<vmem>>, vector<1x128x32xf32>
    %1 = vector.shape_cast %0 : vector<1x128x32xf32> to vector<128x32xf32>
    %c0_2 = arith.constant 0 : index
    %c0_3 = arith.constant 0 : index
    %2 = vector.load %arg3[%c0_2, %c0_3] : memref<1x32xf32, #tpu.memory_space<vmem>>, vector<1x32xf32>
    %3 = vector.shape_cast %2 : vector<1x32xf32> to vector<32xf32>
    %c0_4 = arith.constant 0 : index
    %c0_5 = arith.constant 0 : index
    %4 = vector.load %arg4[%c0_4, %c0_5] : memref<1x32xf32, #tpu.memory_space<vmem>>, vector<1x32xf32>
    %5 = vector.shape_cast %4 : vector<1x32xf32> to vector<32xf32>
    %cst = arith.constant dense<0.000000e+00> : vector<128xf32>
    %6 = vector.multi_reduction <add>, %1, %cst [1] : vector<128x32xf32> to vector<128xf32>
    %7 = vector.shape_cast %6 : vector<128xf32> to vector<128x1xf32>
    %cst_6 = arith.constant 3.125000e-02 : f32
    %8 = vector.broadcast %cst_6 : f32 to vector<128x1xf32>
    %9 = arith.mulf %7, %8 : vector<128x1xf32>
    %10 = vector.broadcast %9 : vector<128x1xf32> to vector<128x32xf32>
    %11 = arith.subf %1, %10 : vector<128x32xf32>
    %12 = arith.mulf %11, %11 : vector<128x32xf32>
    %cst_7 = arith.constant dense<0.000000e+00> : vector<128xf32>
    %13 = vector.multi_reduction <add>, %12, %cst_7 [1] : vector<128x32xf32> to vector<128xf32>
    %14 = vector.shape_cast %13 : vector<128xf32> to vector<128x1xf32>
    %cst_8 = arith.constant 3.125000e-02 : f32
    %15 = vector.broadcast %cst_8 : f32 to vector<128x1xf32>
    %16 = arith.mulf %14, %15 : vector<128x1xf32>
    %cst_9 = arith.constant 9.99999974E-6 : f32
    %17 = vector.broadcast %cst_9 : f32 to vector<128x1xf32>
    %18 = arith.addf %16, %17 : vector<128x1xf32>
    %19 = math.rsqrt %18 : vector<128x1xf32>
    %20 = vector.broadcast %19 : vector<128x1xf32> to vector<128x32xf32>
    %21 = arith.mulf %11, %20 : vector<128x32xf32>
    %22 = vector.shape_cast %3 : vector<32xf32> to vector<1x32xf32>
    %23 = vector.broadcast %22 : vector<1x32xf32> to vector<128x32xf32>
    %24 = arith.mulf %21, %23 : vector<128x32xf32>
    %25 = vector.shape_cast %5 : vector<32xf32> to vector<1x32xf32>
    %26 = vector.broadcast %25 : vector<1x32xf32> to vector<128x32xf32>
    %27 = arith.addf %24, %26 : vector<128x32xf32>
    %28 = tpu.iota {dimensions = array<i32: 1>} : vector<1x128x1xi32>
    %29 = vector.shape_cast %28 : vector<1x128x1xi32> to vector<128x1xi32>
    %c8_i32 = arith.constant 8 : i32
    %30 = vector.broadcast %c8_i32 : i32 to vector<128x1xi32>
    %31 = arith.cmpi slt, %29, %30 : vector<128x1xi32>
    %cst_10 = arith.constant 0.000000e+00 : f32
    %32 = vector.shape_cast %31 : vector<128x1xi1> to vector<128x1xi1>
    %33 = vector.broadcast %32 : vector<128x1xi1> to vector<128x32xi1>
    %34 = vector.broadcast %cst_10 : f32 to vector<128x32xf32>
    %35 = arith.select %33, %27, %34 : vector<128x32xi1>, vector<128x32xf32>
    %36 = arith.truncf %35 : vector<128x32xf32> to vector<128x32xbf16>
    %c0_11 = arith.constant 0 : index
    %c0_12 = arith.constant 0 : index
    %37 = vector.load %arg5[%c0_11, %c0_12] : memref<32x96xbf16, #tpu.memory_space<vmem>>, vector<32x96xbf16>
    %cst_13 = arith.constant dense<0.000000e+00> : vector<128x96xf32>
    %38 = tpu.matmul %36, %37, %cst_13 {dimension_numbers = #tpu.dot_dimension_numbers<[1], [0], [0], [1], [0, 0, 1, 1], [], []>} : vector<128x32xbf16>, vector<32x96xbf16>, vector<128x96xf32> -> vector<128x96xf32>
    %39 = arith.truncf %38 : vector<128x96xf32> to vector<128x96xbf16>
    %40 = vector.shape_cast %39 : vector<128x96xbf16> to vector<1x128x96xbf16>
    %41 = vector.extract_strided_slice %40 {offsets = [0, 0, 0], sizes = [1, 128, 8], strides = [1, 1, 1]} : vector<1x128x96xbf16> to vector<1x128x8xbf16>
    %42 = vector.extract_strided_slice %40 {offsets = [0, 0, 8], sizes = [1, 128, 8], strides = [1, 1, 1]} : vector<1x128x96xbf16> to vector<1x128x8xbf16>
    %43 = vector.extract_strided_slice %40 {offsets = [0, 0, 16], sizes = [1, 128, 8], strides = [1, 1, 1]} : vector<1x128x96xbf16> to vector<1x128x8xbf16>
    %c0_14 = arith.constant 0 : index
    %c0_15 = arith.constant 0 : index
    %44 = memref.load %arg1[%c0_14, %c0_15] : memref<1x4xf32, #tpu.memory_space<smem>>
    "tpu.trace_start"() <{level = 10 : i32, message = "bnd,bmd->bnm"}> : () -> ()
    %cst_16 = arith.constant dense<0.000000e+00> : vector<1x128x128xf32>
    %45 = tpu.matmul %41, %42, %cst_16 {dimension_numbers = #tpu.dot_dimension_numbers<[2], [2], [1], [1], [0, 0, 0, 1, 1, 1], [0], [0]>} : vector<1x128x8xbf16>, vector<1x128x8xbf16>, vector<1x128x128xf32> -> vector<1x128x128xf32>
    "tpu.trace_stop"() : () -> ()
    %cst_17 = arith.constant 0.000000e+00 : f32
    %46 = vector.broadcast %cst_17 : f32 to vector<1x128x128xf32>
    %47 = arith.maximumf %45, %46 : vector<1x128x128xf32>
    %cst_18 = arith.constant dense<0.000000e+00> : vector<1x128xf32>
    %48 = vector.multi_reduction <add>, %47, %cst_18 [2] : vector<1x128x128xf32> to vector<1x128xf32>
    %49 = vector.shape_cast %48 : vector<1x128xf32> to vector<1x128x1xf32>
    %cst_19 = arith.constant 9.99999993E-9 : f32
    %50 = vector.broadcast %cst_19 : f32 to vector<1x128x1xf32>
    %51 = arith.addf %49, %50 : vector<1x128x1xf32>
    %52 = vector.broadcast %51 : vector<1x128x1xf32> to vector<1x128x128xf32>
    %53 = arith.divf %47, %52 : vector<1x128x128xf32>
    %54 = vector.broadcast %44 : f32 to vector<1x128x128xf32>
    %55 = arith.mulf %54, %53 : vector<1x128x128xf32>
    %cst_20 = arith.constant 1.000000e+00 : f32
    %56 = arith.subf %cst_20, %44 : f32
    %cst_21 = arith.constant 1.250000e-01 : f32
    %57 = arith.mulf %56, %cst_21 : f32
    %58 = vector.broadcast %57 : f32 to vector<1x128x128xf32>
    %59 = arith.mulf %58, %45 : vector<1x128x128xf32>
    %60 = arith.addf %55, %59 : vector<1x128x128xf32>
    %61 = arith.truncf %60 : vector<1x128x128xf32> to vector<1x128x128xbf16>
    "tpu.trace_start"() <{level = 10 : i32, message = "bnm,bmd->bnd"}> : () -> ()
    %cst_22 = arith.constant dense<0.000000e+00> : vector<1x128x8xf32>
    %62 = tpu.matmul %61, %43, %cst_22 {dimension_numbers = #tpu.dot_dimension_numbers<[2], [1], [1], [2], [0, 0, 0, 1, 1, 2], [0], [0]>} : vector<1x128x128xbf16>, vector<1x128x8xbf16>, vector<1x128x8xf32> -> vector<1x128x8xf32>
    "tpu.trace_stop"() : () -> ()
    %63 = vector.shape_cast %62 : vector<1x128x8xf32> to vector<128x8xf32>
    %64 = arith.truncf %63 : vector<128x8xf32> to vector<128x8xbf16>
    %c0_23 = arith.constant 0 : index
    %c0_24 = arith.constant 0 : index
    %65 = vector.load %arg15[%c0_23, %c0_24] : memref<128x32xbf16, #tpu.memory_space<vmem>>, vector<128x8xbf16>
    tpu.vector_store %arg15[%c0_23, %c0_24], %64 {strides = array<i32>} : memref<128x32xbf16, #tpu.memory_space<vmem>>, vector<128x8xbf16>,
    %66 = vector.extract_strided_slice %40 {offsets = [0, 0, 24], sizes = [1, 128, 8], strides = [1, 1, 1]} : vector<1x128x96xbf16> to vector<1x128x8xbf16>
    %67 = vector.extract_strided_slice %40 {offsets = [0, 0, 32], sizes = [1, 128, 8], strides = [1, 1, 1]} : vector<1x128x96xbf16> to vector<1x128x8xbf16>
    %68 = vector.extract_strided_slice %40 {offsets = [0, 0, 40], sizes = [1, 128, 8], strides = [1, 1, 1]} : vector<1x128x96xbf16> to vector<1x128x8xbf16>
    %c0_25 = arith.constant 0 : index
    %c1 = arith.constant 1 : index
    %69 = memref.load %arg1[%c0_25, %c1] : memref<1x4xf32, #tpu.memory_space<smem>>
    "tpu.trace_start"() <{level = 10 : i32, message = "bnd,bmd->bnm"}> : () -> ()
    %cst_26 = arith.constant dense<0.000000e+00> : vector<1x128x128xf32>
    %70 = tpu.matmul %66, %67, %cst_26 {dimension_numbers = #tpu.dot_dimension_numbers<[2], [2], [1], [1], [0, 0, 0, 1, 1, 1], [0], [0]>} : vector<1x128x8xbf16>, vector<1x128x8xbf16>, vector<1x128x128xf32> -> vector<1x128x128xf32>
    "tpu.trace_stop"() : () -> ()
    %cst_27 = arith.constant 0.000000e+00 : f32
    %71 = vector.broadcast %cst_27 : f32 to vector<1x128x128xf32>
    %72 = arith.maximumf %70, %71 : vector<1x128x128xf32>
    %cst_28 = arith.constant dense<0.000000e+00> : vector<1x128xf32>
    %73 = vector.multi_reduction <add>, %72, %cst_28 [2] : vector<1x128x128xf32> to vector<1x128xf32>
    %74 = vector.shape_cast %73 : vector<1x128xf32> to vector<1x128x1xf32>
    %cst_29 = arith.constant 9.99999993E-9 : f32
    %75 = vector.broadcast %cst_29 : f32 to vector<1x128x1xf32>
    %76 = arith.addf %74, %75 : vector<1x128x1xf32>
    %77 = vector.broadcast %76 : vector<1x128x1xf32> to vector<1x128x128xf32>
    %78 = arith.divf %72, %77 : vector<1x128x128xf32>
    %79 = vector.broadcast %69 : f32 to vector<1x128x128xf32>
    %80 = arith.mulf %79, %78 : vector<1x128x128xf32>
    %cst_30 = arith.constant 1.000000e+00 : f32
    %81 = arith.subf %cst_30, %69 : f32
    %cst_31 = arith.constant 1.250000e-01 : f32
    %82 = arith.mulf %81, %cst_31 : f32
    %83 = vector.broadcast %82 : f32 to vector<1x128x128xf32>
    %84 = arith.mulf %83, %70 : vector<1x128x128xf32>
    %85 = arith.addf %80, %84 : vector<1x128x128xf32>
    %86 = arith.truncf %85 : vector<1x128x128xf32> to vector<1x128x128xbf16>
    "tpu.trace_start"() <{level = 10 : i32, message = "bnm,bmd->bnd"}> : () -> ()
    %cst_32 = arith.constant dense<0.000000e+00> : vector<1x128x8xf32>
    %87 = tpu.matmul %86, %68, %cst_32 {dimension_numbers = #tpu.dot_dimension_numbers<[2], [1], [1], [2], [0, 0, 0, 1, 1, 2], [0], [0]>} : vector<1x128x128xbf16>, vector<1x128x8xbf16>, vector<1x128x8xf32> -> vector<1x128x8xf32>
    "tpu.trace_stop"() : () -> ()
    %88 = vector.shape_cast %87 : vector<1x128x8xf32> to vector<128x8xf32>
    %89 = arith.truncf %88 : vector<128x8xf32> to vector<128x8xbf16>
    %c0_33 = arith.constant 0 : index
    %c8 = arith.constant 8 : index
    %90 = vector.load %arg15[%c0_33, %c8] : memref<128x32xbf16, #tpu.memory_space<vmem>>, vector<128x8xbf16>
    tpu.vector_store %arg15[%c0_33, %c8], %89 {strides = array<i32>} : memref<128x32xbf16, #tpu.memory_space<vmem>>, vector<128x8xbf16>,
    %91 = vector.extract_strided_slice %40 {offsets = [0, 0, 48], sizes = [1, 128, 8], strides = [1, 1, 1]} : vector<1x128x96xbf16> to vector<1x128x8xbf16>
    %92 = vector.extract_strided_slice %40 {offsets = [0, 0, 56], sizes = [1, 128, 8], strides = [1, 1, 1]} : vector<1x128x96xbf16> to vector<1x128x8xbf16>
    %93 = vector.extract_strided_slice %40 {offsets = [0, 0, 64], sizes = [1, 128, 8], strides = [1, 1, 1]} : vector<1x128x96xbf16> to vector<1x128x8xbf16>
    %c0_34 = arith.constant 0 : index
    %c2 = arith.constant 2 : index
    %94 = memref.load %arg1[%c0_34, %c2] : memref<1x4xf32, #tpu.memory_space<smem>>
    "tpu.trace_start"() <{level = 10 : i32, message = "bnd,bmd->bnm"}> : () -> ()
    %cst_35 = arith.constant dense<0.000000e+00> : vector<1x128x128xf32>
    %95 = tpu.matmul %91, %92, %cst_35 {dimension_numbers = #tpu.dot_dimension_numbers<[2], [2], [1], [1], [0, 0, 0, 1, 1, 1], [0], [0]>} : vector<1x128x8xbf16>, vector<1x128x8xbf16>, vector<1x128x128xf32> -> vector<1x128x128xf32>
    "tpu.trace_stop"() : () -> ()
    %cst_36 = arith.constant 0.000000e+00 : f32
    %96 = vector.broadcast %cst_36 : f32 to vector<1x128x128xf32>
    %97 = arith.maximumf %95, %96 : vector<1x128x128xf32>
    %cst_37 = arith.constant dense<0.000000e+00> : vector<1x128xf32>
    %98 = vector.multi_reduction <add>, %97, %cst_37 [2] : vector<1x128x128xf32> to vector<1x128xf32>
    %99 = vector.shape_cast %98 : vector<1x128xf32> to vector<1x128x1xf32>
    %cst_38 = arith.constant 9.99999993E-9 : f32
    %100 = vector.broadcast %cst_38 : f32 to vector<1x128x1xf32>
    %101 = arith.addf %99, %100 : vector<1x128x1xf32>
    %102 = vector.broadcast %101 : vector<1x128x1xf32> to vector<1x128x128xf32>
    %103 = arith.divf %97, %102 : vector<1x128x128xf32>
    %104 = vector.broadcast %94 : f32 to vector<1x128x128xf32>
    %105 = arith.mulf %104, %103 : vector<1x128x128xf32>
    %cst_39 = arith.constant 1.000000e+00 : f32
    %106 = arith.subf %cst_39, %94 : f32
    %cst_40 = arith.constant 1.250000e-01 : f32
    %107 = arith.mulf %106, %cst_40 : f32
    %108 = vector.broadcast %107 : f32 to vector<1x128x128xf32>
    %109 = arith.mulf %108, %95 : vector<1x128x128xf32>
    %110 = arith.addf %105, %109 : vector<1x128x128xf32>
    %111 = arith.truncf %110 : vector<1x128x128xf32> to vector<1x128x128xbf16>
    "tpu.trace_start"() <{level = 10 : i32, message = "bnm,bmd->bnd"}> : () -> ()
    %cst_41 = arith.constant dense<0.000000e+00> : vector<1x128x8xf32>
    %112 = tpu.matmul %111, %93, %cst_41 {dimension_numbers = #tpu.dot_dimension_numbers<[2], [1], [1], [2], [0, 0, 0, 1, 1, 2], [0], [0]>} : vector<1x128x128xbf16>, vector<1x128x8xbf16>, vector<1x128x8xf32> -> vector<1x128x8xf32>
    "tpu.trace_stop"() : () -> ()
    %113 = vector.shape_cast %112 : vector<1x128x8xf32> to vector<128x8xf32>
    %114 = arith.truncf %113 : vector<128x8xf32> to vector<128x8xbf16>
    %c0_42 = arith.constant 0 : index
    %c16 = arith.constant 16 : index
    %115 = vector.load %arg15[%c0_42, %c16] : memref<128x32xbf16, #tpu.memory_space<vmem>>, vector<128x8xbf16>
    tpu.vector_store %arg15[%c0_42, %c16], %114 {strides = array<i32>} : memref<128x32xbf16, #tpu.memory_space<vmem>>, vector<128x8xbf16>,
    %116 = vector.extract_strided_slice %40 {offsets = [0, 0, 72], sizes = [1, 128, 8], strides = [1, 1, 1]} : vector<1x128x96xbf16> to vector<1x128x8xbf16>
    %117 = vector.extract_strided_slice %40 {offsets = [0, 0, 80], sizes = [1, 128, 8], strides = [1, 1, 1]} : vector<1x128x96xbf16> to vector<1x128x8xbf16>
    %118 = vector.extract_strided_slice %40 {offsets = [0, 0, 88], sizes = [1, 128, 8], strides = [1, 1, 1]} : vector<1x128x96xbf16> to vector<1x128x8xbf16>
    %c0_43 = arith.constant 0 : index
    %c3 = arith.constant 3 : index
    %119 = memref.load %arg1[%c0_43, %c3] : memref<1x4xf32, #tpu.memory_space<smem>>
    "tpu.trace_start"() <{level = 10 : i32, message = "bnd,bmd->bnm"}> : () -> ()
    %cst_44 = arith.constant dense<0.000000e+00> : vector<1x128x128xf32>
    %120 = tpu.matmul %116, %117, %cst_44 {dimension_numbers = #tpu.dot_dimension_numbers<[2], [2], [1], [1], [0, 0, 0, 1, 1, 1], [0], [0]>} : vector<1x128x8xbf16>, vector<1x128x8xbf16>, vector<1x128x128xf32> -> vector<1x128x128xf32>
    "tpu.trace_stop"() : () -> ()
    %cst_45 = arith.constant 0.000000e+00 : f32
    %121 = vector.broadcast %cst_45 : f32 to vector<1x128x128xf32>
    %122 = arith.maximumf %120, %121 : vector<1x128x128xf32>
    %cst_46 = arith.constant dense<0.000000e+00> : vector<1x128xf32>
    %123 = vector.multi_reduction <add>, %122, %cst_46 [2] : vector<1x128x128xf32> to vector<1x128xf32>
    %124 = vector.shape_cast %123 : vector<1x128xf32> to vector<1x128x1xf32>
    %cst_47 = arith.constant 9.99999993E-9 : f32
    %125 = vector.broadcast %cst_47 : f32 to vector<1x128x1xf32>
    %126 = arith.addf %124, %125 : vector<1x128x1xf32>
    %127 = vector.broadcast %126 : vector<1x128x1xf32> to vector<1x128x128xf32>
    %128 = arith.divf %122, %127 : vector<1x128x128xf32>
    %129 = vector.broadcast %119 : f32 to vector<1x128x128xf32>
    %130 = arith.mulf %129, %128 : vector<1x128x128xf32>
    %cst_48 = arith.constant 1.000000e+00 : f32
    %131 = arith.subf %cst_48, %119 : f32
    %cst_49 = arith.constant 1.250000e-01 : f32
    %132 = arith.mulf %131, %cst_49 : f32
    %133 = vector.broadcast %132 : f32 to vector<1x128x128xf32>
    %134 = arith.mulf %133, %120 : vector<1x128x128xf32>
    %135 = arith.addf %130, %134 : vector<1x128x128xf32>
    %136 = arith.truncf %135 : vector<1x128x128xf32> to vector<1x128x128xbf16>
    "tpu.trace_start"() <{level = 10 : i32, message = "bnm,bmd->bnd"}> : () -> ()
    %cst_50 = arith.constant dense<0.000000e+00> : vector<1x128x8xf32>
    %137 = tpu.matmul %136, %118, %cst_50 {dimension_numbers = #tpu.dot_dimension_numbers<[2], [1], [1], [2], [0, 0, 0, 1, 1, 2], [0], [0]>} : vector<1x128x128xbf16>, vector<1x128x8xbf16>, vector<1x128x8xf32> -> vector<1x128x8xf32>
    "tpu.trace_stop"() : () -> ()
    %138 = vector.shape_cast %137 : vector<1x128x8xf32> to vector<128x8xf32>
    %139 = arith.truncf %138 : vector<128x8xf32> to vector<128x8xbf16>
    %c0_51 = arith.constant 0 : index
    %c24 = arith.constant 24 : index
    %140 = vector.load %arg15[%c0_51, %c24] : memref<128x32xbf16, #tpu.memory_space<vmem>>, vector<128x8xbf16>
    tpu.vector_store %arg15[%c0_51, %c24], %139 {strides = array<i32>} : memref<128x32xbf16, #tpu.memory_space<vmem>>, vector<128x8xbf16>,
    %c0_52 = arith.constant 0 : index
    %c0_53 = arith.constant 0 : index
    %141 = vector.load %arg15[%c0_52, %c0_53] : memref<128x32xbf16, #tpu.memory_space<vmem>>, vector<128x32xbf16>
    %c0_54 = arith.constant 0 : index
    %c0_55 = arith.constant 0 : index
    %142 = vector.load %arg6[%c0_54, %c0_55] : memref<32x32xbf16, #tpu.memory_space<vmem>>, vector<32x32xbf16>
    %cst_56 = arith.constant dense<0.000000e+00> : vector<128x32xf32>
    %143 = tpu.matmul %141, %142, %cst_56 {dimension_numbers = #tpu.dot_dimension_numbers<[1], [0], [0], [1], [0, 0, 1, 1], [], []>} : vector<128x32xbf16>, vector<32x32xbf16>, vector<128x32xf32> -> vector<128x32xf32>
    %c0_57 = arith.constant 0 : index
    %c0_58 = arith.constant 0 : index
    %144 = vector.load %arg7[%c0_57, %c0_58] : memref<1x32xf32, #tpu.memory_space<vmem>>, vector<1x32xf32>
    %145 = vector.shape_cast %144 : vector<1x32xf32> to vector<32xf32>
    %146 = vector.shape_cast %145 : vector<32xf32> to vector<1x32xf32>
    %147 = vector.broadcast %146 : vector<1x32xf32> to vector<128x32xf32>
    %148 = arith.addf %143, %147 : vector<128x32xf32>
    %149 = arith.addf %1, %148 : vector<128x32xf32>
    %c0_59 = arith.constant 0 : index
    %c0_60 = arith.constant 0 : index
    %150 = vector.load %arg8[%c0_59, %c0_60] : memref<1x32xf32, #tpu.memory_space<vmem>>, vector<1x32xf32>
    %151 = vector.shape_cast %150 : vector<1x32xf32> to vector<32xf32>
    %c0_61 = arith.constant 0 : index
    %c0_62 = arith.constant 0 : index
    %152 = vector.load %arg9[%c0_61, %c0_62] : memref<1x32xf32, #tpu.memory_space<vmem>>, vector<1x32xf32>
    %153 = vector.shape_cast %152 : vector<1x32xf32> to vector<32xf32>
    %cst_63 = arith.constant dense<0.000000e+00> : vector<128xf32>
    %154 = vector.multi_reduction <add>, %149, %cst_63 [1] : vector<128x32xf32> to vector<128xf32>
    %155 = vector.shape_cast %154 : vector<128xf32> to vector<128x1xf32>
    %cst_64 = arith.constant 3.125000e-02 : f32
    %156 = vector.broadcast %cst_64 : f32 to vector<128x1xf32>
    %157 = arith.mulf %155, %156 : vector<128x1xf32>
    %158 = vector.broadcast %157 : vector<128x1xf32> to vector<128x32xf32>
    %159 = arith.subf %149, %158 : vector<128x32xf32>
    %160 = arith.mulf %159, %159 : vector<128x32xf32>
    %cst_65 = arith.constant dense<0.000000e+00> : vector<128xf32>
    %161 = vector.multi_reduction <add>, %160, %cst_65 [1] : vector<128x32xf32> to vector<128xf32>
    %162 = vector.shape_cast %161 : vector<128xf32> to vector<128x1xf32>
    %cst_66 = arith.constant 3.125000e-02 : f32
    %163 = vector.broadcast %cst_66 : f32 to vector<128x1xf32>
    %164 = arith.mulf %162, %163 : vector<128x1xf32>
    %cst_67 = arith.constant 9.99999974E-6 : f32
    %165 = vector.broadcast %cst_67 : f32 to vector<128x1xf32>
    %166 = arith.addf %164, %165 : vector<128x1xf32>
    %167 = math.rsqrt %166 : vector<128x1xf32>
    %168 = vector.broadcast %167 : vector<128x1xf32> to vector<128x32xf32>
    %169 = arith.mulf %159, %168 : vector<128x32xf32>
    %170 = vector.shape_cast %151 : vector<32xf32> to vector<1x32xf32>
    %171 = vector.broadcast %170 : vector<1x32xf32> to vector<128x32xf32>
    %172 = arith.mulf %169, %171 : vector<128x32xf32>
    %173 = vector.shape_cast %153 : vector<32xf32> to vector<1x32xf32>
    %174 = vector.broadcast %173 : vector<1x32xf32> to vector<128x32xf32>
    %175 = arith.addf %172, %174 : vector<128x32xf32>
    %176 = arith.truncf %175 : vector<128x32xf32> to vector<128x32xbf16>
    %cst_68 = arith.constant 0.000000e+00 : f32
    %177 = vector.broadcast %cst_68 : f32 to vector<128x32xf32>
    %c0_69 = arith.constant 0 : index
    %c0_70 = arith.constant 0 : index
    %178 = vector.load %arg10[%c0_69, %c0_70] : memref<32x64xbf16, #tpu.memory_space<vmem>>, vector<32x64xbf16>
    %cst_71 = arith.constant dense<0.000000e+00> : vector<128x64xf32>
    %179 = tpu.matmul %176, %178, %cst_71 {dimension_numbers = #tpu.dot_dimension_numbers<[1], [0], [0], [1], [0, 0, 1, 1], [], []>} : vector<128x32xbf16>, vector<32x64xbf16>, vector<128x64xf32> -> vector<128x64xf32>
    %c0_72 = arith.constant 0 : index
    %c0_73 = arith.constant 0 : index
    %180 = vector.load %arg11[%c0_72, %c0_73] : memref<1x64xf32, #tpu.memory_space<vmem>>, vector<1x64xf32>
    %181 = vector.shape_cast %180 : vector<1x64xf32> to vector<64xf32>
    %182 = vector.shape_cast %181 : vector<64xf32> to vector<1x64xf32>
    %183 = vector.broadcast %182 : vector<1x64xf32> to vector<128x64xf32>
    %184 = arith.addf %179, %183 : vector<128x64xf32>
    %185 = arith.mulf %184, %184 : vector<128x64xf32>
    %186 = arith.mulf %184, %185 : vector<128x64xf32>
    %cst_74 = arith.constant 4.471500e-02 : f32
    %187 = vector.broadcast %cst_74 : f32 to vector<128x64xf32>
    %188 = arith.mulf %187, %186 : vector<128x64xf32>
    %189 = arith.addf %184, %188 : vector<128x64xf32>
    %cst_75 = arith.constant 0.797884583 : f32
    %190 = vector.broadcast %cst_75 : f32 to vector<128x64xf32>
    %191 = arith.mulf %190, %189 : vector<128x64xf32>
    %192 = math.tanh %191 : vector<128x64xf32>
    %cst_76 = arith.constant 1.000000e+00 : f32
    %193 = vector.broadcast %cst_76 : f32 to vector<128x64xf32>
    %194 = arith.addf %193, %192 : vector<128x64xf32>
    %cst_77 = arith.constant 5.000000e-01 : f32
    %195 = vector.broadcast %cst_77 : f32 to vector<128x64xf32>
    %196 = arith.mulf %195, %194 : vector<128x64xf32>
    %197 = arith.mulf %184, %196 : vector<128x64xf32>
    %198 = arith.truncf %197 : vector<128x64xf32> to vector<128x64xbf16>
    %c0_78 = arith.constant 0 : index
    %c0_79 = arith.constant 0 : index
    %199 = vector.load %arg12[%c0_78, %c0_79] : memref<64x32xbf16, #tpu.memory_space<vmem>>, vector<64x32xbf16>
    %cst_80 = arith.constant dense<0.000000e+00> : vector<128x32xf32>
    %200 = tpu.matmul %198, %199, %cst_80 {dimension_numbers = #tpu.dot_dimension_numbers<[1], [0], [0], [1], [0, 0, 1, 1], [], []>} : vector<128x64xbf16>, vector<64x32xbf16>, vector<128x32xf32> -> vector<128x32xf32>
    %201 = arith.addf %177, %200 : vector<128x32xf32>
    %c0_81 = arith.constant 0 : index
    %c0_82 = arith.constant 0 : index
    %202 = vector.load %arg13[%c0_81, %c0_82] : memref<1x32xf32, #tpu.memory_space<vmem>>, vector<1x32xf32>
    %203 = vector.shape_cast %202 : vector<1x32xf32> to vector<32xf32>
    %204 = vector.shape_cast %203 : vector<32xf32> to vector<1x32xf32>
    %205 = vector.broadcast %204 : vector<1x32xf32> to vector<128x32xf32>
    %206 = arith.addf %201, %205 : vector<128x32xf32>
    %207 = arith.addf %175, %206 : vector<128x32xf32>
    %208 = vector.shape_cast %207 : vector<128x32xf32> to vector<1x128x32xf32>
    %c0_83 = arith.constant 0 : index
    %c0_84 = arith.constant 0 : index
    %c0_85 = arith.constant 0 : index
    %209 = vector.load %arg14[%c0_83, %c0_84, %c0_85] : memref<1x128x32xf32, #tpu.memory_space<vmem>>, vector<1x128x32xf32>
    tpu.vector_store %arg14[%c0_83, %c0_84, %c0_85], %208 {strides = array<i32>} : memref<1x128x32xf32, #tpu.memory_space<vmem>>, vector<1x128x32xf32>,
    return
  }
  func.func @transform_0(%arg0: i32) -> (i32, i32) {
    %c0_i32 = arith.constant 0 : i32
    %c0_i32_0 = arith.constant 0 : i32
    %c0_i32_1 = arith.constant 0 : i32
    return %c0_i32, %c0_i32_0 : i32, i32
  }
  func.func @transform_1(%arg0: i32) -> (i32, i32, i32) {
    %c0_i32 = arith.constant 0 : i32
    %c0_i32_0 = arith.constant 0 : i32
    %c0_i32_1 = arith.constant 0 : i32
    return %arg0, %c0_i32, %c0_i32_0 : i32, i32, i32
  }
  func.func @transform_2(%arg0: i32) -> (i32, i32) {
    %c0_i32 = arith.constant 0 : i32
    %c0_i32_0 = arith.constant 0 : i32
    %c0_i32_1 = arith.constant 0 : i32
    return %c0_i32, %c0_i32_0 : i32, i32
  }
  func.func @transform_3(%arg0: i32) -> (i32, i32) {
    %c0_i32 = arith.constant 0 : i32
    %c0_i32_0 = arith.constant 0 : i32
    %c0_i32_1 = arith.constant 0 : i32
    return %c0_i32, %c0_i32_0 : i32, i32
  }
  func.func @transform_4(%arg0: i32) -> (i32, i32) {
    %c0_i32 = arith.constant 0 : i32
    %c0_i32_0 = arith.constant 0 : i32
    %c0_i32_1 = arith.constant 0 : i32
    return %c0_i32, %c0_i32_0 : i32, i32
  }
  func.func @transform_5(%arg0: i32) -> (i32, i32) {
    %c0_i32 = arith.constant 0 : i32
    %c0_i32_0 = arith.constant 0 : i32
    %c0_i32_1 = arith.constant 0 : i32
    return %c0_i32, %c0_i32_0 : i32, i32
  }
  func.func @transform_6(%arg0: i32) -> (i32, i32) {
    %c0_i32 = arith.constant 0 : i32
    %c0_i32_0 = arith.constant 0 : i32
    %c0_i32_1 = arith.constant 0 : i32
    return %c0_i32, %c0_i32_0 : i32, i32
  }
  func.func @transform_7(%arg0: i32) -> (i32, i32) {
    %c0_i32 = arith.constant 0 : i32
    %c0_i32_0 = arith.constant 0 : i32
    %c0_i32_1 = arith.constant 0 : i32
    return %c0_i32, %c0_i32_0 : i32, i32
  }
  func.func @transform_8(%arg0: i32) -> (i32, i32) {
    %c0_i32 = arith.constant 0 : i32
    %c0_i32_0 = arith.constant 0 : i32
    %c0_i32_1 = arith.constant 0 : i32
    return %c0_i32, %c0_i32_0 : i32, i32
  }
  func.func @transform_9(%arg0: i32) -> (i32, i32) {
    %c0_i32 = arith.constant 0 : i32
    %c0_i32_0 = arith.constant 0 : i32
    %c0_i32_1 = arith.constant 0 : i32
    return %c0_i32, %c0_i32_0 : i32, i32
  }
  func.func @transform_10(%arg0: i32) -> (i32, i32) {
    %c0_i32 = arith.constant 0 : i32
    %c0_i32_0 = arith.constant 0 : i32
    %c0_i32_1 = arith.constant 0 : i32
    return %c0_i32, %c0_i32_0 : i32, i32
  }
  func.func @transform_11(%arg0: i32) -> (i32, i32) {
    %c0_i32 = arith.constant 0 : i32
    %c0_i32_0 = arith.constant 0 : i32
    %c0_i32_1 = arith.constant 0 : i32
    return %c0_i32, %c0_i32_0 : i32, i32
  }
  func.func @transform_12(%arg0: i32) -> (i32, i32) {
    %c0_i32 = arith.constant 0 : i32
    %c0_i32_0 = arith.constant 0 : i32
    %c0_i32_1 = arith.constant 0 : i32
    return %c0_i32, %c0_i32_0 : i32, i32
  }
  func.func @transform_13(%arg0: i32) -> (i32, i32, i32) {
    %c0_i32 = arith.constant 0 : i32
    %c0_i32_0 = arith.constant 0 : i32
    %c0_i32_1 = arith.constant 0 : i32
    return %arg0, %c0_i32, %c0_i32_0 : i32, i32, i32
  }
}

</mosaic_0001>

<bundles_post_ra>
// kernel: tpu_custom_call.1
= control target key start
LH: loop header
LB: loop body
LE: loop exit
PB: predicated region body
PF: predicated region fallthrough
CT: control target
= control target key end

     0   :  { %18 = vsyncpa [#allocation4], 0  ;;  %s5439_s25 = smov 0   ;;  %s8504_s0 = inlined_call_operand.vmem [shape: f32[1,4], index: 0, kind: input, shape index: {}]   ;;  %s8505_s1 = inlined_call_operand.vmem [shape: f32[2,128,32], index: 1, kind: input, shape index: {}]   ;;  %s8506_s2 = inlined_call_operand.vmem [shape: f32[1,32], index: 2, kind: input, shape index: {}]   ;;  %s8507_s3 = inlined_call_operand.vmem [shape: f32[1,32], index: 3, kind: input, shape index: {}]   ;;  %s8508_s4 = inlined_call_operand.vmem [shape: bf16[32,96], index: 4, kind: input, shape index: {}]   ;;  %s8509_s5 = inlined_call_operand.vmem [shape: bf16[32,32], index: 5, kind: input, shape index: {}]   ;;  %s8510_s6 = inlined_call_operand.vmem [shape: f32[1,32], index: 6, kind: input, shape index: {}]   ;;  %s8511_s7 = inlined_call_operand.vmem [shape: f32[1,32], index: 7, kind: input, shape index: {}]   ;;  %s8512_s8 = inlined_call_operand.vmem [shape: f32[1,32], index: 8, kind: input, shape index: {}]   ;;  %s8513_s9 = inlined_call_operand.vmem [shape: bf16[32,64], index: 9, kind: input, shape index: {}]   ;;  %s8514_s10 = inlined_call_operand.vmem [shape: f32[1,64], index: 10, kind: input, shape index: {}]   ;;  %s8515_s11 = inlined_call_operand.vmem [shape: bf16[64,32], index: 11, kind: input, shape index: {}]   ;;  %s8516_s12 = inlined_call_operand.vmem [shape: f32[1,32], index: 12, kind: input, shape index: {}]   ;;  %s8517_s13 = inlined_call_operand.vmem [shape: f32[2,128,32], index: 13, kind: output, shape index: {}]  }
   0x1 LB: > { %s4919_s26 = sadd.s32 4294967295, %s5351_s25   ;;  %p4921_p0 = scmp.ge.s32.totalorder %s5351_s25, 1  ;;  %s5351_s25 = sphi %s5439_s25, %s24_s25  }
   0x2   : > { %p333_p1 = scmp.lt.s32.totalorder %s5351_s25, 3  ;;  %s345_s29 = sshll.u32 %s8504_s0, 4  ;;  %s346_s29 = int_to_ptr.vmem [resolvable:$true] %s345_s29 }
   0x3   : > { %p5098_p3 = scmp.eq.s32.totalorder %s4919_s26, 0  ;;  %s5353_s30 = smov [#allocation3]  }
   0x4   : > { %p334_p2 = pnand %p4921_p0, %p333_p1 }
   0x6   : > { %p5094_p4 = pneg %p334_p2  ;;  %399 = sbr.rel (%p334_p2) target bundleno = 2807 (0xaf7), region = 72 }
   0x8   : > { %p5095_p5 = pnand %p5098_p3, %p5094_p4 }
   0xa   : > { %5097 = dma.vmem_to_smem (!%p5095_p5), %s346_s29, 16, %s5353_s30, [#allocation4]  }
   0xb   : > { %5346 = dma.done.wait (%p5098_p3), [#allocation4], 16  }
   0xc   : > { %5348 = vsyncadd (%p5098_p3), [#allocation4], 4294967280 }
   0xd   : > { %406 = sfence }
   0xe   : > { %p445_p6 = scmp.lt.s32.totalorder %s4919_s26, 1  ;;  %vm8610_vm0 = vcmask 261120   ;;  %v5067_v7 = vld [vmem:[%s8508_s4 + $0x8] sm:$0xff]  ;;  %v5066_v8 = vld [vmem:[%s8508_s4] sm:$0xff]  ;;  %v5354_v25 = vmov 0.0|0.0   ;;  %s5355_s28 = smov 120  }
   0xf   : > { %1000 = vmatpush.bf16.msra.mxu0 %v5067_v7  ;;  %v5124_v18 = vld [vmem:[%s8506_s2] ss:$0 sm:$0xff]  ;;  %s5356_s29 = smov 96   ;;  %s5357_s30 = smov 112   ;;  %vm1116_vm4 = vcmask 64512  }
  0x10   : > { %s8956_s26 = smov (!%p445_p6, %s4919_s26), 1  ;;  %v5125_v21 = vld [vmem:[%s8507_s3] ss:$0 sm:$0xff]  ;;  %s5358_s15 = smov 104  }
  0x11   : > { %s5064_s14 = sshll.u32 %s8956_s26, 7  ;;  %s5359_s16 = smov 72  }
  0x12   : > { %s5458_s17 = scalar_lea.vmem %s8505_s1, %s5064_s14  ;;  %s5360_s18 = smov 48  }
  0x13   : > { %v456_v0 = vld [vmem:[%s5458_s17] sm:$0xff]  ;;  %1001 = vmatpush.bf16.msra.mxu0 %v5066_v8  ;;  %s5361_s19 = smov 56   ;;  %s5362_s20 = smov 80  }
  0x14   : > { %v475_v1 = vsel %vm8610_vm0, %v456_v0, 0.0  ;;  %s5363_s21 = smov 88   ;;  %s5870_s22 = sld [smem:[#allocation3]] }
  0x15   : > { %476 = vadd.xlane.f32.xlu0 %v475_v1  ;;  %s6048_s27 = sld [smem:[#allocation3 + $0x1]] }
  0x1a   : > { %s1535_s23 = ssub.f32 1.0, %s5870_s22 }
  0x1c   : > { %s1536_s24 = smul.f32 0.125, %s1535_s23  ;;  %s5366_s23 = smov 8  }
  0x88   : > { %v477_v2 = vpop.xlane.xlu0 %476 }
  0x89   : > { %v523_v3 = vmul.f32 0.03125, %v477_v2 }
  0x8b   : > { %v539_v4 = vsub.f32 %v456_v0, %v523_v3 }
  0x8d   : > { %v555_v5 = vmul.f32 %v539_v4, %v539_v4 }
  0x8f   : > { %v571_v6 = vsel %vm8610_vm0, %v555_v5, 0.0 }
  0x90   : > { %572 = vadd.xlane.f32.xlu0 %v571_v6 }
 0x103   : > { %v573_v9 = vpop.xlane.xlu0 %572 }
 0x104   : > { %v619_v10 = vmul.f32 0.03125, %v573_v9 }
 0x106   : > { %v635_v11 = vadd.f32 1e-05, %v619_v10 }
 0x108   : > { %5131 = vrsqrt.f32 %v635_v11  ;;  %vm657_vm2 = vweird.f32 %v635_v11 }
 0x10e   : > { %v5132_v12 = vpop.eup %5131 }
 0x10f   : > { %v652_v13 = vmul.f32 %v5132_v12, %v635_v11  ;;  %vm658_vm1 = vweird.f32 %v5132_v12 }
 0x110   : > { %vm659_vm3 = vmor %vm657_vm2, %vm658_vm1 }
 0x111   : > { %v653_v14 = vmul.f32 %v5132_v12, %v652_v13 }
 0x113   : > { %v654_v15 = vmul.f32 0.5, %v653_v14 }
 0x115   : > { %v655_v16 = vsub.f32 1.5, %v654_v15 }
 0x117   : > { %v656_v17 = vmul.f32 %v5132_v12, %v655_v16 }
 0x119   : > { %v660_v19 = vsel %vm659_vm3, %v5132_v12, %v656_v17 }
 0x11a   : > { %v811_v20 = vmul.f32 %v660_v19, %v539_v4 }
 0x11c   : > { %v830_v22 = vmul.f32 %v5124_v18, %v811_v20 }
 0x11e   : > { %v849_v23 = vadd.f32 %v5125_v21, %v830_v22 }
 0x120   : > { %v946_v24 = vpack.c.bf16 0.0, %v849_v23 }
 0x122   : > { %4938 = vmatmul.msk.bf16.vlgmr.msra.gmra.mxu0 %vm8610_vm0, %v946_v24 }
 0x132   : > { %1007 = vmatmul.bf16.gmra.mxu0 %v5354_v25 }
 0x142   : > { %1012 = vmatmul.bf16.gmra.mxu0 %v5354_v25 }
 0x152   : > { %1017 = vmatmul.bf16.gmra.mxu0 %v5354_v25 }
 0x162   : > { %1022 = vmatmul.bf16.gmra.mxu0 %v5354_v25 }
 0x172   : > { %1027 = vmatmul.bf16.gmra.mxu0 %v5354_v25 }
 0x182   : > { %1032 = vmatmul.bf16.gmra.mxu0 %v5354_v25 }
 0x192   : > { %1037 = vmatmul.bf16.gmra.mxu0 %v5354_v25 }
 0x19f   : > { %v1003_v26 = vpop.f32.mrf.mxu0 }
 0x1a0   : > { %v1043_v43 = vpack.c.bf16 %v1003_v26, %v1003_v26 }
 0x1a2   : > { %v1076_v46 = vunpack.c.l.b16 %v1043_v43 }
 0x1a7   : > { %v1005_v27 = vpop.f32.mrf.mxu0 }
 0x1a8   : > { %v1044_v41 = vpack.c.bf16 %v1005_v27, %v1005_v27 }
 0x1aa   : > { %v1077_v45 = vunpack.c.l.b16 %v1044_v41 }
 0x1ac   : > { %v5486_v47 = vpack.c.b16 %v1077_v45, %v1076_v46 }
 0x1ae   : > { %8611 = vst [vmem:[#allocation6_spill] sm:$0xff] %v5486_v47 }
 0x1af   : > { %v1008_v28 = vpop.f32.mrf.mxu0 }
 0x1b0   : > { %v1045_v29 = vpack.c.bf16 %v1008_v28, %v1008_v28 }
 0x1b2   : > { %v1078_v32 = vunpack.c.l.b16 %v1045_v29 }
 0x1b7   : > { %v1010_v30 = vpop.f32.mrf.mxu0 }
 0x1b8   : > { %v1046_v31 = vpack.c.bf16 %v1010_v30, %v1010_v30 }
 0x1ba   : > { %v1079_v33 = vunpack.c.l.b16 %v1046_v31 }
 0x1bc   : > { %v5476_v34 = vpack.c.b16 %v1079_v33, %v1078_v32 }
 0x1be   : > { %1102 = vrot.lane.b32.xlu2 %v5476_v34, %s5355_s28 }
 0x1bf   : > { %v1013_v35 = vpop.f32.mrf.mxu0 }
 0x1c0   : > { %v1047_v36 = vpack.c.bf16 %v1013_v35, %v1013_v35 }
 0x1c2   : > { %v1080_v39 = vunpack.c.l.b16 %v1047_v36 }
 0x1c6   : > { %1759 = vrot.lane.b32.xlu2 %v5476_v34, %s5356_s29 }
 0x1c7   : > { %v1015_v37 = vpop.f32.mrf.mxu0 }
 0x1c8   : > { %v1048_v38 = vpack.c.bf16 %v1015_v37, %v1015_v37 }
 0x1ca   : > { %v1081_v40 = vunpack.c.l.b16 %v1048_v38 }
 0x1cc   : > { %v5482_v42 = vpack.c.b16 %v1081_v40, %v1080_v39 }
 0x1ce   : > { %1104 = vrot.lane.b32.xlu1 %v5482_v42, %s5355_s28 }
 0x1cf   : > { %v1018_v44 = vpop.f32.mrf.mxu0 }
 0x1d0   : > { %v1049_v48 = vpack.c.bf16 %v1018_v44, %v1018_v44 }
 0x1d2   : > { %v1082_v51 = vunpack.c.l.b16 %v1049_v48 }
 0x1d6   : > { %1100 = vrot.lane.b32.xlu1 %v5486_v47, %s5355_s28 }
 0x1d7   : > { %v1020_v49 = vpop.f32.mrf.mxu0 }
 0x1d8   : > { %v1050_v50 = vpack.c.bf16 %v1020_v49, %v1020_v49 }
 0x1da   : > { %v1083_v52 = vunpack.c.l.b16 %v1050_v50 }
 0x1dc   : > { %v5490_v53 = vpack.c.b16 %v1083_v52, %v1082_v51 }
 0x1de   : > { %1640 = vrot.lane.b32.xlu1 %v5490_v53, %s5357_s30  ;;  %1106 = vrot.lane.b32.xlu0 %v5490_v53, %s5355_s28 }
 0x1df   : > { %v1023_v54 = vpop.f32.mrf.mxu0 }
 0x1e0   : > { %v1051_v55 = vpack.c.bf16 %v1023_v54, %v1023_v54 }
 0x1e2   : > { %v1084_v58 = vunpack.c.l.b16 %v1051_v55 }
 0x1e6   : > { %1636 = vrot.lane.b32.xlu1 %v5476_v34, %s5357_s30  ;;  %1761 = vrot.lane.b32.xlu0 %v5482_v42, %s5356_s29 }
 0x1e7   : > { %v1025_v56 = vpop.f32.mrf.mxu0 }
 0x1e8   : > { %v1052_v57 = vpack.c.bf16 %v1025_v56, %v1025_v56 }
 0x1ea   : > { %v1085_v59 = vunpack.c.l.b16 %v1052_v57 }
 0x1ec   : > { %v5500_v60 = vpack.c.b16 %v1085_v59, %v1084_v58 }
 0x1ee   : > { %1634 = vrot.lane.b32.xlu1 %v5486_v47, %s5357_s30  ;;  %1763 = vrot.lane.b32.xlu0 %v5490_v53, %s5356_s29 }
 0x1ef   : > { %1108 = vrot.lane.b32.xlu2 %v5500_v60, %s5355_s28  ;;  %v1028_v61 = vpop.f32.mrf.mxu0 }
 0x1f0   : > { %v1053_v62 = vpack.c.bf16 %v1028_v61, %v1028_v61 }
 0x1f2   : > { %v1086_v1 = vunpack.c.l.b16 %v1053_v62 }
 0x1f6   : > { %1765 = vrot.lane.b32.xlu0 %v5500_v60, %s5356_s29 }
 0x1f7   : > { %1642 = vrot.lane.b32.xlu2 %v5500_v60, %s5357_s30  ;;  %v1030_v63 = vpop.f32.mrf.mxu0 }
 0x1f8   : > { %v1054_v0 = vpack.c.bf16 %v1030_v63, %v1030_v63 }
 0x1fa   : > { %v1087_v2 = vunpack.c.l.b16 %v1054_v0 }
 0x1fc   : > { %v5512_v3 = vpack.c.b16 %v1087_v2, %v1086_v1 }
 0x1fe   : > { %1644 = vrot.lane.b32.xlu0 %v5512_v3, %s5357_s30 }
 0x1ff   : > { %1110 = vrot.lane.b32.xlu2 %v5512_v3, %s5355_s28  ;;  %v1033_v4 = vpop.f32.mrf.mxu0 }
 0x200   : > { %v1055_v5 = vpack.c.bf16 %v1033_v4, %v1033_v4 }
 0x202   : > { %v1088_v7 = vunpack.c.l.b16 %v1055_v5 }
 0x207   : > { %1638 = vrot.lane.b32.xlu2 %v5482_v42, %s5357_s30  ;;  %v1035_v6 = vpop.f32.mrf.mxu0 }
 0x208   : > { %v1056_v8 = vpack.c.bf16 %v1035_v6, %v1035_v6 }
 0x20a   : > { %v1089_v9 = vunpack.c.l.b16 %v1056_v8 }
 0x20c   : > { %v5520_v10 = vpack.c.b16 %v1089_v9, %v1088_v7 }
 0x20e   : > { %1646 = vrot.lane.b32.xlu0 %v5520_v10, %s5357_s30  ;;  %1112 = vrot.lane.b32.xlu1 %v5520_v10, %s5355_s28 }
 0x20f   : > { %1757 = vrot.lane.b32.xlu2 %v5486_v47, %s5356_s29  ;;  %v1038_v11 = vpop.f32.mrf.mxu0 }
 0x210   : > { %v1057_v12 = vpack.c.bf16 %v1038_v11, %v1038_v11 }
 0x212   : > { %v1090_v14 = vunpack.c.l.b16 %v1057_v12 }
 0x216   : > { %1743 = vrot.lane.b32.xlu0 %v5476_v34, %s5358_s15  ;;  %1769 = vrot.lane.b32.xlu1 %v5520_v10, %s5356_s29 }
 0x217   : > { %1767 = vrot.lane.b32.xlu2 %v5512_v3, %s5356_s29  ;;  %v1040_v13 = vpop.f32.mrf.mxu0 }
 0x218   : > { %v1058_v15 = vpack.c.bf16 %v1040_v13, %v1040_v13  ;;  %v5558_v18 = vpop.permute.xlu2 %1102 }
 0x219   : > { %v1145_v13 = vsel %vm1116_vm4, %v5558_v18, 0 }
 0x21a   : > { %v1091_v16 = vunpack.c.l.b16 %v1058_v15 }
 0x21c   : > { %v5534_v17 = vpack.c.b16 %v1091_v16, %v1090_v14 }
 0x21e   : > { %2489 = vrot.lane.b32.xlu0 %v5520_v10, %s5359_s16  ;;  %1114 = vrot.lane.b32.xlu1 %v5534_v17, %s5355_s28  ;;  %s2191_s28 = ssub.f32 1.0, %s6048_s27 }
 0x21f   : > { %1745 = vrot.lane.b32.xlu2 %v5482_v42, %s5358_s15 }
 0x220   : > { %v5568_v19 = vpop.permute.xlu2 %1759 }
 0x226   : > { %3203 = vrot.lane.b32.xlu0 %v5490_v53, %s5360_s18  ;;  %1741 = vrot.lane.b32.xlu1 %v5486_v47, %s5358_s15 }
 0x227   : > { %1751 = vrot.lane.b32.xlu2 %v5512_v3, %s5358_s15 }
 0x22e   : > { %2477 = vrot.lane.b32.xlu0 %v5486_v47, %s5359_s16  ;;  %1747 = vrot.lane.b32.xlu1 %v5490_v53, %s5358_s15 }
 0x22f   : > { %2483 = vrot.lane.b32.xlu2 %v5490_v53, %s5359_s16 }
 0x236   : > { %3181 = vrot.lane.b32.xlu0 %v5486_v47, %s5361_s19  ;;  %1749 = vrot.lane.b32.xlu1 %v5500_v60, %s5358_s15 }
 0x237   : > { %2481 = vrot.lane.b32.xlu2 %v5482_v42, %s5359_s16 }
 0x23e   : > { %2465 = vrot.lane.b32.xlu0 %v5482_v42, %s5362_s20  ;;  %3209 = vrot.lane.b32.xlu1 %v5520_v10, %s5360_s18 }
 0x23f   : > { %2479 = vrot.lane.b32.xlu2 %v5476_v34, %s5359_s16 }
 0x240   : > { %v5584_v21 = vpop.permute.xlu1 %1104 }
 0x241   : > { %v1148_v8 = vsel %vm1116_vm4, %v5584_v21, 0 }
 0x246   : > { %3187 = vrot.lane.b32.xlu0 %v5490_v53, %s5361_s19  ;;  %2487 = vrot.lane.b32.xlu1 %v5512_v3, %s5359_s16 }
 0x247   : > { %3199 = vrot.lane.b32.xlu2 %v5476_v34, %s5360_s18 }
 0x248   : > { %v5594_v25 = vpop.permute.xlu1 %1100 }
 0x249   : > { %v5576_v20 = vpop.permute.xlu2 %1108 }
 0x24a   : > { %v1154_v63 = vsel %vm1116_vm4, %v5576_v20, 0  ;;  %v1142_v20 = vsel %vm1116_vm4, %v5594_v25, 0 }
 0x24e   : > { %2302 = vrot.lane.b32.xlu0 %v5520_v10, %s5363_s21  ;;  %3207 = vrot.lane.b32.xlu1 %v5512_v3, %s5360_s18 }
 0x24f   : > { %2461 = vrot.lane.b32.xlu2 %v5486_v47, %s5362_s20 }
 0x250   : > { %v1107_v22 = vpop.permute.xlu0 %1106  ;;  %v5606_v28 = vpop.permute.xlu1 %1640 }
 0x251   : > { %v5586_v23 = vpop.permute.xlu2 %1642  ;;  %v1151_v4 = vsel %vm1116_vm4, %v1107_v22, 0 }
 0x256   : > { %2300 = vrot.lane.b32.xlu0 %v5512_v3, %s5363_s21  ;;  %2485 = vrot.lane.b32.xlu1 %v5500_v60, %s5359_s16 }
 0x257   : > { %3183 = vrot.lane.b32.xlu2 %v5476_v34, %s5361_s19 }
 0x258   : > { %v5596_v26 = vpop.permute.xlu0 %1761  ;;  %v5618_v31 = vpop.permute.xlu1 %1636 }
 0x259   : > { %v1111_v24 = vpop.permute.xlu2 %1110 }
 0x25a   : > { %v1157_v58 = vsel %vm1116_vm4, %v1111_v24, 0 }
 0x25e   : > { %2469 = vrot.lane.b32.xlu0 %v5500_v60, %s5362_s20  ;;  %3205 = vrot.lane.b32.xlu1 %v5500_v60, %s5360_s18 }
 0x25f   : > { %2467 = vrot.lane.b32.xlu2 %v5490_v53, %s5362_s20 }
 0x260   : > { %v5608_v29 = vpop.permute.xlu0 %1763  ;;  %v5632_v35 = vpop.permute.xlu1 %1634 }
 0x261   : > { %v5604_v27 = vpop.permute.xlu2 %1638 }
 0x266   : > { %1648 = vrot.lane.b32.xlu0 %v5534_v17, %s5357_s30  ;;  %1753 = vrot.lane.b32.xlu1 %v5520_v10, %s5358_s15  ;;  %s5364_s30 = smov 64  }
 0x267   : > { %1771 = vrot.lane.b32.xlu2 %v5534_v17, %s5356_s29  ;;  %s2192_s29 = smul.f32 0.125, %s2191_s28  ;;  %s8424_s28 = scalar_lea.vmem %s8517_s13, %s5064_s14 }
 0x268   : > { %v5620_v32 = vpop.permute.xlu0 %1765 }
 0x269   : > { %v5616_v30 = vpop.permute.xlu2 %1757  ;;  %v1810_v25 = vsel %vm1116_vm4, %v5620_v32, 0  ;;  %v1804_v32 = vsel %vm1116_vm4, %v5596_v26, 0 }
 0x26e   : > { %2491 = vrot.lane.b32.xlu0 %v5534_v17, %s5359_s16  ;;  %3201 = vrot.lane.b32.xlu1 %v5482_v42, %s5360_s18  ;;  %s6735_s16 = sld [smem:[#allocation3 + $0x3]] }
 0x270   : > { %v5634_v36 = vpop.permute.xlu0 %1644 }
 0x271   : > { %v5626_v33 = vpop.permute.xlu2 %1767 }
 0x272   : > { %v1813_v18 = vsel %vm1116_vm4, %v5626_v33, 0  ;;  %v1807_v33 = vsel %vm1116_vm4, %v5608_v29, 0 }
 0x276   : > { %2304 = vrot.lane.b32.xlu0 %v5534_v17, %s5363_s21  ;;  %3197 = vrot.lane.b32.xlu1 %v5486_v47, %s5360_s18 }
 0x279   : > { %v5636_v37 = vpop.permute.xlu2 %1745 }
 0x27e   : > { %2463 = vrot.lane.b32.xlu1 %v5476_v34, %s5362_s20 }
 0x280   : > { %v1647_v38 = vpop.permute.xlu0 %1646  ;;  %v1113_v39 = vpop.permute.xlu1 %1112 }
 0x281   : > { %v5640_v40 = vpop.permute.xlu2 %1751  ;;  %v1160_v50 = vsel %vm1116_vm4, %v1113_v39, 0 }
 0x286   : > { %3185 = vrot.lane.b32.xlu1 %v5482_v42, %s5361_s19 }
 0x288   : > { %v5644_v41 = vpop.permute.xlu0 %1743  ;;  %v1770_v43 = vpop.permute.xlu1 %1769 }
 0x289   : > { %v5646_v44 = vpop.permute.xlu2 %2483  ;;  %v1816_v21 = vsel %vm1116_vm4, %v1770_v43, 0 }
 0x28e   : > { %3211 = vrot.lane.b32.xlu1 %v5534_v17, %s5360_s18  ;;  %s6751_s18 = sld [smem:[#allocation3 + $0x2]] }
 0x290   : > { %v5650_v45 = vpop.permute.xlu0 %2489  ;;  %v1115_v46 = vpop.permute.xlu1 %1114 }
 0x291   : > { %v5652_v48 = vpop.permute.xlu2 %2481  ;;  %v1163_v49 = vsel %vm1116_vm4, %v1115_v46, 0  ;;  %v2536_v29 = vsel %vm1116_vm4, %v5650_v45, 0 }
 0x292   : > { %1165 = vmatpush.bf16.xpose.msra.mxu1 %v1163_v49 }
 0x296   : > { %1755 = vrot.lane.b32.xlu1 %v5534_v17, %s5358_s15  ;;  %s5365_s15 = smov 40  }
 0x298   : > { %v5658_v51 = vpop.permute.xlu0 %3203  ;;  %v5660_v52 = vpop.permute.xlu1 %1741 }
 0x299   : > { %v5662_v54 = vpop.permute.xlu2 %2479 }
 0x29a   : > { %1166 = vmatpush.bf16.xpose.msra.mxu1 %v1160_v50 }
 0x2a0   : > { %v5664_v55 = vpop.permute.xlu0 %2477  ;;  %v5666_v56 = vpop.permute.xlu1 %1747 }
 0x2a1   : > { %v5668_v57 = vpop.permute.xlu2 %3199 }
 0x2a2   : > { %1167 = vmatpush.bf16.xpose.msra.mxu1 %v1157_v58 }
 0x2a8   : > { %v5671_v59 = vpop.permute.xlu0 %3181  ;;  %v5673_v61 = vpop.permute.xlu1 %1749 }
 0x2a9   : > { %v5675_v62 = vpop.permute.xlu2 %2461 }
 0x2aa   : > { %1168 = vmatpush.bf16.xpose.msra.mxu1 %v1154_v63 }
 0x2b0   : > { %v5679_v0 = vpop.permute.xlu0 %2465  ;;  %v5681_v1 = vpop.permute.xlu1 %3209 }
 0x2b1   : > { %v5683_v2 = vpop.permute.xlu2 %3183 }
 0x2b2   : > { %1169 = vmatpush.bf16.xpose.msra.mxu1 %v1151_v4 }
 0x2b8   : > { %v5686_v5 = vpop.permute.xlu0 %3187  ;;  %v2488_v6 = vpop.permute.xlu1 %2487 }
 0x2b9   : > { %v5688_v7 = vpop.permute.xlu2 %2467 }
 0x2ba   : > { %1170 = vmatpush.bf16.xpose.msra.mxu1 %v1148_v8 }
 0x2c0   : > { %v2303_v9 = vpop.permute.xlu0 %2302  ;;  %v5692_v11 = vpop.permute.xlu1 %3207 }
 0x2c1   : > { %v1772_v12 = vpop.permute.xlu2 %1771  ;;  %v3253_v45 = vsel %vm1116_vm4, %v5692_v11, 0 }
 0x2c2   : > { %1171 = vmatpush.bf16.xpose.msra.mxu1 %v1145_v13  ;;  %v1819_v14 = vsel %vm1116_vm4, %v1772_v12, 0 }
 0x2c3   : > { %1821 = vmatpush.bf16.xpose.msra.mxu3 %v1819_v14 }
 0x2c8   : > { %v2301_v15 = vpop.permute.xlu0 %2300  ;;  %v2486_v16 = vpop.permute.xlu1 %2485 }
 0x2ca   : > { %1172 = vmatpush.bf16.xpose.msra.mxu1 %v1142_v20 }
 0x2cb   : > { %1822 = vmatpush.bf16.xpose.msra.mxu3 %v1816_v21 }
 0x2d0   : > { %v5700_v22 = vpop.permute.xlu0 %2469  ;;  %v3206_v24 = vpop.permute.xlu1 %3205 }
 0x2d1   : > { %8612 = vst [vmem:[#allocation7_spill] sm:$0xff] %v5700_v22  ;;  %4939 = vmatmul.msk.bf16.vlgmr.msra.gmra.mxu1 %vm1116_vm4, %v5486_v47  ;;  %v3250_v63 = vsel %vm1116_vm4, %v3206_v24, 0 }
 0x2d3   : > { %1823 = vmatpush.bf16.xpose.msra.mxu3 %v1813_v18 }
 0x2d8   : > { %v1649_v39 = vpop.permute.xlu0 %1648  ;;  %v5706_v46 = vpop.permute.xlu1 %1753 }
 0x2d9   : > { %1658 = vmatpush.bf16.msra.mxu2 %v1649_v39 }
 0x2db   : > { %1824 = vmatpush.bf16.xpose.msra.mxu3 %v1810_v25 }
 0x2dd   : > { %1659 = vmatpush.bf16.msra.mxu2 %v1647_v38 }
 0x2e0   : > { %v2492_v43 = vpop.permute.xlu0 %2491  ;;  %v3202_v49 = vpop.permute.xlu1 %3201 }
 0x2e1   : > { %4940 = vmatmul.msk.bf16.gmra.mxu1 %vm1116_vm4, %v5476_v34  ;;  %1660 = vmatpush.bf16.msra.mxu2 %v5634_v36  ;;  %v2539_v26 = vsel %vm1116_vm4, %v2492_v43, 0  ;;  %v2530_v36 = vsel %vm1116_vm4, %v2486_v16, 0  ;;  %v3244_v4 = vsel %vm1116_vm4, %v3202_v49, 0 }
 0x2e3   : > { %1825 = vmatpush.bf16.xpose.msra.mxu3 %v1807_v33 }
 0x2e5   : > { %1661 = vmatpush.bf16.msra.mxu2 %v5586_v23  ;;  %v1801_v23 = vsel %vm1116_vm4, %v5568_v19, 0 }
 0x2e8   : > { %v2305_v50 = vpop.permute.xlu0 %2304  ;;  %v3198_v58 = vpop.permute.xlu1 %3197 }
 0x2e9   : > { %1662 = vmatpush.bf16.msra.mxu2 %v5606_v28  ;;  %2314 = vmatpush.bf16.msrb.mxu0 %v2305_v50 }
 0x2eb   : > { %1826 = vmatpush.bf16.xpose.msra.mxu3 %v1804_v32 }
 0x2ed   : > { %1663 = vmatpush.bf16.msra.mxu2 %v5604_v27  ;;  %2315 = vmatpush.bf16.msrb.mxu0 %v2303_v9  ;;  %v1798_v27 = vsel %vm1116_vm4, %v5616_v30, 0  ;;  %v3256_v30 = vsel %vm1116_vm4, %v5681_v1, 0  ;;  %v2524_v1 = vsel %vm1116_vm4, %v5652_v48, 0  ;;  %v2518_v48 = vsel %vm1116_vm4, %v5664_v55, 0 }
 0x2f0   : > { %v5720_v38 = vpop.permute.xlu1 %2463 }
 0x2f1   : > { %4941 = vmatmul.msk.bf16.gmra.mxu1 %vm1116_vm4, %v5482_v42  ;;  %1664 = vmatpush.bf16.msra.mxu2 %v5618_v31 }
 0x2f2   : > { %2316 = vmatpush.bf16.msrb.mxu0 %v2301_v15 }
 0x2f3   : > { %1827 = vmatpush.bf16.xpose.msra.mxu3 %v1801_v23 }
 0x2f5   : > { %1665 = vmatpush.bf16.msra.mxu2 %v5632_v35  ;;  %v2533_v35 = vsel %vm1116_vm4, %v2488_v6, 0 }
 0x2f8   : > { %v5729_v28 = vpop.permute.xlu1 %3185 }
 0x2f9   : > { %2541 = vmatpush.bf16.xpose.msrb.mxu2 %v2539_v26 }
 0x2fb   : > { %1828 = vmatpush.bf16.xpose.msra.mxu3 %v1798_v27 }
 0x300   : > { %v3212_v31 = vpop.permute.xlu1 %3211 }
 0x301   : > { %2542 = vmatpush.bf16.xpose.msrb.mxu2 %v2536_v29  ;;  %4942 = vmatmul.msk.bf16.gmra.mxu1 %vm1116_vm4, %v5490_v53  ;;  %v3259_v19 = vsel %vm1116_vm4, %v3212_v31, 0 }
 0x302   : > { %4948 = vmatmul.msk.bf16.vlgmr.msra.gmra.mxu3 %vm1116_vm4, %v5660_v52  ;;  %v2527_v52 = vsel %vm1116_vm4, %v5646_v44, 0  ;;  %v2521_v44 = vsel %vm1116_vm4, %v5662_v54, 0 }
 0x303   : > { %3261 = vmatpush.bf16.xpose.msrb.mxu3 %v3259_v19 }
 0x308   : > { %v1756_v11 = vpop.permute.xlu1 %1755 }
 0x309   : > { %2543 = vmatpush.bf16.xpose.msrb.mxu2 %v2533_v35 }
 0x30b   : > { %3262 = vmatpush.bf16.xpose.msrb.mxu3 %v3256_v30 }
 0x311   : > { %2544 = vmatpush.bf16.xpose.msrb.mxu2 %v2530_v36  ;;  %4943 = vmatmul.msk.bf16.gmra.mxu1 %vm1116_vm4, %v5500_v60 }
 0x312   : > { %4949 = vmatmul.msk.bf16.gmra.mxu3 %vm1116_vm4, %v5644_v41  ;;  %v3247_v41 = vsel %vm1116_vm4, %v5658_v51, 0  ;;  %v3238_v51 = vsel %vm1116_vm4, %v3198_v58, 0 }
 0x313   : > { %3263 = vmatpush.bf16.xpose.msrb.mxu3 %v3253_v45 }
 0x319   : > { %2545 = vmatpush.bf16.xpose.msrb.mxu2 %v2527_v52 }
 0x31b   : > { %3264 = vmatpush.bf16.xpose.msrb.mxu3 %v3250_v63 }
 0x321   : > { %2546 = vmatpush.bf16.xpose.msrb.mxu2 %v2524_v1  ;;  %4944 = vmatmul.msk.bf16.gmra.mxu1 %vm1116_vm4, %v5512_v3 }
 0x322   : > { %4950 = vmatmul.msk.bf16.gmra.mxu3 %vm1116_vm4, %v5636_v37  ;;  %v3241_v37 = vsel %vm1116_vm4, %v5668_v57, 0 }
 0x323   : > { %3265 = vmatpush.bf16.xpose.msrb.mxu3 %v3247_v41 }
 0x329   : > { %2547 = vmatpush.bf16.xpose.msrb.mxu2 %v2521_v44 }
 0x32b   : > { %3266 = vmatpush.bf16.xpose.msrb.mxu3 %v3244_v4 }
 0x331   : > { %2548 = vmatpush.bf16.xpose.msrb.mxu2 %v2518_v48  ;;  %4945 = vmatmul.msk.bf16.gmra.mxu1 %vm1116_vm4, %v5520_v10 }
 0x332   : > { %4951 = vmatmul.msk.bf16.gmra.mxu3 %vm1116_vm4, %v5666_v56 }
 0x333   : > { %3267 = vmatpush.bf16.xpose.msrb.mxu3 %v3241_v37 }
 0x33b   : > { %3268 = vmatpush.bf16.xpose.msrb.mxu3 %v3238_v51 }
 0x341   : > { %4946 = vmatmul.msk.bf16.gmra.mxu1 %vm1116_vm4, %v5534_v17 }
 0x342   : > { %4952 = vmatmul.msk.bf16.gmra.mxu3 %vm1116_vm4, %v5673_v61 }
 0x34e   : > { %v5777_v54 = vpop.f32.mrf.mxu1 }
 0x34f   : > { %v1214_v55 = vmax.f32 %v5777_v54, 0.0 }
 0x351   : > { %1230 = vadd.xlane.f32.xlu1 %v1214_v55 }
 0x352   : > { %4953 = vmatmul.msk.bf16.gmra.mxu3 %vm1116_vm4, %v5640_v40 }
 0x356   : > { %v5784_v56 = vpop.f32.mrf.mxu1 }
 0x357   : > { %v1215_v57 = vmax.f32 %v5784_v56, 0.0 }
 0x359   : > { %1232 = vadd.xlane.f32.xlu2 %v1215_v57 }
 0x35e   : > { %v5789_v6 = vpop.f32.mrf.mxu1 }
 0x35f   : > { %v8531_v21 = vmax.f32 %v5789_v6, 0.0 }
 0x362   : > { %4954 = vmatmul.msk.bf16.gmra.mxu3 %vm1116_vm4, %v5706_v46 }
 0x366   : > { %v5793_v61 = vpop.f32.mrf.mxu1 }
 0x367   : > { %v1217_v8 = vmax.f32 %v5793_v61, 0.0 }
 0x369   : > { %1236 = vadd.xlane.f32.xlu0 %v1217_v8 }
 0x36e   : > { %v5798_v40 = vpop.f32.mrf.mxu1 }
 0x36f   : > { %v8529_v9 = vmax.f32 %v5798_v40, 0.0 }
 0x371   : > { %1238 = vadd.xlane.f32.xlu0 %v8529_v9 }
 0x372   : > { %4955 = vmatmul.msk.bf16.gmra.mxu3 %vm1116_vm4, %v1756_v11 }
 0x376   : > { %v5804_v12 = vpop.f32.mrf.mxu1 }
 0x377   : > { %v8530_v18 = vmax.f32 %v5804_v12, 0.0 }
 0x37e   : > { %v5806_v13 = vpop.f32.mrf.mxu1 }
 0x37f   : > { %v8528_v14 = vmax.f32 %v5806_v13, 0.0 }
 0x381   : > { %1242 = vadd.xlane.f32.xlu0 %v8528_v14 }
 0x382   : > { %4966 = vmatmul.msk.bf16.vlgmr.msrb.gmra.mxu3 %vm1116_vm4, %v5671_v59 }
 0x385   : > { %v5813_v15 = vpop.f32.mrf.mxu3 }
 0x386   : > { %v8526_v16 = vmax.f32 %v5813_v15, 0.0  ;;  %v5828_v59 = vpop.f32.mrf.mxu1 }
 0x387   : > { %v8525_v45 = vmax.f32 %v5828_v59, 0.0 }
 0x388   : > { %1886 = vadd.xlane.f32.xlu1 %v8526_v16 }
 0x38d   : > { %v5818_v20 = vpop.f32.mrf.mxu3 }
 0x38e   : > { %v8527_v24 = vmax.f32 %v5818_v20, 0.0  ;;  %v5837_v46 = vpop.f32.mrf.mxu1 }
 0x38f   : > { %v8524_v33 = vmax.f32 %v5837_v46, 0.0 }
 0x390   : > { %1234 = vadd.xlane.f32.xlu1 %v8531_v21  ;;  %1888 = vadd.xlane.f32.xlu2 %v8527_v24 }
 0x392   : > { %4967 = vmatmul.msk.bf16.gmra.mxu3 %vm1116_vm4, %v5683_v2 }
 0x395   : > { %3189 = vrot.lane.b32.xlu0 %v5500_v60, %s5361_s19  ;;  %v5835_v39 = vpop.f32.mrf.mxu3 }
 0x396   : > { %v8522_v25 = vmax.f32 %v5835_v39, 0.0  ;;  %v5844_v2 = vpop.f32.mrf.mxu1 }
 0x398   : > { %1240 = vadd.xlane.f32.xlu2 %v8530_v18 }
 0x39d   : > { %v5859_v50 = vpop.f32.mrf.mxu3 }
 0x39e   : > { %v5848_v43 = vpop.f32.mrf.mxu1  ;;  %v8523_v23 = vmax.f32 %v5859_v50, 0.0 }
 0x3a0   : > { %1890 = vadd.xlane.f32.xlu2 %v8522_v25 }
 0x3a2   : > { %4968 = vmatmul.msk.bf16.gmra.mxu3 %vm1116_vm4, %v5729_v28 }
 0x3a5   : > { %v5868_v26 = vpop.f32.mrf.mxu3 }
 0x3a6   : > { %v5854_v49 = vpop.f32.mrf.mxu1  ;;  %v8518_v31 = vmax.f32 %v5868_v26, 0.0 }
 0x3a9   : > { %2298 = vrot.lane.b32.xlu1 %v5500_v60, %s5363_s21 }
 0x3b2   : > { %4969 = vmatmul.msk.bf16.gmra.mxu3 %vm1116_vm4, %v5686_v5  ;;  %v5864_v5 = vpop.f32.mrf.mxu1 }
 0x3b8   : > { %2296 = vrot.lane.b32.xlu2 %v5490_v53, %s5363_s21 }
 0x3ba   : > { %v5875_v35 = vpop.f32.mrf.mxu1 }
 0x3bb   : > { %v8520_v44 = vmax.f32 %v5875_v35, 0.0 }
 0x3bf   : > { %1246 = vadd.xlane.f32.xlu0 %v8524_v33 }
 0x3c0   : > { %2471 = vrot.lane.b32.xlu2 %v5512_v3, %s5362_s20 }
 0x3c4   : > { %v1231_v58 = vpop.xlane.xlu1 %1230 }
 0x3c5   : > { %v1262_v32 = vadd.f32 1e-08, %v1231_v58 }
 0x3c7   : > { %5133 = vrcp.f32 %v1262_v32  ;;  %1892 = vadd.xlane.f32.xlu0 %v8523_v23  ;;  %v1289_v36 = vand.u32 2147483648, %v1262_v32  ;;  %v1287_v63 = vand.u32 2147483647, %v1262_v32  ;;  %vm1283_vm6 = vweird.f32 %v1262_v32 }
 0x3c9   : > { %v1290_v4 = vor.u32 1.1754944e-38, %v1289_v36  ;;  %vm1288_vm8 = vcmp.eq.f32.partialorder %v1287_v63, 8.507059e+37 }
 0x3cc   : > { %v1233_v28 = vpop.xlane.xlu2 %1232 }
 0x3cd   : > { %v5134_v27 = vpop.eup %5133  ;;  %v1263_v29 = vadd.f32 1e-08, %v1233_v28 }
 0x3ce   : > { %v1279_v19 = vmul.f32 %v5134_v27, %v1262_v32  ;;  %vm1284_vm5 = vweird.f32 %v5134_v27  ;;  %v5887_v32 = vstv %s5870_s22 }
 0x3cf   : > { %5135 = vrcp.f32 %v1263_v29  ;;  %1894 = vadd.xlane.f32.xlu0 %v8518_v31  ;;  %vm1285_vm7 = vmor %vm1283_vm6, %vm1284_vm5  ;;  %v1304_v28 = vand.u32 2147483648, %v1263_v29  ;;  %v1302_v36 = vand.u32 2147483647, %v1263_v29  ;;  %vm1298_vm10 = vweird.f32 %v1263_v29  ;;  %v5904_v31 = vpop.f32.mrf.mxu3 }
 0x3d0   : > { %v1280_v30 = vsub.f32 1.0, %v1279_v19  ;;  %v5889_v19 = vpop.f32.mrf.mxu1 }
 0x3d1   : > { %vm1303_vm12 = vcmp.eq.f32.partialorder %v1302_v36, 8.507059e+37 }
 0x3d2   : > { %v1281_v52 = vmul.f32 %v5134_v27, %v1280_v30 }
 0x3d3   : > { %1244 = vadd.xlane.f32.xlu1 %v8525_v45 }
 0x3d4   : > { %v1282_v1 = vadd.f32 %v5134_v27, %v1281_v52  ;;  %v5891_v52 = vstv %s1536_s24  ;;  %s5367_s24 = smov 16  }
 0x3d5   : > { %v5136_v41 = vpop.eup %5135 }
 0x3d6   : > { %v1294_v48 = vmul.f32 %v5136_v41, %v1263_v29  ;;  %v1286_v37 = vsel %vm1285_vm7, %v5134_v27, %v1282_v1  ;;  %vm1299_vm9 = vweird.f32 %v5136_v41  ;;  %v8519_v1 = vmax.f32 %v5889_v19, 0.0 }
 0x3d7   : > { %1256 = vadd.xlane.f32.xlu0 %v8520_v44  ;;  %v1291_v51 = vsel %vm1288_vm8, %v1290_v4, %v1286_v37  ;;  %vm1300_vm11 = vmor %vm1298_vm10, %vm1299_vm9  ;;  %v1305_v4 = vor.u32 1.1754944e-38, %v1304_v28 }
 0x3d8   : > { %v1295_v11 = vsub.f32 1.0, %v1294_v48  ;;  %v1292_v58 = vmul.f32 %v1291_v51, %v1214_v55  ;;  %v1538_v55 = vmul.f32 %v5891_v52, %v5777_v54 }
 0x3da   : > { %v1296_v30 = vmul.f32 %v5136_v41, %v1295_v11  ;;  %v1519_v63 = vmul.f32 %v5887_v32, %v1292_v58  ;;  %v1539_v11 = vmul.f32 %v5891_v52, %v5784_v56 }
 0x3dc   : > { %v1297_v27 = vadd.f32 %v5136_v41, %v1296_v30  ;;  %v1554_v29 = vadd.f32 %v1538_v55, %v1519_v63  ;;  %v5911_v63 = vpop.f32.mrf.mxu3 }
 0x3de   : > { %v1301_v48 = vsel %vm1300_vm11, %v5136_v41, %v1297_v27  ;;  %v1570_v28 = vpack.c.bf16 %v1554_v29, %v1554_v29  ;;  %v8521_v41 = vmax.f32 %v5844_v2, 0.0 }
 0x3df   : > { %1258 = vadd.xlane.f32.xlu0 %v8519_v1  ;;  %v1306_v37 = vsel %vm1303_vm12, %v1305_v4, %v1301_v48  ;;  %v1237_v4 = vpop.xlane.xlu0 %1236 }
 0x3e0   : > { %v1307_v51 = vmul.f32 %v1306_v37, %v1215_v57  ;;  %v1602_v36 = vunpack.c.l.b16 %v1570_v28  ;;  %v1265_v56 = vadd.f32 1e-08, %v1237_v4 }
 0x3e2   : > { %v1520_v58 = vmul.f32 %v5887_v32, %v1307_v51  ;;  %5137 = vrcp.f32 %v1265_v56  ;;  %v1334_v1 = vand.u32 2147483648, %v1265_v56  ;;  %vm1328_vm14 = vweird.f32 %v1265_v56 }
 0x3e3   : > { %v1332_v44 = vand.u32 2147483647, %v1265_v56 }
 0x3e4   : > { %v1555_v30 = vadd.f32 %v1539_v11, %v1520_v58  ;;  %v5917_v37 = vpop.f32.mrf.mxu3  ;;  %v1335_v23 = vor.u32 1.1754944e-38, %v1334_v1 }
 0x3e5   : > { %vm1333_vm1 = vcmp.eq.f32.partialorder %v1332_v44, 8.507059e+37 }
 0x3e6   : > { %v1571_v54 = vpack.c.bf16 %v1555_v30, %v1555_v30 }
 0x3e7   : > { %v1239_v48 = vpop.xlane.xlu0 %1238 }
 0x3e8   : > { %v1603_v27 = vunpack.c.l.b16 %v1571_v54  ;;  %v5138_v55 = vpop.eup %5137  ;;  %v5921_v58 = vadd.f32 1e-08, %v1239_v48 }
 0x3e9   : > { %1248 = vadd.xlane.f32.xlu2 %v8521_v41  ;;  %v1324_v51 = vmul.f32 %v5138_v55, %v1265_v56  ;;  %vm1329_vm13 = vweird.f32 %v5138_v55 }
 0x3ea   : > { %v1618_v57 = vpack.c.b16 %v1603_v27, %v1602_v36  ;;  %5139 = vrcp.f32 %v5921_v58  ;;  %vm1330_vm15 = vmor %vm1328_vm14, %vm1329_vm13  ;;  %vm1343_vm5 = vweird.f32 %v5921_v58  ;;  %v1347_v18 = vand.u32 2147483647, %v5921_v58 }
 0x3eb   : > { %v1325_v11 = vsub.f32 1.0, %v1324_v51 }
 0x3ec   : > { %2294 = vrot.lane.b32.xlu1 %v5482_v42, %s5363_s21  ;;  %1666 = vmatmul.bf16.vlgmr.msra.gmra.mxu2 %v1618_v57  ;;  %v5930_v27 = vpop.f32.mrf.mxu3  ;;  %vm1348_vm12 = vcmp.eq.f32.partialorder %v1347_v18, 8.507059e+37 }
 0x3ed   : > { %v1326_v28 = vmul.f32 %v5138_v55, %v1325_v11 }
 0x3ef   : > { %v1327_v57 = vadd.f32 %v5138_v55, %v1326_v28 }
 0x3f0   : > { %v5932_v51 = vpop.eup %5139 }
 0x3f1   : > { %v1331_v11 = vsel %vm1330_vm15, %v5138_v55, %v1327_v57  ;;  %v1339_v41 = vmul.f32 %v5932_v51, %v5921_v58  ;;  %vm1344_vm7 = vweird.f32 %v5932_v51 }
 0x3f2   : > { %vm5963_vm10 = vmor %vm1343_vm5, %vm1344_vm7 }
 0x3f3   : > { %3193 = vrot.lane.b32.xlu0 %v5520_v10, %s5361_s19  ;;  %v1340_v24 = vsub.f32 1.0, %v1339_v41 }
 0x3f4   : > { %2292 = vrot.lane.b32.xlu1 %v5476_v34, %s5363_s21  ;;  %v5923_v30 = vpop.xlane.xlu0 %1242  ;;  %v5937_v45 = vpop.f32.mrf.mxu3 }
 0x3f5   : > { %8613 = vst [vmem:[#allocation8_spill] sm:$0xff] %v5937_v45  ;;  %v1341_v57 = vmul.f32 %v5932_v51, %v1340_v24 }
 0x3fb   : > { %v5919_v29 = vpop.xlane.xlu1 %1886 }
 0x401   : > { %2290 = vrot.lane.b32.xlu2 %v5486_v47, %s5363_s21  ;;  %v8614_v47 = vmax.f32 %v5789_v6, 0.0  ;;  %s2911_s21 = ssub.f32 1.0, %s6751_s18 }
 0x403   : > { %v5928_v54 = vpop.xlane.xlu2 %1888  ;;  %v1235_v36 = vpop.xlane.xlu1 %1234  ;;  %s2912_s22 = smul.f32 0.125, %s2911_s21 }
 0x404   : > { %v1264_v4 = vadd.f32 1e-08, %v1235_v36  ;;  %v1336_v36 = vsel %vm1333_vm1, %v1335_v23, %v1331_v11  ;;  %v1541_v23 = vmul.f32 %v5891_v52, %v5793_v61 }
 0x405   : > { %v1337_v56 = vmul.f32 %v1336_v36, %v1217_v8  ;;  %v1349_v8 = vand.u32 2147483648, %v5921_v58  ;;  %v1342_v36 = vadd.f32 %v5932_v51, %v1341_v57 }
 0x406   : > { %5141 = vrcp.f32 %v1264_v4  ;;  %v1319_v55 = vand.u32 2147483648, %v1264_v4  ;;  %v1317_v9 = vand.u32 2147483647, %v1264_v4  ;;  %vm1313_vm3 = vweird.f32 %v1264_v4 }
 0x407   : > { %v3190_v48 = vpop.permute.xlu0 %3189  ;;  %v1522_v44 = vmul.f32 %v5887_v32, %v1337_v56  ;;  %v5951_v56 = vpop.f32.mrf.mxu3 }
 0x408   : > { %4970 = vmatmul.msk.bf16.gmra.mxu3 %vm1116_vm4, %v3190_v48  ;;  %vm1318_vm8 = vcmp.eq.f32.partialorder %v1317_v9, 8.507059e+37  ;;  %v8539_v9 = vmax.f32 %v5917_v37, 0.0 }
 0x40b   : > { %v1241_v25 = vpop.xlane.xlu2 %1240 }
 0x40c   : > { %v1267_v33 = vadd.f32 1e-08, %v1241_v25  ;;  %v5142_v28 = vpop.eup %5141 }
 0x40d   : > { %v1309_v16 = vmul.f32 %v5142_v28, %v1264_v4  ;;  %vm1314_vm2 = vweird.f32 %v5142_v28 }
 0x40e   : > { %5143 = vrcp.f32 %v1267_v33  ;;  %vm1315_vm6 = vmor %vm1313_vm3, %vm1314_vm2  ;;  %v1364_v61 = vand.u32 2147483648, %v1267_v33  ;;  %vm1358_vm11 = vweird.f32 %v1267_v33 }
 0x40f   : > { %v1310_v14 = vsub.f32 1.0, %v1309_v16 }
 0x410   : > { %v1365_v58 = vor.u32 1.1754944e-38, %v1364_v61 }
 0x411   : > { %v1311_v48 = vmul.f32 %v5142_v28, %v1310_v14  ;;  %v1320_v14 = vor.u32 1.1754944e-38, %v1319_v55  ;;  %v1362_v55 = vand.u32 2147483647, %v1267_v33 }
 0x413   : > { %v1312_v25 = vadd.f32 %v5142_v28, %v1311_v48  ;;  %v5945_v41 = vpop.xlane.xlu2 %1890  ;;  %v1557_v48 = vadd.f32 %v1541_v23, %v1522_v44  ;;  %v1350_v23 = vor.u32 1.1754944e-38, %v1349_v8  ;;  %vm1363_vm14 = vcmp.eq.f32.partialorder %v1362_v55, 8.507059e+37 }
 0x414   : > { %v5144_v1 = vpop.eup %5143 }
 0x415   : > { %v1354_v11 = vmul.f32 %v5144_v1, %v1267_v33  ;;  %v1316_v24 = vsel %vm1315_vm6, %v5142_v28, %v1312_v25  ;;  %vm1359_vm9 = vweird.f32 %v5144_v1  ;;  %v1573_v33 = vpack.c.bf16 %v1557_v48, %v1557_v48 }
 0x416   : > { %v1321_v4 = vsel %vm1318_vm8, %v1320_v14, %v1316_v24  ;;  %vm1360_vm13 = vmor %vm1358_vm11, %vm1359_vm9  ;;  %v8537_v48 = vmax.f32 %v5937_v45, 0.0 }
 0x417   : > { %v1355_v16 = vsub.f32 1.0, %v1354_v11  ;;  %v1322_v22 = vmul.f32 %v1321_v4, %v8614_v47  ;;  %v1540_v11 = vmul.f32 %v5891_v52, %v5789_v6  ;;  %v1346_v47 = vsel %vm5963_vm10, %v5932_v51, %v1342_v36 }
 0x418   : > { %v8543_v6 = vmax.f32 %v5848_v43, 0.0  ;;  %v8617_v36 = vmax.f32 %v5804_v12, 0.0  ;;  %v1605_v61 = vunpack.c.l.b16 %v1573_v33  ;;  %v8618_v4 = vmax.f32 %v5798_v40, 0.0 }
 0x419   : > { %v1356_v21 = vmul.f32 %v5144_v1, %v1355_v16  ;;  %v1521_v25 = vmul.f32 %v5887_v32, %v1322_v22  ;;  %v1351_v22 = vsel %vm1348_vm12, %v1350_v23, %v1346_v47 }
 0x41a   : > { %v1352_v28 = vmul.f32 %v1351_v22, %v8618_v4  ;;  %v1268_v22 = vadd.f32 1e-08, %v5923_v30 }
 0x41b   : > { %v2299_v57 = vpop.permute.xlu1 %2298  ;;  %v1357_v44 = vadd.f32 %v5144_v1, %v1356_v21  ;;  %v1556_v14 = vadd.f32 %v1540_v11, %v1521_v25  ;;  %v2297_v21 = vpop.permute.xlu2 %2296  ;;  %v1543_v25 = vmul.f32 %v5891_v52, %v5804_v12 }
 0x41c   : > { %2317 = vmatpush.bf16.msrb.mxu0 %v2299_v57  ;;  %v5980_v11 = vpop.f32.mrf.mxu3  ;;  %v8542_v57 = vmax.f32 %v5854_v49, 0.0  ;;  %v1523_v47 = vmul.f32 %v5887_v32, %v1352_v28  ;;  %5145 = vrcp.f32 %v1268_v22  ;;  %vm1373_vm1 = vweird.f32 %v1268_v22 }
 0x41d   : > { %1900 = vadd.xlane.f32.xlu0 %v8539_v9  ;;  %v1361_v16 = vsel %vm1360_vm13, %v5144_v1, %v1357_v44  ;;  %v1572_v24 = vpack.c.bf16 %v1556_v14, %v1556_v14  ;;  %8619 = vst [vmem:[#allocation9_spill] sm:$0xff] %v5980_v11  ;;  %v1542_v44 = vmul.f32 %v5891_v52, %v5798_v40  ;;  %v8536_v12 = vmax.f32 %v5980_v11, 0.0 }
 0x41e   : > { %1250 = vadd.xlane.f32.xlu1 %v8543_v6  ;;  %v1366_v51 = vsel %vm1363_vm14, %v1365_v58, %v1361_v16  ;;  %v8541_v58 = vmax.f32 %v5864_v5, 0.0 }
 0x41f   : > { %v1367_v18 = vmul.f32 %v1366_v51, %v8617_v36  ;;  %v1604_v8 = vunpack.c.l.b16 %v1572_v24  ;;  %v1558_v14 = vadd.f32 %v1542_v44, %v1523_v47  ;;  %v6001_v51 = vpop.f32.mrf.mxu1  ;;  %v6007_v36 = vadd.f32 1e-08, %v5928_v54 }
 0x420   : > { %2318 = vmatpush.bf16.msrb.mxu0 %v2297_v21  ;;  %v8540_v24 = vmax.f32 %v6001_v51, 0.0 }
 0x421   : > { %v1619_v1 = vpack.c.b16 %v1605_v61, %v1604_v8  ;;  %v1524_v55 = vmul.f32 %v5887_v32, %v1367_v18  ;;  %v1574_v40 = vpack.c.bf16 %v1558_v14, %v1558_v14  ;;  %v6013_v61 = vadd.f32 1e-08, %v5919_v29 }
 0x422   : > { %5147 = vrcp.f32 %v6007_v36  ;;  %v5146_v4 = vpop.eup %5145  ;;  %vm1954_vm6 = vweird.f32 %v6007_v36 }
 0x423   : > { %1671 = vmatmul.bf16.gmra.mxu2 %v1619_v1  ;;  %v1559_v23 = vadd.f32 %v1543_v25, %v1524_v55  ;;  %v1606_v18 = vunpack.c.l.b16 %v1574_v40  ;;  %v1369_v1 = vmul.f32 %v5146_v4, %v1268_v22  ;;  %5149 = vrcp.f32 %v6013_v61 }
 0x424   : > { %v5998_v16 = vpop.f32.mrf.mxu3  ;;  %vm1374_vm15 = vweird.f32 %v5146_v4  ;;  %vm1939_vm9 = vweird.f32 %v6013_v61 }
 0x425   : > { %1904 = vadd.xlane.f32.xlu0 %v8537_v48  ;;  %v1575_v33 = vpack.c.bf16 %v1559_v23, %v1559_v23  ;;  %8620 = vst [vmem:[#allocation10_spill] sm:$0xff] %v5998_v16  ;;  %v8534_v30 = vmax.f32 %v5998_v16, 0.0  ;;  %v1370_v47 = vsub.f32 1.0, %v1369_v1  ;;  %vm1375_vm2 = vmor %vm1373_vm1, %vm1374_vm15 }
 0x426   : > { %1252 = vadd.xlane.f32.xlu1 %v8542_v57 }
 0x427   : > { %v1607_v21 = vunpack.c.l.b16 %v1575_v33  ;;  %v1371_v14 = vmul.f32 %v5146_v4, %v1370_v47  ;;  %v1379_v47 = vand.u32 2147483648, %v1268_v22 }
 0x428   : > { %v6021_v55 = vpop.eup %5147 }
 0x429   : > { %v1620_v8 = vpack.c.b16 %v1607_v21, %v1606_v18  ;;  %v1950_v29 = vmul.f32 %v6021_v55, %v6007_v36  ;;  %v6028_v44 = vpop.eup %5149  ;;  %v6037_v18 = vadd.f32 1e-08, %v5945_v41  ;;  %vm1955_vm3 = vweird.f32 %v6021_v55 }
 0x42a   : > { %1254 = vadd.xlane.f32.xlu2 %v8541_v58  ;;  %v1935_v40 = vmul.f32 %v6028_v44, %v6013_v61  ;;  %vm6067_vm7 = vmor %vm1954_vm6, %vm1955_vm3  ;;  %vm1940_vm8 = vweird.f32 %v6028_v44 }
 0x42b   : > { %v1951_v21 = vsub.f32 1.0, %v1950_v29  ;;  %5151 = vrcp.f32 %v6037_v18  ;;  %vm6085_vm11 = vmor %vm1939_vm9, %vm1940_vm8  ;;  %vm1969_vm9 = vweird.f32 %v6037_v18 }
 0x42c   : > { %v6018_v28 = vpop.f32.mrf.mxu3 }
 0x42d   : > { %1908 = vadd.xlane.f32.xlu0 %v8536_v12  ;;  %8621 = vst [vmem:[#allocation11_spill] sm:$0xff] %v6018_v28  ;;  %v8535_v25 = vmax.f32 %v6018_v28, 0.0  ;;  %v1936_v12 = vsub.f32 1.0, %v1935_v40  ;;  %v1952_v48 = vmul.f32 %v6021_v55, %v1951_v21  ;;  %v1380_v40 = vor.u32 1.1754944e-38, %v1379_v47 }
 0x42f   : > { %v1953_v21 = vadd.f32 %v6021_v55, %v1952_v48 }
 0x431   : > { %v1957_v47 = vsel %vm6067_vm7, %v6021_v55, %v1953_v21 }
 0x432   : > { %1260 = vadd.xlane.f32.xlu2 %v8540_v24  ;;  %v1247_v54 = vpop.xlane.xlu0 %1246  ;;  %v8625_v24 = vmax.f32 %v5806_v13, 0.0 }
 0x433   : > { %1676 = vmatmul.bf16.gmra.mxu2 %v1620_v8  ;;  %v6039_v8 = vadd.f32 1e-08, %v1247_v54  ;;  %v1377_v54 = vand.u32 2147483647, %v1268_v22  ;;  %v6061_v22 = vpop.eup %5151 }
 0x434   : > { %v6032_v23 = vpop.f32.mrf.mxu3  ;;  %v1965_v55 = vmul.f32 %v6061_v22, %v6037_v18  ;;  %vm1970_vm3 = vweird.f32 %v6061_v22 }
 0x435   : > { %1910 = vadd.xlane.f32.xlu0 %v8534_v30  ;;  %8622 = vst [vmem:[#allocation12_spill] sm:$0xff] %v6032_v23  ;;  %v8538_v1 = vmax.f32 %v6032_v23, 0.0  ;;  %5153 = vrcp.f32 %v6039_v8  ;;  %vm1378_vm5 = vcmp.eq.f32.partialorder %v1377_v54, 8.507059e+37  ;;  %v6100_v23 = vpop.permute.xlu2 %2471  ;;  %vm1403_vm6 = vweird.f32 %v6039_v8 }
 0x436   : > { %8628 = vst [vmem:[#allocation13_spill] sm:$0xff] %v6100_v23  ;;  %v6111_v23 = vstv %s6048_s27  ;;  %s5368_s27 = smov 24  }
 0x43a   : > { %v1893_v33 = vpop.xlane.xlu0 %1892 }
 0x43b   : > { %v6042_v30 = vadd.f32 1e-08, %v1893_v33  ;;  %v1937_v33 = vmul.f32 %v6028_v44, %v1936_v12  ;;  %v6065_v12 = vpop.eup %5153 }
 0x43c   : > { %v1399_v21 = vmul.f32 %v6065_v12, %v6039_v8 }
 0x43d   : > { %1912 = vadd.xlane.f32.xlu0 %v8535_v25  ;;  %v1372_v25 = vadd.f32 %v5146_v4, %v1371_v14  ;;  %5155 = vrcp.f32 %v6042_v30  ;;  %v1938_v48 = vadd.f32 %v6028_v44, %v1937_v33  ;;  %vm1984_vm7 = vweird.f32 %v6042_v30 }
 0x43e   : > { %v1400_v33 = vsub.f32 1.0, %v1399_v21 }
 0x43f   : > { %3191 = vrot.lane.b32.xlu1 %v5512_v3, %s5361_s19  ;;  %v1376_v14 = vsel %vm1375_vm2, %v5146_v4, %v1372_v25  ;;  %v1958_v4 = vand.u32 2147483647, %v6007_v36  ;;  %vm1404_vm2 = vweird.f32 %v6065_v12 }
 0x440   : > { %v1381_v25 = vsel %vm1378_vm5, %v1380_v40, %v1376_v14  ;;  %v1945_v14 = vand.u32 2147483648, %v6013_v61  ;;  %vm6146_vm8 = vmor %vm1403_vm6, %vm1404_vm2 }
 0x441   : > { %v1382_v58 = vmul.f32 %v1381_v25, %v8625_v24  ;;  %vm1959_vm10 = vcmp.eq.f32.partialorder %v1958_v4, 8.507059e+37 }
 0x442   : > { %v1946_v4 = vor.u32 1.1754944e-38, %v1945_v14 }
 0x443   : > { %v6071_v9 = vpop.eup %5155  ;;  %v1525_v6 = vmul.f32 %v5887_v32, %v1382_v58 }
 0x444   : > { %vm1985_vm5 = vweird.f32 %v6071_v9 }
 0x445   : > { %1914 = vadd.xlane.f32.xlu0 %v8538_v1 }
 0x446   : > { %v1245_v29 = vpop.xlane.xlu1 %1244 }
 0x447   : > { %v6051_v41 = vadd.f32 1e-08, %v1245_v29  ;;  %v1960_v29 = vand.u32 2147483648, %v6007_v36  ;;  %v1943_v36 = vand.u32 2147483647, %v6013_v61  ;;  %v1942_v61 = vsel %vm6085_vm11, %v6028_v44, %v1938_v48  ;;  %vm6171_vm11 = vmor %vm1969_vm9, %vm1970_vm3 }
 0x448   : > { %v1544_v44 = vmul.f32 %v5891_v52, %v5806_v13  ;;  %v1966_v48 = vsub.f32 1.0, %v1965_v55 }
 0x449   : > { %5157 = vrcp.f32 %v6051_v41  ;;  %v1961_v40 = vor.u32 1.1754944e-38, %v1960_v29  ;;  %v1980_v29 = vmul.f32 %v6071_v9, %v6042_v30  ;;  %v1394_v25 = vand.u32 2147483648, %v6051_v41 }
 0x44a   : > { %2473 = vrot.lane.b32.xlu2 %v5520_v10, %s5362_s20  ;;  %vm1944_vm12 = vcmp.eq.f32.partialorder %v1943_v36, 8.507059e+37  ;;  %vm1388_vm14 = vweird.f32 %v6051_v41  ;;  %v6108_v36 = vstv %s2192_s29  ;;  %v1560_v11 = vadd.f32 %v1544_v44, %v1525_v6 }
 0x44b   : > { %v1962_v1 = vsel %vm1959_vm10, %v1961_v40, %v1957_v47  ;;  %v1392_v40 = vand.u32 2147483647, %v6051_v41  ;;  %v1947_v14 = vsel %vm1944_vm12, %v1946_v4, %v1942_v61  ;;  %v1981_v28 = vsub.f32 1.0, %v1980_v29  ;;  %vm6158_vm10 = vmor %vm1984_vm7, %vm1985_vm5 }
 0x44c   : > { %v1967_v55 = vmul.f32 %v6061_v22, %v1966_v48  ;;  %v2195_v21 = vmul.f32 %v6108_v36, %v5818_v20  ;;  %v1401_v6 = vmul.f32 %v6065_v12, %v1400_v33  ;;  %v8631_v29 = vmax.f32 %v5828_v59, 0.0 }
 0x44d   : > { %vm1393_vm1 = vcmp.eq.f32.partialorder %v1392_v40, 8.507059e+37  ;;  %v1545_v4 = vmul.f32 %v5891_v52, %v5828_v59  ;;  %v1990_v33 = vand.u32 2147483648, %v6042_v30  ;;  %vm1723_vm5 = vcmask 60416  }
 0x44f   : > { %v5158_v54 = vpop.eup %5157 }
 0x450   : > { %v1384_v57 = vmul.f32 %v5158_v54, %v6051_v41  ;;  %vm1389_vm13 = vweird.f32 %v5158_v54 }
 0x451   : > { %vm1390_vm15 = vmor %vm1388_vm14, %vm1389_vm13 }
 0x452   : > { %v1385_v24 = vsub.f32 1.0, %v1384_v57  ;;  %v8629_v57 = vmax.f32 %v5818_v20, 0.0 }
 0x454   : > { %v1386_v47 = vmul.f32 %v5158_v54, %v1385_v24  ;;  %v1963_v16 = vmul.f32 %v1962_v1, %v8629_v57  ;;  %v1395_v24 = vor.u32 1.1754944e-38, %v1394_v25  ;;  %v8630_v1 = vmax.f32 %v5813_v15, 0.0 }
 0x456   : > { %v1387_v58 = vadd.f32 %v5158_v54, %v1386_v47  ;;  %v1948_v57 = vmul.f32 %v1947_v14, %v8630_v1  ;;  %v2176_v13 = vmul.f32 %v6111_v23, %v1963_v16  ;;  %v2194_v16 = vmul.f32 %v6108_v36, %v5813_v15 }
 0x457   : > { %v1402_v14 = vadd.f32 %v6065_v12, %v1401_v6  ;;  %v1407_v1 = vand.u32 2147483647, %v6039_v8 }
 0x458   : > { %v1391_v45 = vsel %vm1390_vm15, %v5158_v54, %v1387_v58  ;;  %v1982_v54 = vmul.f32 %v6071_v9, %v1981_v28  ;;  %v2175_v40 = vmul.f32 %v6111_v23, %v1948_v57  ;;  %v2211_v20 = vadd.f32 %v2195_v21, %v2176_v13 }
 0x459   : > { %3022 = vrot.lane.b32.xlu0 %v5520_v10, %s5364_s30  ;;  %v1396_v41 = vsel %vm1393_vm1, %v1395_v24, %v1391_v45  ;;  %v1576_v45 = vpack.c.bf16 %v1560_v11, %v1560_v11  ;;  %v1968_v28 = vadd.f32 %v6061_v22, %v1967_v55  ;;  %v1409_v11 = vand.u32 2147483648, %v6039_v8 }
 0x45a   : > { %v1397_v61 = vmul.f32 %v1396_v41, %v8631_v29  ;;  %v1983_v59 = vadd.f32 %v6071_v9, %v1982_v54  ;;  %v1988_v57 = vand.u32 2147483647, %v6042_v30  ;;  %v1975_v13 = vand.u32 2147483648, %v6037_v18 }
 0x45b   : > { %v1608_v55 = vunpack.c.l.b16 %v1576_v45  ;;  %v2210_v41 = vadd.f32 %v2194_v16, %v2175_v40  ;;  %v1406_v30 = vsel %vm6146_vm8, %v6065_v12, %v1402_v14  ;;  %v1973_v8 = vand.u32 2147483647, %v6037_v18 }
 0x45c   : > { %v1249_v25 = vpop.xlane.xlu2 %1248  ;;  %v1526_v47 = vmul.f32 %v5887_v32, %v1397_v61  ;;  %v1987_v54 = vsel %vm6158_vm10, %v6071_v9, %v1983_v59  ;;  %v2227_v29 = vpack.c.bf16 %v2211_v20, %v2211_v20  ;;  %v1410_v61 = vor.u32 1.1754944e-38, %v1409_v11 }
 0x45d   : > { %v6131_v44 = vadd.f32 1e-08, %v1249_v25  ;;  %vm1408_vm12 = vcmp.eq.f32.partialorder %v1407_v1, 8.507059e+37  ;;  %v1972_v12 = vsel %vm6171_vm11, %v6061_v22, %v1968_v28  ;;  %vm1989_vm13 = vcmp.eq.f32.partialorder %v1988_v57, 8.507059e+37 }
 0x45e   : > { %v2295_v48 = vpop.permute.xlu1 %2294  ;;  %v1561_v15 = vadd.f32 %v1545_v4, %v1526_v47  ;;  %v1991_v4 = vor.u32 1.1754944e-38, %v1990_v33  ;;  %v2226_v47 = vpack.c.bf16 %v2210_v41, %v2210_v41  ;;  %v1411_v45 = vsel %vm1408_vm12, %v1410_v61, %v1406_v30 }
 0x45f   : > { %5159 = vrcp.f32 %v6131_v44  ;;  %2319 = vmatpush.bf16.msrb.mxu0 %v2295_v48  ;;  %v1976_v9 = vor.u32 1.1754944e-38, %v1975_v13  ;;  %vm1974_vm14 = vcmp.eq.f32.partialorder %v1973_v8, 8.507059e+37  ;;  %v2259_v14 = vunpack.c.l.b16 %v2227_v29 }
 0x460   : > { %v1577_v58 = vpack.c.bf16 %v1561_v15, %v1561_v15  ;;  %v1992_v40 = vsel %vm1989_vm13, %v1991_v4, %v1987_v54  ;;  %v1875_v15 = vmax.f32 %v5904_v31, 0.0  ;;  %v8638_v33 = vmax.f32 %v5837_v46, 0.0 }
 0x461   : > { %3018 = vrot.lane.b32.xlu0 %v5500_v60, %s5364_s30  ;;  %v1977_v59 = vsel %vm1974_vm14, %v1976_v9, %v1972_v12  ;;  %v8639_v28 = vmax.f32 %v5859_v50, 0.0  ;;  %v1424_v24 = vand.u32 2147483648, %v6131_v44  ;;  %v2258_v1 = vunpack.c.l.b16 %v2226_v47 }
 0x462   : > { %v1609_v6 = vunpack.c.l.b16 %v1577_v58  ;;  %v1412_v22 = vmul.f32 %v1411_v45, %v8638_v33  ;;  %v8640_v41 = vmax.f32 %v5835_v39, 0.0  ;;  %vm1418_vm1 = vweird.f32 %v6131_v44 }
 0x463   : > { %v1993_v58 = vmul.f32 %v1992_v40, %v8639_v28  ;;  %v1546_v29 = vmul.f32 %v5891_v52, %v5837_v46  ;;  %v1425_v61 = vor.u32 1.1754944e-38, %v1424_v24  ;;  %v2197_v16 = vmul.f32 %v6108_v36, %v5859_v50 }
 0x464   : > { %v1621_v25 = vpack.c.b16 %v1609_v6, %v1608_v55  ;;  %v2291_v13 = vpop.permute.xlu2 %2290  ;;  %v1422_v55 = vand.u32 2147483647, %v6131_v44  ;;  %v1978_v21 = vmul.f32 %v1977_v59, %v8640_v41  ;;  %v2274_v6 = vpack.c.b16 %v2259_v14, %v2258_v1  ;;  %v6216_v41 = vpop.xlane.xlu0 %1894 }
 0x465   : > { %v5160_v18 = vpop.eup %5159  ;;  %v1527_v8 = vmul.f32 %v5887_v32, %v1412_v22  ;;  %v2178_v54 = vmul.f32 %v6111_v23, %v1993_v58  ;;  %v8641_v9 = vmax.f32 %v5844_v2, 0.0  ;;  %v1876_v50 = vmax.f32 %v5911_v63, 0.0 }
 0x466   : > { %v1414_v20 = vmul.f32 %v5160_v18, %v6131_v44  ;;  %1681 = vmatmul.bf16.gmra.mxu2 %v1621_v25  ;;  %v2293_v48 = vpop.permute.xlu1 %2292  ;;  %vm1419_vm15 = vweird.f32 %v5160_v18  ;;  %vm1423_vm3 = vcmp.eq.f32.partialorder %v1422_v55, 8.507059e+37  ;;  %v2177_v25 = vmul.f32 %v6111_v23, %v1978_v21  ;;  %v6218_v21 = vpop.f32.mrf.mxu3 }
 0x467   : > { %2320 = vmatpush.bf16.msrb.mxu0 %v2293_v48  ;;  %vm1420_vm2 = vmor %vm1418_vm1, %vm1419_vm15  ;;  %v2196_v44 = vmul.f32 %v6108_v36, %v5835_v39  ;;  %v1562_v40 = vadd.f32 %v1546_v29, %v1527_v8 }
 0x468   : > { %v1415_v11 = vsub.f32 1.0, %v1414_v20  ;;  %v2213_v20 = vadd.f32 %v2197_v16, %v2178_v54  ;;  %v1885_v16 = vmax.f32 %v6218_v21, 0.0 }
 0x469   : > { %1896 = vadd.xlane.f32.xlu1 %v1875_v15  ;;  %3736 = vrot.lane.b32.xlu0 %v5490_v53, %s5365_s15  ;;  %v2212_v48 = vadd.f32 %v2196_v44, %v2177_v25  ;;  %v1578_v59 = vpack.c.bf16 %v1562_v40, %v1562_v40 }
 0x46a   : > { %v1416_v57 = vmul.f32 %v5160_v18, %v1415_v11  ;;  %v2229_v11 = vpack.c.bf16 %v2213_v20, %v2213_v20 }
 0x46b   : > { %2321 = vmatpush.bf16.msrb.mxu0 %v2291_v13  ;;  %v2228_v22 = vpack.c.bf16 %v2212_v48, %v2212_v48  ;;  %v1610_v24 = vunpack.c.l.b16 %v1578_v59 }
 0x46c   : > { %v1417_v30 = vadd.f32 %v5160_v18, %v1416_v57  ;;  %v2261_v57 = vunpack.c.l.b16 %v2229_v11 }
 0x46d   : > { %v2260_v13 = vunpack.c.l.b16 %v2228_v22 }
 0x46e   : > { %2322 = vmatmul.bf16.vlgmr.msrb.gmra.mxu0 %v2274_v6  ;;  %v1421_v4 = vsel %vm1420_vm2, %v5160_v18, %v1417_v30  ;;  %v1547_v18 = vmul.f32 %v5891_v52, %v5844_v2  ;;  %v1257_v6 = vpop.xlane.xlu0 %1256  ;;  %v6224_v29 = vpop.f32.mrf.mxu3 }
 0x46f   : > { %v1667_v12 = vpop.f32.mrf.mxu2  ;;  %v1426_v47 = vsel %vm1423_vm3, %v1425_v61, %v1421_v4  ;;  %v2275_v55 = vpack.c.b16 %v2261_v57, %v2260_v13  ;;  %v6222_v54 = vadd.f32 1e-08, %v1257_v6  ;;  %v8642_v6 = vmax.f32 %v5848_v43, 0.0 }
 0x470   : > { %v1707_v45 = vpack.c.bf16 %v1667_v12, %v1667_v12  ;;  %v1427_v46 = vmul.f32 %v1426_v47, %v8641_v9 }
 0x471   : > { %3012 = vrot.lane.b32.xlu0 %v5476_v34, %s5364_s30  ;;  %vm1478_vm2 = vweird.f32 %v6222_v54 }
 0x472   : > { %1724 = vst.msk [vmem:[#allocation2] sm:$0xf] %vm1723_vm5, %v1707_v45  ;;  %v1528_v39 = vmul.f32 %v5887_v32, %v1427_v46 }
 0x473   : > { %1898 = vadd.xlane.f32.xlu2 %v1876_v50 }
 0x474   : > { %v1563_v14 = vadd.f32 %v1547_v18, %v1528_v39 }
 0x476   : > { %v1579_v33 = vpack.c.bf16 %v1563_v14, %v1563_v14  ;;  %v6232_v9 = vpop.f32.mrf.mxu3  ;;  %v1259_v39 = vpop.xlane.xlu0 %1258 }
 0x477   : > { %v1669_v28 = vpop.f32.mrf.mxu2  ;;  %v3311_v14 = vmax.f32 %v6232_v9, 0.0 }
 0x478   : > { %v1708_v58 = vpack.c.bf16 %v1669_v28, %v1669_v28  ;;  %v1611_v1 = vunpack.c.l.b16 %v1579_v33  ;;  %v6240_v33 = vadd.f32 1e-08, %v1259_v39 }
 0x47a   : > { %1725 = vst.msk [vmem:[#allocation2 + $0x4] sm:$0xf] %vm1723_vm5, %v1708_v58  ;;  %v1622_v2 = vpack.c.b16 %v1611_v1, %v1610_v24 }
 0x47c   : > { %1686 = vmatmul.bf16.gmra.mxu2 %v1622_v2 }
 0x47e   : > { %2327 = vmatmul.bf16.gmra.mxu0 %v2275_v55 }
 0x482   : > { %2475 = vrot.lane.b32.xlu1 %v5534_v17, %s5362_s20 }
 0x48b   : > { %3195 = vrot.lane.b32.xlu2 %v5534_v17, %s5361_s19  ;;  %s3631_s19 = ssub.f32 1.0, %s6735_s16 }
 0x48d   : > { %s3632_s20 = smul.f32 0.125, %s3631_s19 }
 0x491   : > { %v1251_v30 = vpop.xlane.xlu1 %1250 }
 0x492   : > { %v1272_v8 = vadd.f32 1e-08, %v1251_v30 }
 0x494   : > { %5161 = vrcp.f32 %v1272_v8  ;;  %v1439_v20 = vand.u32 2147483648, %v1272_v8  ;;  %v1437_v48 = vand.u32 2147483647, %v1272_v8  ;;  %vm1433_vm7 = vweird.f32 %v1272_v8 }
 0x495   : > { %5163 = vrcp.f32 %v6222_v54 }
 0x496   : > { %v1440_v22 = vor.u32 1.1754944e-38, %v1439_v20  ;;  %vm1438_vm9 = vcmp.eq.f32.partialorder %v1437_v48, 8.507059e+37  ;;  %v1878_v48 = vmax.f32 %v5930_v27, 0.0 }
 0x499   : > { %v1253_v61 = vpop.xlane.xlu1 %1252 }
 0x49a   : > { %v5162_v4 = vpop.eup %5161  ;;  %v1273_v25 = vadd.f32 1e-08, %v1253_v61 }
 0x49b   : > { %v1429_v44 = vmul.f32 %v5162_v4, %v1272_v8  ;;  %1916 = vadd.xlane.f32.xlu0 %v1885_v16  ;;  %v6230_v12 = vpop.eup %5163  ;;  %vm1434_vm6 = vweird.f32 %v5162_v4 }
 0x49c   : > { %5165 = vrcp.f32 %v1273_v25  ;;  %v1474_v18 = vmul.f32 %v6230_v12, %v6222_v54  ;;  %vm1435_vm8 = vmor %vm1433_vm7, %vm1434_vm6  ;;  %v1454_v61 = vand.u32 2147483648, %v1273_v25  ;;  %vm1448_vm11 = vweird.f32 %v1273_v25 }
 0x49d   : > { %v1430_v47 = vsub.f32 1.0, %v1429_v44  ;;  %v1255_v45 = vpop.xlane.xlu2 %1254  ;;  %vm1479_vm12 = vweird.f32 %v6230_v12 }
 0x49e   : > { %v6234_v46 = vadd.f32 1e-08, %v1255_v45  ;;  %v1475_v58 = vsub.f32 1.0, %v1474_v18  ;;  %v1452_v45 = vand.u32 2147483647, %v1273_v25  ;;  %vm6286_vm6 = vmor %vm1478_vm2, %vm1479_vm12 }
 0x49f   : > { %v1431_v40 = vmul.f32 %v5162_v4, %v1430_v47 }
 0x4a0   : > { %5167 = vrcp.f32 %v6234_v46  ;;  %v1476_v47 = vmul.f32 %v6230_v12, %v1475_v58  ;;  %v1469_v58 = vand.u32 2147483648, %v6234_v46  ;;  %vm1453_vm15 = vcmp.eq.f32.partialorder %v1452_v45, 8.507059e+37 }
 0x4a1   : > { %v1432_v59 = vadd.f32 %v5162_v4, %v1431_v40  ;;  %5169 = vrcp.f32 %v6240_v33  ;;  %v1548_v40 = vmul.f32 %v5891_v52, %v5848_v43  ;;  %vm1463_vm1 = vweird.f32 %v6234_v46 }
 0x4a2   : > { %v5166_v11 = vpop.eup %5165 }
 0x4a3   : > { %v1444_v28 = vmul.f32 %v5166_v11, %v1273_v25  ;;  %3328 = vadd.xlane.f32.xlu0 %v3311_v14  ;;  %v1436_v24 = vsel %vm1435_vm8, %v5162_v4, %v1432_v59  ;;  %vm1449_vm10 = vweird.f32 %v5166_v11  ;;  %v1467_v25 = vand.u32 2147483647, %v6234_v46 }
 0x4a4   : > { %v1441_v2 = vsel %vm1438_vm9, %v1440_v22, %v1436_v24  ;;  %v1455_v22 = vor.u32 1.1754944e-38, %v1454_v61  ;;  %vm1450_vm13 = vmor %vm1448_vm11, %vm1449_vm10  ;;  %v1477_v24 = vadd.f32 %v6230_v12, %v1476_v47  ;;  %v1482_v47 = vand.u32 2147483647, %v6222_v54 }
 0x4a5   : > { %v1445_v1 = vsub.f32 1.0, %v1444_v28  ;;  %v1261_v57 = vpop.xlane.xlu2 %1260  ;;  %v1442_v30 = vmul.f32 %v1441_v2, %v8642_v6  ;;  %vm1468_vm7 = vcmp.eq.f32.partialorder %v1467_v25, 8.507059e+37 }
 0x4a6   : > { %v5168_v13 = vpop.eup %5167  ;;  %v6244_v55 = vadd.f32 1e-08, %v1261_v57  ;;  %v1672_v4 = vpop.f32.mrf.mxu2  ;;  %v1484_v57 = vand.u32 2147483648, %v6222_v54  ;;  %vm1483_vm8 = vcmp.eq.f32.partialorder %v1482_v47, 8.507059e+37 }
 0x4a7   : > { %v1446_v8 = vmul.f32 %v5166_v11, %v1445_v1  ;;  %v1459_v44 = vmul.f32 %v5168_v13, %v6234_v46  ;;  %v1709_v18 = vpack.c.bf16 %v1672_v4, %v1672_v4  ;;  %v1529_v59 = vmul.f32 %v5887_v32, %v1442_v30  ;;  %v6263_v1 = vpop.eup %5169 }
 0x4a8   : > { %5171 = vrcp.f32 %v6244_v55  ;;  %vm1464_vm14 = vweird.f32 %v5168_v13  ;;  %v1549_v46 = vmul.f32 %v5891_v52, %v5854_v49  ;;  %v1470_v4 = vor.u32 1.1754944e-38, %v1469_v58 }
 0x4a9   : > { %v1460_v20 = vsub.f32 1.0, %v1459_v44  ;;  %v1447_v39 = vadd.f32 %v5166_v11, %v1446_v8  ;;  %1726 = vst.msk [vmem:[#allocation2 + $0x8] sm:$0xf] %vm1723_vm5, %v1709_v18  ;;  %v8643_v8 = vmax.f32 %v5854_v49, 0.0  ;;  %v1564_v61 = vadd.f32 %v1548_v40, %v1529_v59  ;;  %vm6273_vm3 = vmor %vm1463_vm1, %vm1464_vm14 }
 0x4aa   : > { %v1489_v18 = vmul.f32 %v6263_v1, %v6240_v33  ;;  %v1481_v49 = vsel %vm6286_vm6, %v6230_v12, %v1477_v24  ;;  %v1485_v58 = vor.u32 1.1754944e-38, %v1484_v57  ;;  %v8648_v24 = vmax.f32 %v5864_v5, 0.0 }
 0x4ab   : > { %v1461_v28 = vmul.f32 %v5168_v13, %v1460_v20  ;;  %v1451_v43 = vsel %vm1450_vm13, %v5166_v11, %v1447_v39  ;;  %vm1494_vm10 = vweird.f32 %v6263_v1  ;;  %vm1508_vm11 = vweird.f32 %v6244_v55 }
 0x4ac   : > { %1902 = vadd.xlane.f32.xlu1 %v1878_v48  ;;  %v1456_v2 = vsel %vm1453_vm15, %v1455_v22, %v1451_v43  ;;  %v1490_v25 = vsub.f32 1.0, %v1489_v18  ;;  %vm1493_vm13 = vweird.f32 %v6240_v33 }
 0x4ad   : > { %v1462_v6 = vadd.f32 %v5168_v13, %v1461_v28  ;;  %v1457_v11 = vmul.f32 %v1456_v2, %v8643_v8  ;;  %v1486_v8 = vsel %vm1483_vm8, %v1485_v58, %v1481_v49  ;;  %v1512_v58 = vand.u32 2147483647, %v6244_v55  ;;  %vm1495_vm14 = vmor %vm1493_vm13, %vm1494_vm10 }
 0x4ae   : > { %v6267_v30 = vpop.eup %5171  ;;  %v1674_v54 = vpop.f32.mrf.mxu2 }
 0x4af   : > { %v1504_v45 = vmul.f32 %v6267_v30, %v6244_v55  ;;  %v1466_v20 = vsel %vm6273_vm3, %v5168_v13, %v1462_v6  ;;  %v1530_v39 = vmul.f32 %v5887_v32, %v1457_v11  ;;  %v1710_v59 = vpack.c.bf16 %v1674_v54, %v1674_v54 }
 0x4b0   : > { %v1880_v13 = vmax.f32 %v5951_v56, 0.0  ;;  %v1471_v28 = vsel %vm1468_vm7, %v1470_v4, %v1466_v20  ;;  %v1580_v6 = vpack.c.bf16 %v1564_v61, %v1564_v61  ;;  %v1491_v61 = vmul.f32 %v6263_v1, %v1490_v25 }
 0x4b1   : > { %v3192_v22 = vpop.permute.xlu1 %3191  ;;  %v1505_v43 = vsub.f32 1.0, %v1504_v45  ;;  %v1565_v2 = vadd.f32 %v1549_v46, %v1530_v39  ;;  %1727 = vst.msk [vmem:[#allocation2 + $0xc] sm:$0xf] %vm1723_vm5, %v1710_v59  ;;  %v1472_v11 = vmul.f32 %v1471_v28, %v8648_v24  ;;  %v8649_v45 = vmax.f32 %v5875_v35, 0.0 }
 0x4b2   : > { %4971 = vmatmul.msk.bf16.gmra.mxu3 %vm1116_vm4, %v3192_v22  ;;  %v1612_v57 = vunpack.c.l.b16 %v1580_v6  ;;  %v1550_v54 = vmul.f32 %v5891_v52, %v5864_v5  ;;  %vm1509_vm9 = vweird.f32 %v6267_v30  ;;  %v1551_v59 = vmul.f32 %v5891_v52, %v5875_v35 }
 0x4b3   : > { %v1581_v12 = vpack.c.bf16 %v1565_v2, %v1565_v2  ;;  %v1506_v44 = vmul.f32 %v6267_v30, %v1505_v43  ;;  %v1487_v46 = vmul.f32 %v1486_v8, %v8649_v45  ;;  %v1531_v40 = vmul.f32 %v5887_v32, %v1472_v11  ;;  %vm1510_vm12 = vmor %vm1508_vm11, %vm1509_vm9  ;;  %v3194_v11 = vpop.permute.xlu0 %3193 }
 0x4b4   : > { %1906 = vadd.xlane.f32.xlu2 %v1880_v13  ;;  %v1514_v22 = vand.u32 2147483648, %v6244_v55  ;;  %v1492_v5 = vadd.f32 %v6263_v1, %v1491_v61  ;;  %v1499_v43 = vand.u32 2147483648, %v6240_v33  ;;  %v1497_v35 = vand.u32 2147483647, %v6240_v33 }
 0x4b5   : > { %v1613_v4 = vunpack.c.l.b16 %v1581_v12  ;;  %v1532_v39 = vmul.f32 %v5887_v32, %v1487_v46  ;;  %v1507_v49 = vadd.f32 %v6267_v30, %v1506_v44  ;;  %v1566_v28 = vadd.f32 %v1550_v54, %v1531_v40 }
 0x4b6   : > { %v1677_v47 = vpop.f32.mrf.mxu2  ;;  %v1515_v8 = vor.u32 1.1754944e-38, %v1514_v22  ;;  %v1496_v24 = vsel %vm1495_vm14, %v6263_v1, %v1492_v5  ;;  %vm1513_vm15 = vcmp.eq.f32.partialorder %v1512_v58, 8.507059e+37  ;;  %v1500_v55 = vor.u32 1.1754944e-38, %v1499_v43 }
 0x4b7   : > { %v1623_v20 = vpack.c.b16 %v1613_v4, %v1612_v57  ;;  %v1711_v18 = vpack.c.bf16 %v1677_v47, %v1677_v47  ;;  %v1567_v2 = vadd.f32 %v1551_v59, %v1532_v39  ;;  %v1511_v6 = vsel %vm1510_vm12, %v6267_v30, %v1507_v49 }
 0x4b8   : > { %v1582_v12 = vpack.c.bf16 %v1566_v28, %v1566_v28  ;;  %v1516_v57 = vsel %vm1513_vm15, %v1515_v8, %v1511_v6  ;;  %vm1498_vm1 = vcmp.eq.f32.partialorder %v1497_v35, 8.507059e+37  ;;  %v1922_v30 = vadd.f32 1e-08, %v6216_v41 }
 0x4b9   : > { %1691 = vmatmul.bf16.gmra.mxu2 %v1623_v20  ;;  %1728 = vst.msk [vmem:[#allocation2 + $0x10] sm:$0xf] %vm1723_vm5, %v1711_v18  ;;  %v1583_v4 = vpack.c.bf16 %v1567_v2, %v1567_v2  ;;  %v1501_v33 = vsel %vm1498_vm1, %v1500_v55, %v1496_v24  ;;  %v8650_v46 = vmax.f32 %v6001_v51, 0.0  ;;  %v8651_v47 = vmax.f32 %v5889_v19, 0.0 }
 0x4ba   : > { %v1614_v45 = vunpack.c.l.b16 %v1582_v12  ;;  %5173 = vrcp.f32 %v1922_v30  ;;  %v1553_v54 = vmul.f32 %v5891_v52, %v6001_v51  ;;  %v1552_v39 = vmul.f32 %v5891_v52, %v5889_v19  ;;  %v6360_v12 = vpop.permute.xlu2 %2473 }
 0x4bb   : > { %v1517_v61 = vmul.f32 %v1516_v57, %v8650_v46  ;;  %v1615_v1 = vunpack.c.l.b16 %v1583_v4  ;;  %v1502_v20 = vmul.f32 %v1501_v33, %v8651_v47  ;;  %v1901_v58 = vpop.xlane.xlu0 %1900  ;;  %vm1999_vm3 = vweird.f32 %v1922_v30 }
 0x4bc   : > { %v6345_v51 = vadd.f32 1e-08, %v1901_v58  ;;  %v2003_v24 = vand.u32 2147483647, %v1922_v30 }
 0x4bd   : > { %v1624_v40 = vpack.c.b16 %v1615_v1, %v1614_v45  ;;  %v1534_v18 = vmul.f32 %v5887_v32, %v1517_v61  ;;  %v1533_v41 = vmul.f32 %v5887_v32, %v1502_v20 }
 0x4be   : > { %v1679_v25 = vpop.f32.mrf.mxu2  ;;  %5175 = vrcp.f32 %v6345_v51  ;;  %vm2004_vm7 = vcmp.eq.f32.partialorder %v2003_v24, 8.507059e+37  ;;  %vm2044_vm13 = vweird.f32 %v6345_v51 }
 0x4bf   : > { %v1712_v44 = vpack.c.bf16 %v1679_v25, %v1679_v25  ;;  %v1569_v49 = vadd.f32 %v1553_v54, %v1534_v18  ;;  %v1568_v22 = vadd.f32 %v1552_v39, %v1533_v41 }
 0x4c0   : > { %v5174_v59 = vpop.eup %5173 }
 0x4c1   : > { %1729 = vst.msk [vmem:[#allocation2 + $0x14] sm:$0xf] %vm1723_vm5, %v1712_v44  ;;  %v1585_v28 = vpack.c.bf16 %v1569_v49, %v1569_v49  ;;  %v1995_v5 = vmul.f32 %v5174_v59, %v1922_v30  ;;  %v1584_v43 = vpack.c.bf16 %v1568_v22, %v1568_v22  ;;  %vm2000_vm2 = vweird.f32 %v5174_v59 }
 0x4c2   : > { %4972 = vmatmul.msk.bf16.gmra.mxu3 %vm1116_vm4, %v3194_v11  ;;  %vm2001_vm6 = vmor %vm1999_vm3, %vm2000_vm2 }
 0x4c3   : > { %v1617_v32 = vunpack.c.l.b16 %v1585_v28  ;;  %v1996_v19 = vsub.f32 1.0, %v1995_v5  ;;  %v6354_v35 = vpop.xlane.xlu0 %1904 }
 0x4c4   : > { %v6358_v25 = vpop.eup %5175 }
 0x4c5   : > { %3024 = vrot.lane.b32.xlu1 %v5534_v17, %s5364_s30  ;;  %v1997_v52 = vmul.f32 %v5174_v59, %v1996_v19  ;;  %vm2045_vm12 = vweird.f32 %v6358_v25  ;;  %v2048_v19 = vand.u32 2147483647, %v6345_v51 }
 0x4c6   : > { %vm2046_vm14 = vmor %vm2044_vm13, %vm2045_vm12 }
 0x4c7   : > { %v1998_v8 = vadd.f32 %v5174_v59, %v1997_v52  ;;  %vm2049_vm15 = vcmp.eq.f32.partialorder %v2048_v19, 8.507059e+37 }
 0x4c9   : > { %1696 = vmatmul.bf16.gmra.mxu2 %v1624_v40  ;;  %v2002_v11 = vsel %vm2001_vm6, %v5174_v59, %v1998_v8  ;;  %v2198_v59 = vmul.f32 %v6108_v36, %v5868_v26 }
 0x4cb   : > { %v6366_v46 = vpop.xlane.xlu0 %1908 }
 0x4cc   : > { %3744 = vrot.lane.b32.xlu2 %v5534_v17, %s5365_s15  ;;  %v1616_v17 = vunpack.c.l.b16 %v1584_v43  ;;  %v2050_v43 = vand.u32 2147483648, %v6345_v51 }
 0x4cd   : > { %3742 = vrot.lane.b32.xlu1 %v5520_v10, %s5365_s15 }
 0x4ce   : > { %v1625_v10 = vpack.c.b16 %v1617_v32, %v1616_v17 }
 0x4d3   : > { %v6389_v52 = vpop.xlane.xlu0 %1910 }
 0x4d4   : > { %3020 = vrot.lane.b32.xlu2 %v5512_v3, %s5364_s30 }
 0x4d5   : > { %3740 = vrot.lane.b32.xlu1 %v5512_v3, %s5365_s15  ;;  %v2005_v3 = vand.u32 2147483648, %v1922_v30  ;;  %v8652_v30 = vmax.f32 %v5868_v26, 0.0 }
 0x4d7   : > { %v2006_v44 = vor.u32 1.1754944e-38, %v2005_v3 }
 0x4d9   : > { %1701 = vmatmul.bf16.gmra.mxu2 %v1625_v10  ;;  %v2007_v55 = vsel %vm2004_vm7, %v2006_v44, %v2002_v11  ;;  %v2199_v10 = vmul.f32 %v6108_v36, %v5904_v31 }
 0x4da   : > { %v2008_v1 = vmul.f32 %v2007_v55, %v8652_v30  ;;  %v6394_v30 = vpop.f32.mrf.mxu3 }
 0x4dc   : > { %3738 = vrot.lane.b32.xlu2 %v5500_v60, %s5365_s15  ;;  %v1897_v2 = vpop.xlane.xlu1 %1896  ;;  %v2040_v60 = vmul.f32 %v6358_v25, %v6345_v51  ;;  %v2179_v39 = vmul.f32 %v6111_v23, %v2008_v1  ;;  %v2051_v51 = vor.u32 1.1754944e-38, %v2050_v43 }
 0x4dd   : > { %v1923_v6 = vadd.f32 1e-08, %v1897_v2  ;;  %3014 = vrot.lane.b32.xlu1 %v5482_v42, %s5364_s30 }
 0x4de   : > { %v2041_v4 = vsub.f32 1.0, %v2040_v60 }
 0x4df   : > { %5177 = vrcp.f32 %v1923_v6  ;;  %v2020_v40 = vand.u32 2147483648, %v1923_v6  ;;  %vm2014_vm9 = vweird.f32 %v1923_v6 }
 0x4e0   : > { %v2042_v20 = vmul.f32 %v6358_v25, %v2041_v4 }
 0x4e1   : > { %v2021_v22 = vor.u32 1.1754944e-38, %v2020_v40 }
 0x4e4   : > { %3016 = vrot.lane.b32.xlu2 %v5490_v53, %s5364_s30  ;;  %v2018_v53 = vand.u32 2147483647, %v1923_v6 }
 0x4e5   : > { %v5178_v57 = vpop.eup %5177 }
 0x4e6   : > { %v2010_v33 = vmul.f32 %v5178_v57, %v1923_v6  ;;  %v1899_v45 = vpop.xlane.xlu2 %1898  ;;  %vm2015_vm8 = vweird.f32 %v5178_v57  ;;  %vm2019_vm11 = vcmp.eq.f32.partialorder %v2018_v53, 8.507059e+37 }
 0x4e7   : > { %v1924_v61 = vadd.f32 1e-08, %v1899_v45  ;;  %vm2016_vm10 = vmor %vm2014_vm9, %vm2015_vm8 }
 0x4e8   : > { %v2011_v47 = vsub.f32 1.0, %v2010_v33 }
 0x4e9   : > { %5179 = vrcp.f32 %v1924_v61  ;;  %v1682_v18 = vpop.f32.mrf.mxu2  ;;  %4957 = vmatmul.msk.bf16.vlgmr.msrb.gmra.mxu2 %vm1116_vm4, %v5675_v62  ;;  %v2043_v62 = vadd.f32 %v6358_v25, %v2042_v20  ;;  %v2035_v60 = vand.u32 2147483648, %v1924_v61  ;;  %v2033_v31 = vand.u32 2147483647, %v1924_v61 }
 0x4ea   : > { %v2012_v54 = vmul.f32 %v5178_v57, %v2011_v47  ;;  %v1713_v41 = vpack.c.bf16 %v1682_v18, %v1682_v18  ;;  %vm2029_vm2 = vweird.f32 %v1924_v61  ;;  %v8653_v47 = vmax.f32 %v5917_v37, 0.0 }
 0x4eb   : > { %v2047_v24 = vsel %vm2046_vm14, %v6358_v25, %v2043_v62  ;;  %v2036_v33 = vor.u32 1.1754944e-38, %v2035_v60  ;;  %vm2034_vm6 = vcmp.eq.f32.partialorder %v2033_v31, 8.507059e+37 }
 0x4ec   : > { %1730 = vst.msk [vmem:[#allocation2 + $0x18] sm:$0xf] %vm1723_vm5, %v1713_v41  ;;  %3734 = vrot.lane.b32.xlu2 %v5482_v42, %s5365_s15  ;;  %v2013_v49 = vadd.f32 %v5178_v57, %v2012_v54  ;;  %v2214_v42 = vadd.f32 %v2198_v59, %v2179_v39  ;;  %v2052_v55 = vsel %vm2049_vm15, %v2051_v51, %v2047_v24  ;;  %v1913_v54 = vpop.xlane.xlu0 %1912  ;;  %v8576_v24 = vmax.f32 %v6394_v30, 0.0 }
 0x4ed   : > { %v2053_v20 = vmul.f32 %v2052_v55, %v8653_v47  ;;  %v2200_v41 = vmul.f32 %v6108_v36, %v5911_v63 }
 0x4ee   : > { %v3196_v28 = vpop.permute.xlu2 %3195  ;;  %v2017_v5 = vsel %vm2016_vm10, %v5178_v57, %v2013_v49  ;;  %v2230_v11 = vpack.c.bf16 %v2214_v42, %v2214_v42  ;;  %v2201_v49 = vmul.f32 %v6108_v36, %v5917_v37  ;;  %v1927_v37 = vadd.f32 1e-08, %v6354_v35 }
 0x4ef   : > { %v5180_v58 = vpop.eup %5179  ;;  %4973 = vmatmul.msk.bf16.gmra.mxu3 %vm1116_vm4, %v3196_v28  ;;  %v2022_v32 = vsel %vm2019_vm11, %v2021_v22, %v2017_v5  ;;  %v2182_v39 = vmul.f32 %v6111_v23, %v2053_v20  ;;  %v6408_v5 = vpop.f32.mrf.mxu3  ;;  %v6426_v35 = vadd.f32 1e-08, %v6366_v46 }
 0x4f0   : > { %v2025_v26 = vmul.f32 %v5180_v58, %v1924_v61  ;;  %v2023_v17 = vmul.f32 %v2022_v32, %v1875_v15  ;;  %vm2030_vm1 = vweird.f32 %v5180_v58  ;;  %v2262_v45 = vunpack.c.l.b16 %v2230_v11 }
 0x4f1   : > { %v1684_v2 = vpop.f32.mrf.mxu2  ;;  %vm2031_vm3 = vmor %vm2029_vm2, %vm2030_vm1  ;;  %v8575_v63 = vmax.f32 %v6408_v5, 0.0  ;;  %5181 = vrcp.f32 %v1927_v37  ;;  %v2080_v31 = vand.u32 2147483648, %v1927_v37  ;;  %vm2074_vm8 = vweird.f32 %v1927_v37 }
 0x4f2   : > { %v2026_v6 = vsub.f32 1.0, %v2025_v26  ;;  %v1714_v8 = vpack.c.bf16 %v1684_v2, %v1684_v2  ;;  %v2180_v3 = vmul.f32 %v6111_v23, %v2023_v17  ;;  %v8580_v2 = vmax.f32 %v6224_v29, 0.0 }
 0x4f3   : > { %5183 = vrcp.f32 %v6426_v35  ;;  %vm2104_vm15 = vweird.f32 %v6426_v35 }
 0x4f4   : > { %v2027_v44 = vmul.f32 %v5180_v58, %v2026_v6  ;;  %1731 = vst.msk [vmem:[#allocation2 + $0x1c] sm:$0xf] %vm1723_vm5, %v1714_v8  ;;  %v2215_v15 = vadd.f32 %v2199_v10, %v2180_v3  ;;  %v6430_v3 = vpop.permute.xlu1 %2475 }
 0x4f6   : > { %v2231_v57 = vpack.c.bf16 %v2215_v15, %v2215_v15  ;;  %v2028_v4 = vadd.f32 %v5180_v58, %v2027_v44 }
 0x4f7   : > { %v5182_v10 = vpop.eup %5181 }
 0x4f8   : > { %v2263_v25 = vunpack.c.l.b16 %v2231_v57  ;;  %v2032_v1 = vsel %vm2031_vm3, %v5180_v58, %v2028_v4  ;;  %v6411_v58 = vpop.xlane.xlu0 %1914  ;;  %v2070_v6 = vmul.f32 %v5182_v10, %v1927_v37  ;;  %vm2075_vm7 = vweird.f32 %v5182_v10 }
 0x4f9   : > { %v2037_v40 = vsel %vm2034_vm6, %v2036_v33, %v2032_v1  ;;  %4958 = vmatmul.msk.bf16.gmra.mxu2 %vm1116_vm4, %v5720_v38  ;;  %v2217_v38 = vadd.f32 %v2201_v49, %v2182_v39  ;;  %v6438_v46 = vpop.eup %5183  ;;  %vm2076_vm9 = vmor %vm2074_vm8, %vm2075_vm7  ;;  %v6444_v57 = vadd.f32 1e-08, %v1913_v54  ;;  %v2081_v33 = vor.u32 1.1754944e-38, %v2080_v31 }
 0x4fa   : > { %v2276_v18 = vpack.c.b16 %v2263_v25, %v2262_v45  ;;  %v2038_v61 = vmul.f32 %v2037_v40, %v1876_v50  ;;  %v2100_v55 = vmul.f32 %v6438_v46, %v6426_v35  ;;  %v6447_v45 = vadd.f32 1e-08, %v6389_v52 }
 0x4fb   : > { %v2233_v62 = vpack.c.bf16 %v2217_v38, %v2217_v38  ;;  %vm2105_vm13 = vweird.f32 %v6438_v46 }
 0x4fc   : > { %2332 = vmatmul.bf16.gmra.mxu0 %v2276_v18  ;;  %v2181_v53 = vmul.f32 %v6111_v23, %v2038_v61  ;;  %v2101_v47 = vsub.f32 1.0, %v2100_v55  ;;  %v8654_v61 = vld [vmem:[#allocation7_spill] sm:$0xff]  ;;  %vm6476_vm2 = vmor %vm2104_vm15, %vm2105_vm13  ;;  %vm2119_vm13 = vweird.f32 %v6447_v45 }
 0x4fd   : > { %v2265_v19 = vunpack.c.l.b16 %v2233_v62 }
 0x4fe   : > { %v2216_v59 = vadd.f32 %v2200_v41, %v2181_v53  ;;  %v8655_v41 = vld [vmem:[#allocation8_spill] sm:$0xff]  ;;  %v2102_v49 = vmul.f32 %v6438_v46, %v2101_v47 }
 0x4ff   : > { %v1687_v22 = vpop.f32.mrf.mxu2  ;;  %v8656_v53 = vmax.f32 %v8655_v41, 0.0 }
 0x500   : > { %v1715_v28 = vpack.c.bf16 %v1687_v22, %v1687_v22  ;;  %v2232_v50 = vpack.c.bf16 %v2216_v59, %v2216_v59  ;;  %v6420_v17 = vpop.permute.xlu0 %3022 }
 0x502   : > { %1732 = vst.msk [vmem:[#allocation2 + $0x20] sm:$0xf] %vm1723_vm5, %v1715_v28  ;;  %v2264_v43 = vunpack.c.l.b16 %v2232_v50 }
 0x504   : > { %v2277_v26 = vpack.c.b16 %v2265_v19, %v2264_v43 }
 0x507   : > { %3332 = vadd.xlane.f32.xlu1 %v8575_v63  ;;  %v1689_v32 = vpop.f32.mrf.mxu2 }
 0x508   : > { %v1716_v42 = vpack.c.bf16 %v1689_v32, %v1689_v32  ;;  %v6428_v8 = vpop.permute.xlu0 %3018 }
 0x509   : > { %4959 = vmatmul.msk.bf16.gmra.mxu2 %vm1116_vm4, %v5679_v0  ;;  %v2071_v0 = vsub.f32 1.0, %v2070_v6 }
 0x50a   : > { %1733 = vst.msk [vmem:[#allocation2 + $0x24] sm:$0xf] %vm1723_vm5, %v1716_v42  ;;  %v2103_v42 = vadd.f32 %v6438_v46, %v2102_v49 }
 0x50b   : > { %v2072_v60 = vmul.f32 %v5182_v10, %v2071_v0  ;;  %v2108_v0 = vand.u32 2147483647, %v6426_v35 }
 0x50c   : > { %2337 = vmatmul.bf16.gmra.mxu0 %v2277_v26 }
 0x50d   : > { %v2073_v44 = vadd.f32 %v5182_v10, %v2072_v60  ;;  %v2110_v60 = vand.u32 2147483648, %v6426_v35  ;;  %vm2109_vm6 = vcmp.eq.f32.partialorder %v2108_v0, 8.507059e+37 }
 0x50f   : > { %v2077_v4 = vsel %vm2076_vm9, %v5182_v10, %v2073_v44 }
 0x510   : > { %v6440_v15 = vpop.permute.xlu0 %3736 }
 0x515   : > { %3326 = vadd.xlane.f32.xlu2 %v8580_v2 }
 0x518   : > { %v6456_v54 = vpop.permute.xlu0 %3012 }
 0x519   : > { %4960 = vmatmul.msk.bf16.gmra.mxu2 %vm1116_vm4, %v5688_v7  ;;  %v2078_v7 = vand.u32 2147483647, %v1927_v37  ;;  %v2203_v37 = vmul.f32 %v6108_v36, %v8655_v41 }
 0x51b   : > { %vm2079_vm10 = vcmp.eq.f32.partialorder %v2078_v7, 8.507059e+37 }
 0x51c   : > { %v2082_v40 = vsel %vm2079_vm10, %v2081_v33, %v2077_v4  ;;  %v2202_v33 = vmul.f32 %v6108_v36, %v5930_v27  ;;  %v2111_v27 = vor.u32 1.1754944e-38, %v2110_v60 }
 0x51d   : > { %3330 = vadd.xlane.f32.xlu2 %v8576_v24  ;;  %v2083_v39 = vmul.f32 %v2082_v40, %v8656_v53 }
 0x51f   : > { %v1903_v11 = vpop.xlane.xlu1 %1902  ;;  %v2184_v43 = vmul.f32 %v6111_v23, %v2083_v39 }
 0x520   : > { %v1926_v51 = vadd.f32 1e-08, %v1903_v11  ;;  %v1917_v31 = vpop.xlane.xlu0 %1916 }
 0x521   : > { %v2219_v4 = vadd.f32 %v2203_v37, %v2184_v43 }
 0x522   : > { %5185 = vrcp.f32 %v1926_v51  ;;  %v2065_v59 = vand.u32 2147483648, %v1926_v51  ;;  %v2063_v28 = vand.u32 2147483647, %v1926_v51  ;;  %vm2059_vm12 = vweird.f32 %v1926_v51 }
 0x523   : > { %5187 = vrcp.f32 %v6444_v57  ;;  %v2235_v49 = vpack.c.bf16 %v2219_v4, %v2219_v4 }
 0x524   : > { %v2066_v19 = vor.u32 1.1754944e-38, %v2065_v59  ;;  %vm2064_vm1 = vcmp.eq.f32.partialorder %v2063_v28, 8.507059e+37  ;;  %v6498_v59 = vadd.f32 1e-08, %v6411_v58 }
 0x525   : > { %v2267_v58 = vunpack.c.l.b16 %v2235_v49 }
 0x527   : > { %v1907_v25 = vpop.xlane.xlu2 %1906 }
 0x528   : > { %v5186_v1 = vpop.eup %5185  ;;  %v6449_v20 = vadd.f32 1e-08, %v1907_v25 }
 0x529   : > { %v2055_v18 = vmul.f32 %v5186_v1, %v1926_v51  ;;  %4961 = vmatmul.msk.bf16.gmra.mxu2 %vm1116_vm4, %v8654_v61  ;;  %vm2060_vm11 = vweird.f32 %v5186_v1  ;;  %v6461_v38 = vpop.eup %5187 }
 0x52a   : > { %5189 = vrcp.f32 %v6449_v20  ;;  %vm2061_vm14 = vmor %vm2059_vm12, %vm2060_vm11  ;;  %v2130_v11 = vmul.f32 %v6461_v38, %v6444_v57  ;;  %v2095_v25 = vand.u32 2147483648, %v6449_v20  ;;  %v2093_v40 = vand.u32 2147483647, %v6449_v20 }
 0x52b   : > { %5191 = vrcp.f32 %v6447_v45  ;;  %v2056_v52 = vsub.f32 1.0, %v2055_v18  ;;  %v8659_v18 = vld [vmem:[#allocation6_spill] sm:$0xff]  ;;  %vm2089_vm7 = vweird.f32 %v6449_v20  ;;  %vm2135_vm10 = vweird.f32 %v6461_v38 }
 0x52c   : > { %v2131_v61 = vsub.f32 1.0, %v2130_v11  ;;  %vm2094_vm9 = vcmp.eq.f32.partialorder %v2093_v40, 8.507059e+37  ;;  %vm2134_vm12 = vweird.f32 %v6444_v57 }
 0x52d   : > { %v2057_v22 = vmul.f32 %v5186_v1, %v2056_v52  ;;  %v6494_v52 = vadd.f32 1e-08, %v1917_v31 }
 0x52e   : > { %v2132_v37 = vmul.f32 %v6461_v38, %v2131_v61  ;;  %v2123_v61 = vand.u32 2147483647, %v6447_v45 }
 0x52f   : > { %v2058_v50 = vadd.f32 %v5186_v1, %v2057_v22  ;;  %v3745_v62 = vpop.permute.xlu2 %3744  ;;  %v2096_v22 = vor.u32 1.1754944e-38, %v2095_v25  ;;  %5193 = vrcp.f32 %v6494_v52  ;;  %v2140_v25 = vand.u32 2147483648, %v6444_v57 }
 0x530   : > { %v5190_v32 = vpop.eup %5189  ;;  %3754 = vmatpush.bf16.msra.mxu0 %v3745_v62  ;;  %5195 = vrcp.f32 %v6498_v59 }
 0x531   : > { %v6468_v26 = vpop.eup %5191  ;;  %v2085_v10 = vmul.f32 %v5190_v32, %v6449_v20  ;;  %v2062_v6 = vsel %vm2061_vm14, %v5186_v1, %v2058_v50  ;;  %v2107_v1 = vsel %vm6476_vm2, %v6438_v46, %v2103_v42  ;;  %vm2090_vm3 = vweird.f32 %v5190_v32  ;;  %v8660_v20 = vld [vmem:[#allocation13_spill] sm:$0xff]  ;;  %vm6534_vm14 = vmor %vm2134_vm12, %vm2135_vm10 }
 0x532   : > { %v2067_v51 = vsel %vm2064_vm1, %v2066_v19, %v2062_v6  ;;  %v2115_v35 = vmul.f32 %v6468_v26, %v6447_v45  ;;  %vm2091_vm8 = vmor %vm2089_vm7, %vm2090_vm3  ;;  %v2112_v28 = vsel %vm2109_vm6, %v2111_v27, %v2107_v1  ;;  %v8661_v6 = vld [vmem:[#allocation9_spill] sm:$0xff]  ;;  %vm2120_vm11 = vweird.f32 %v6468_v26 }
 0x533   : > { %v2086_v7 = vsub.f32 1.0, %v2085_v10  ;;  %v2068_v55 = vmul.f32 %v2067_v51, %v1878_v48  ;;  %v8662_v0 = vmax.f32 %v8661_v6, 0.0  ;;  %v2138_v1 = vand.u32 2147483647, %v6444_v57  ;;  %vm6546_vm15 = vmor %vm2119_vm13, %vm2120_vm11 }
 0x534   : > { %v2116_v50 = vsub.f32 1.0, %v2115_v35  ;;  %v2205_v35 = vmul.f32 %v6108_v36, %v8661_v6  ;;  %vm2124_vm2 = vcmp.eq.f32.partialorder %v2123_v61, 8.507059e+37  ;;  %vm2164_vm7 = vweird.f32 %v6494_v52 }
 0x535   : > { %v2087_v47 = vmul.f32 %v5190_v32, %v2086_v7  ;;  %3730 = vrot.lane.b32.xlu2 %v8659_v18, %s5365_s15  ;;  %v2183_v48 = vmul.f32 %v6111_v23, %v2068_v55  ;;  %v2113_v60 = vmul.f32 %v2112_v28, %v8662_v0  ;;  %v2204_v7 = vmul.f32 %v6108_v36, %v5951_v56 }
 0x536   : > { %v2133_v55 = vadd.f32 %v6461_v38, %v2132_v37  ;;  %vm2139_vm1 = vcmp.eq.f32.partialorder %v2138_v1, 8.507059e+37  ;;  %v2155_v27 = vand.u32 2147483648, %v6498_v59 }
 0x537   : > { %v2088_v41 = vadd.f32 %v5190_v32, %v2087_v47  ;;  %v3021_v53 = vpop.permute.xlu2 %3020  ;;  %v3025_v39 = vpop.permute.xlu1 %3024  ;;  %v2218_v46 = vadd.f32 %v2202_v33, %v2183_v48  ;;  %v2186_v33 = vmul.f32 %v6111_v23, %v2113_v60  ;;  %v2125_v48 = vand.u32 2147483648, %v6447_v45 }
 0x538   : > { %3034 = vmatpush.bf16.msrb.mxu1 %v3025_v39  ;;  %v2137_v57 = vsel %vm6534_vm14, %v6461_v38, %v2133_v55 }
 0x539   : > { %v2234_v62 = vpack.c.bf16 %v2218_v46, %v2218_v46  ;;  %v2092_v43 = vsel %vm2091_vm8, %v5190_v32, %v2088_v41  ;;  %4962 = vmatmul.msk.bf16.gmra.mxu2 %vm1116_vm4, %v8660_v20  ;;  %v2117_v32 = vmul.f32 %v6468_v26, %v2116_v50  ;;  %v2141_v46 = vor.u32 1.1754944e-38, %v2140_v25 }
 0x53a   : > { %v2097_v42 = vsel %vm2094_vm9, %v2096_v22, %v2092_v43  ;;  %v2126_v38 = vor.u32 1.1754944e-38, %v2125_v48  ;;  %vm2149_vm9 = vweird.f32 %v6498_v59 }
 0x53b   : > { %v2266_v19 = vunpack.c.l.b16 %v2234_v62  ;;  %v2098_v10 = vmul.f32 %v2097_v42, %v1880_v13  ;;  %v2118_v56 = vadd.f32 %v6468_v26, %v2117_v32  ;;  %v2142_v62 = vsel %vm2139_vm1, %v2141_v46, %v2137_v57  ;;  %v8669_v32 = vld [vmem:[#allocation10_spill] sm:$0xff] }
 0x53c   : > { %3035 = vmatpush.bf16.msrb.mxu1 %v6420_v17  ;;  %v1692_v11 = vpop.f32.mrf.mxu2  ;;  %v6518_v17 = vpop.eup %5193 }
 0x53d   : > { %v2278_v51 = vpack.c.b16 %v2267_v58, %v2266_v19  ;;  %v2185_v44 = vmul.f32 %v6111_v23, %v2098_v10  ;;  %v1717_v31 = vpack.c.bf16 %v1692_v11, %v1692_v11  ;;  %v6528_v40 = vpop.eup %5195  ;;  %v2160_v41 = vmul.f32 %v6518_v17, %v6494_v52  ;;  %v8667_v10 = vld [vmem:[#allocation11_spill] sm:$0xff] }
 0x53e   : > { %v2145_v45 = vmul.f32 %v6528_v40, %v6498_v59  ;;  %v2122_v28 = vsel %vm6546_vm15, %v6468_v26, %v2118_v56  ;;  %v8668_v6 = vmax.f32 %v8667_v10, 0.0  ;;  %v8670_v11 = vmax.f32 %v8669_v32, 0.0 }
 0x53f   : > { %v3739_v13 = vpop.permute.xlu2 %3738  ;;  %2342 = vmatmul.bf16.gmra.mxu0 %v2278_v51  ;;  %v3743_v4 = vpop.permute.xlu1 %3742  ;;  %1734 = vst.msk [vmem:[#allocation2 + $0x28] sm:$0xf] %vm1723_vm5, %v1717_v31  ;;  %v2220_v47 = vadd.f32 %v2204_v7, %v2185_v44  ;;  %v2161_v43 = vsub.f32 1.0, %v2160_v41  ;;  %vm2165_vm3 = vweird.f32 %v6518_v17  ;;  %vm2150_vm6 = vweird.f32 %v6528_v40 }
 0x540   : > { %3036 = vmatpush.bf16.msrb.mxu1 %v3021_v53  ;;  %3755 = vmatpush.bf16.msra.mxu0 %v3743_v4  ;;  %v2221_v53 = vadd.f32 %v2205_v35, %v2186_v33  ;;  %v2146_v19 = vsub.f32 1.0, %v2145_v45  ;;  %v2143_v0 = vmul.f32 %v2142_v62, %v8668_v6  ;;  %v2207_v33 = vmul.f32 %v6108_v36, %v8667_v10  ;;  %vm6583_vm8 = vmor %vm2164_vm7, %vm2165_vm3 }
 0x541   : > { %v2236_v22 = vpack.c.bf16 %v2220_v47, %v2220_v47  ;;  %v2162_v26 = vmul.f32 %v6518_v17, %v2161_v43  ;;  %v2170_v56 = vand.u32 2147483648, %v6494_v52  ;;  %v2168_v47 = vand.u32 2147483647, %v6494_v52  ;;  %vm2151_vm10 = vmor %vm2149_vm9, %vm2150_vm6  ;;  %v8673_v43 = vld [vmem:[#allocation12_spill] sm:$0xff] }
 0x542   : > { %v2237_v42 = vpack.c.bf16 %v2221_v53, %v2221_v53  ;;  %v2147_v44 = vmul.f32 %v6528_v40, %v2146_v19  ;;  %v2188_v55 = vmul.f32 %v6111_v23, %v2143_v0  ;;  %v2153_v41 = vand.u32 2147483647, %v6498_v59 }
 0x543   : > { %v2268_v58 = vunpack.c.l.b16 %v2236_v22  ;;  %v2163_v35 = vadd.f32 %v6518_v17, %v2162_v26  ;;  %v2171_v52 = vor.u32 1.1754944e-38, %v2170_v56  ;;  %vm2169_vm11 = vcmp.eq.f32.partialorder %v2168_v47, 8.507059e+37 }
 0x544   : > { %3037 = vmatpush.bf16.msrb.mxu1 %v6428_v8  ;;  %v1694_v49 = vpop.f32.mrf.mxu2  ;;  %v2127_v8 = vsel %vm2124_vm2, %v2126_v38, %v2122_v28  ;;  %v2269_v60 = vunpack.c.l.b16 %v2237_v42  ;;  %v2148_v1 = vadd.f32 %v6528_v40, %v2147_v44  ;;  %v2223_v48 = vadd.f32 %v2207_v33, %v2188_v55  ;;  %v6597_v38 = vpop.f32.mrf.mxu3 }
 0x545   : > { %v1718_v50 = vpack.c.bf16 %v1694_v49, %v1694_v49  ;;  %v2128_v51 = vmul.f32 %v2127_v8, %v8670_v11  ;;  %v2167_v57 = vsel %vm6583_vm8, %v6518_v17, %v2163_v35  ;;  %v2156_v49 = vor.u32 1.1754944e-38, %v2155_v27 }
 0x546   : > { %v2279_v7 = vpack.c.b16 %v2269_v60, %v2268_v58  ;;  %v2239_v46 = vpack.c.bf16 %v2223_v48, %v2223_v48  ;;  %v2152_v45 = vsel %vm2151_vm10, %v6528_v40, %v2148_v1  ;;  %v2172_v22 = vsel %vm2169_vm11, %v2171_v52, %v2167_v57 }
 0x547   : > { %v3017_v37 = vpop.permute.xlu2 %3016  ;;  %v3741_v20 = vpop.permute.xlu1 %3740  ;;  %1735 = vst.msk [vmem:[#allocation2 + $0x2c] sm:$0xf] %vm1723_vm5, %v1718_v50  ;;  %v2187_v25 = vmul.f32 %v6111_v23, %v2128_v51  ;;  %vm2154_vm12 = vcmp.eq.f32.partialorder %v2153_v41, 8.507059e+37  ;;  %v8674_v40 = vmax.f32 %v8673_v43, 0.0  ;;  %v2208_v10 = vmul.f32 %v6108_v36, %v8673_v43 }
 0x548   : > { %3038 = vmatpush.bf16.msrb.mxu1 %v3017_v37  ;;  %3756 = vmatpush.bf16.msra.mxu0 %v3741_v20  ;;  %v2157_v17 = vsel %vm2154_vm12, %v2156_v49, %v2152_v45  ;;  %v2271_v50 = vunpack.c.l.b16 %v2239_v46  ;;  %v8574_v20 = vmax.f32 %v6597_v38, 0.0 }
 0x549   : > { %4963 = vmatmul.msk.bf16.gmra.mxu2 %vm1116_vm4, %v6360_v12  ;;  %v2158_v37 = vmul.f32 %v2157_v17, %v8674_v40 }
 0x54c   : > { %3757 = vmatpush.bf16.msra.mxu0 %v3739_v13  ;;  %v1697_v31 = vpop.f32.mrf.mxu2  ;;  %v2206_v13 = vmul.f32 %v6108_v36, %v8669_v32  ;;  %v6631_v33 = vpop.f32.mrf.mxu3 }
 0x54d   : > { %v1719_v4 = vpack.c.bf16 %v1697_v31, %v1697_v31  ;;  %v8568_v17 = vmax.f32 %v6631_v33, 0.0 }
 0x54e   : > { %v2222_v53 = vadd.f32 %v2206_v13, %v2187_v25 }
 0x54f   : > { %2347 = vmatmul.bf16.gmra.mxu0 %v2279_v7  ;;  %v3015_v12 = vpop.permute.xlu1 %3014  ;;  %1736 = vst.msk [vmem:[#allocation2 + $0x30] sm:$0xf] %vm1723_vm5, %v1719_v4 }
 0x550   : > { %3039 = vmatpush.bf16.msrb.mxu1 %v3015_v12  ;;  %3758 = vmatpush.bf16.msra.mxu0 %v6440_v15  ;;  %v3735_v15 = vpop.permute.xlu2 %3734  ;;  %v2238_v28 = vpack.c.bf16 %v2222_v53, %v2222_v53 }
 0x552   : > { %v2270_v62 = vunpack.c.l.b16 %v2238_v28 }
 0x554   : > { %3040 = vmatpush.bf16.msrb.mxu1 %v6456_v54  ;;  %3759 = vmatpush.bf16.msra.mxu0 %v3735_v15  ;;  %v1699_v39 = vpop.f32.mrf.mxu2  ;;  %v2173_v54 = vmul.f32 %v2172_v22, %v1885_v16  ;;  %v2280_v8 = vpack.c.b16 %v2271_v50, %v2270_v62  ;;  %v2209_v16 = vmul.f32 %v6108_v36, %v6218_v21  ;;  %v6640_v13 = vpop.f32.mrf.mxu3 }
 0x555   : > { %v1720_v59 = vpack.c.bf16 %v1699_v39, %v1699_v39 }
 0x556   : > { %v2190_v19 = vmul.f32 %v6111_v23, %v2173_v54  ;;  %v3329_v54 = vpop.xlane.xlu0 %3328 }
 0x557   : > { %1737 = vst.msk [vmem:[#allocation2 + $0x34] sm:$0xf] %vm1723_vm5, %v1720_v59  ;;  %v6701_v40 = vadd.f32 1e-08, %v3329_v54 }
 0x558   : > { %v2225_v6 = vadd.f32 %v2209_v16, %v2190_v19 }
 0x559   : > { %4964 = vmatmul.msk.bf16.gmra.mxu2 %vm1116_vm4, %v6430_v3  ;;  %v2189_v3 = vmul.f32 %v6111_v23, %v2158_v37  ;;  %v8564_v37 = vmax.f32 %v6640_v13, 0.0  ;;  %5197 = vrcp.f32 %v6701_v40 }
 0x55a   : > { %v2241_v60 = vpack.c.bf16 %v2225_v6, %v2225_v6 }
 0x55b   : > { %v2224_v0 = vadd.f32 %v2208_v10, %v2189_v3 }
 0x55c   : > { %v1702_v42 = vpop.f32.mrf.mxu2  ;;  %v2273_v51 = vunpack.c.l.b16 %v2241_v60  ;;  %v6644_v1 = vpop.f32.mrf.mxu3 }
 0x55d   : > { %v1721_v58 = vpack.c.bf16 %v1702_v42, %v1702_v42  ;;  %v2240_v11 = vpack.c.bf16 %v2224_v0, %v2224_v0  ;;  %v8563_v43 = vmax.f32 %v6644_v1, 0.0 }
 0x55e   : > { %3334 = vadd.xlane.f32.xlu2 %v8574_v20 }
 0x55f   : > { %2352 = vmatmul.bf16.gmra.mxu0 %v2280_v8  ;;  %1738 = vst.msk [vmem:[#allocation2 + $0x38] sm:$0xf] %vm1723_vm5, %v1721_v58  ;;  %v2272_v44 = vunpack.c.l.b16 %v2240_v11  ;;  %v6720_v6 = vpop.eup %5197 }
 0x560   : > { %vm3395_vm4 = vweird.f32 %v6720_v6 }
 0x561   : > { %v2281_v21 = vpack.c.b16 %v2273_v51, %v2272_v44 }
 0x564   : > { %v1704_v26 = vpop.f32.mrf.mxu2  ;;  %v6652_v48 = vpop.f32.mrf.mxu3 }
 0x565   : > { %v1722_v32 = vpack.c.bf16 %v1704_v26, %v1704_v26  ;;  %v8559_v58 = vmax.f32 %v6652_v48, 0.0 }
 0x567   : > { %1739 = vst.msk [vmem:[#allocation2 + $0x3c] sm:$0xf] %vm1723_vm5, %v1722_v32  ;;  %v3390_v32 = vmul.f32 %v6720_v6, %v6701_v40  ;;  %vm3394_vm5 = vweird.f32 %v6701_v40 }
 0x568   : > { %vm6779_vm13 = vmor %vm3394_vm5, %vm3395_vm4 }
 0x56c   : > { %v6616_v31 = vpop.f32.mrf.mxu2  ;;  %v6659_v41 = vpop.f32.mrf.mxu3 }
 0x56d   : > { %v2590_v23 = vmax.f32 %v6616_v31, 0.0  ;;  %v8560_v57 = vmax.f32 %v6659_v41, 0.0 }
 0x56f   : > { %2357 = vmatmul.bf16.gmra.mxu0 %v2281_v21  ;;  %2606 = vadd.xlane.f32.xlu1 %v2590_v23  ;;  %v3391_v21 = vsub.f32 1.0, %v3390_v32 }
 0x574   : > { %v6621_v36 = vpop.f32.mrf.mxu2 }
 0x575   : > { %v8581_v7 = vmax.f32 %v6621_v36, 0.0 }
 0x577   : > { %2608 = vadd.xlane.f32.xlu0 %v8581_v7 }
 0x57a   : > { %v3333_v3 = vpop.xlane.xlu1 %3332 }
 0x57c   : > { %v6626_v55 = vpop.f32.mrf.mxu2 }
 0x57d   : > { %v8579_v4 = vmax.f32 %v6626_v55, 0.0 }
 0x57f   : > { %2610 = vadd.xlane.f32.xlu1 %v8579_v4 }
 0x584   : > { %v6633_v35 = vpop.f32.mrf.mxu2 }
 0x585   : > { %v8578_v12 = vmax.f32 %v6633_v35, 0.0 }
 0x587   : > { %2612 = vadd.xlane.f32.xlu0 %v8578_v12 }
 0x588   : > { %v3327_v16 = vpop.xlane.xlu2 %3326 }
 0x589   : > { %v6722_v0 = vadd.f32 1e-08, %v3327_v16 }
 0x58b   : > { %5199 = vrcp.f32 %v6722_v0  ;;  %v3385_v24 = vand.u32 2147483648, %v6722_v0  ;;  %vm3379_vm7 = vweird.f32 %v6722_v0 }
 0x58c   : > { %v6638_v25 = vpop.f32.mrf.mxu2 }
 0x58d   : > { %v8569_v49 = vmax.f32 %v6638_v25, 0.0 }
 0x594   : > { %v6642_v56 = vpop.f32.mrf.mxu2 }
 0x595   : > { %v8570_v45 = vmax.f32 %v6642_v56, 0.0 }
 0x598   : > { %3010 = vrot.lane.b32.xlu1 %v8659_v18, %s5364_s30 }
 0x59b   : > { %3732 = vrot.lane.b32.xlu0 %v5476_v34, %s5365_s15  ;;  %v6666_v34 = vpop.f32.mrf.mxu3 }
 0x59c   : > { %v6650_v47 = vpop.f32.mrf.mxu2  ;;  %8675 = vst [vmem:[#allocation7_spill] sm:$0xff] %v6666_v34  ;;  %v8556_v46 = vmax.f32 %v6666_v34, 0.0 }
 0x59d   : > { %v8566_v28 = vmax.f32 %v6650_v47, 0.0 }
 0x5a3   : > { %v6673_v52 = vpop.f32.mrf.mxu3 }
 0x5a4   : > { %v6654_v27 = vpop.f32.mrf.mxu2  ;;  %8676 = vst [vmem:[#allocation8_spill] sm:$0xff] %v6673_v52 }
 0x5a5   : > { %v8572_v61 = vmax.f32 %v6654_v27, 0.0 }
 0x5a7   : > { %2620 = vadd.xlane.f32.xlu2 %v8572_v61 }
 0x5ab   : > { %v6688_v22 = vpop.f32.mrf.mxu3 }
 0x5ac   : > { %v6661_v15 = vpop.f32.mrf.mxu2  ;;  %8679 = vst [vmem:[#allocation9_spill] sm:$0xff] %v6688_v22 }
 0x5ad   : > { %v8571_v18 = vmax.f32 %v6661_v15, 0.0 }
 0x5af   : > { %2622 = vadd.xlane.f32.xlu2 %v8571_v18  ;;  %v6801_v18 = vstv %s6735_s16 }
 0x5b3   : > { %v6698_v62 = vpop.f32.mrf.mxu3 }
 0x5b4   : > { %v6668_v53 = vpop.f32.mrf.mxu2  ;;  %8681 = vst [vmem:[#allocation10_spill] sm:$0xff] %v6698_v62 }
 0x5b5   : > { %v8562_v10 = vmax.f32 %v6668_v53, 0.0 }
 0x5b7   : > { %3344 = vadd.xlane.f32.xlu2 %v8560_v57  ;;  %v8567_v57 = vmax.f32 %v6673_v52, 0.0 }
 0x5bb   : > { %v6714_v19 = vpop.f32.mrf.mxu3 }
 0x5bc   : > { %v6675_v39 = vpop.f32.mrf.mxu2  ;;  %8683 = vst [vmem:[#allocation14_spill] sm:$0xff] %v6714_v19 }
 0x5bd   : > { %8677 = vst [vmem:[#allocation6_spill] sm:$0xff] %v6675_v39  ;;  %v8558_v54 = vmax.f32 %v6675_v39, 0.0 }
 0x5bf   : > { %3346 = vadd.xlane.f32.xlu2 %v8556_v46  ;;  %v3392_v46 = vmul.f32 %v6720_v6, %v3391_v21 }
 0x5c2   : > { %2616 = vadd.xlane.f32.xlu1 %v8570_v45 }
 0x5c3   : > { %v6737_v51 = vpop.f32.mrf.mxu3 }
 0x5c4   : > { %v6684_v59 = vpop.f32.mrf.mxu2  ;;  %8685 = vst [vmem:[#allocation16_spill] sm:$0xff] %v6737_v51 }
 0x5c5   : > { %8678 = vst [vmem:[#allocation13_spill] sm:$0xff] %v6684_v59  ;;  %2614 = vadd.xlane.f32.xlu0 %v8569_v49  ;;  %v8557_v11 = vmax.f32 %v6684_v59, 0.0  ;;  %v6792_v49 = vstv %s3632_s20 }
 0x5c6   : > { %8688 = vst [vmem:[#allocation17_spill] sm:$0xff] %v6792_v49 }
 0x5ca   : > { %2618 = vadd.xlane.f32.xlu1 %v8566_v28 }
 0x5cc   : > { %v6694_v50 = vpop.f32.mrf.mxu2 }
 0x5cd   : > { %8680 = vst [vmem:[#allocation11_spill] sm:$0xff] %v6694_v50  ;;  %3336 = vadd.xlane.f32.xlu0 %v8568_v17  ;;  %v8565_v32 = vmax.f32 %v6694_v50, 0.0 }
 0x5d2   : > { %3340 = vadd.xlane.f32.xlu1 %v8563_v43 }
 0x5d4   : > { %v6706_v42 = vpop.f32.mrf.mxu2 }
 0x5d5   : > { %8682 = vst [vmem:[#allocation12_spill] sm:$0xff] %v6706_v42  ;;  %3338 = vadd.xlane.f32.xlu0 %v8564_v37  ;;  %v8555_v8 = vmax.f32 %v6706_v42, 0.0  ;;  %v3400_v37 = vand.u32 2147483648, %v6701_v40 }
 0x5d7   : > { %2632 = vadd.xlane.f32.xlu2 %v8555_v8  ;;  %v6748_v8 = vpop.eup %5199  ;;  %v3401_v45 = vor.u32 1.1754944e-38, %v3400_v37  ;;  %v8577_v37 = vmax.f32 %v6688_v22, 0.0 }
 0x5d8   : > { %vm3380_vm3 = vweird.f32 %v6748_v8 }
 0x5d9   : > { %vm6836_vm8 = vmor %vm3379_vm7, %vm3380_vm3 }
 0x5da   : > { %3342 = vadd.xlane.f32.xlu1 %v8559_v58 }
 0x5dc   : > { %v6724_v26 = vpop.f32.mrf.mxu2 }
 0x5dd   : > { %8684 = vst [vmem:[#allocation15_spill] sm:$0xff] %v6724_v26  ;;  %2624 = vadd.xlane.f32.xlu0 %v8562_v10  ;;  %v8554_v60 = vmax.f32 %v6724_v26, 0.0 }
 0x5df   : > { %2634 = vadd.xlane.f32.xlu2 %v8554_v60  ;;  %v8561_v60 = vmax.f32 %v6737_v51, 0.0 }
 0x5e2   : > { %2628 = vadd.xlane.f32.xlu1 %v8557_v11  ;;  %v2607_v44 = vpop.xlane.xlu1 %2606  ;;  %v6753_v11 = vadd.f32 1e-08, %v3333_v3  ;;  %v3393_v3 = vadd.f32 %v6720_v6, %v3392_v46 }
 0x5e3   : > { %v6742_v16 = vadd.f32 1e-08, %v2607_v44  ;;  %v3375_v44 = vmul.f32 %v6748_v8, %v6722_v0 }
 0x5e4   : > { %v3397_v28 = vsel %vm6779_vm13, %v6720_v6, %v3393_v3 }
 0x5e5   : > { %5201 = vrcp.f32 %v6742_v16  ;;  %2626 = vadd.xlane.f32.xlu0 %v8558_v54  ;;  %v3331_v54 = vpop.xlane.xlu2 %3330  ;;  %vm2659_vm1 = vweird.f32 %v6742_v16  ;;  %v2663_v6 = vand.u32 2147483647, %v6742_v16 }
 0x5e6   : > { %5203 = vrcp.f32 %v6753_v11  ;;  %v6769_v10 = vadd.f32 1e-08, %v3331_v54 }
 0x5e7   : > { %3356 = vadd.xlane.f32.xlu2 %v8561_v60  ;;  %vm2664_vm6 = vcmp.eq.f32.partialorder %v2663_v6, 8.507059e+37 }
 0x5e8   : > { %vm3409_vm3 = vweird.f32 %v6769_v10 }
 0x5ea   : > { %v2609_v58 = vpop.xlane.xlu0 %2608  ;;  %2630 = vadd.xlane.f32.xlu1 %v8565_v32  ;;  %v3376_v32 = vsub.f32 1.0, %v3375_v44  ;;  %v8573_v44 = vmax.f32 %v6698_v62, 0.0 }
 0x5eb   : > { %v5202_v21 = vpop.eup %5201  ;;  %v6767_v60 = vadd.f32 1e-08, %v2609_v58  ;;  %v3398_v58 = vand.u32 2147483647, %v6701_v40 }
 0x5ec   : > { %v2655_v43 = vmul.f32 %v5202_v21, %v6742_v16  ;;  %vm2660_vm14 = vweird.f32 %v5202_v21  ;;  %v6790_v17 = vpop.eup %5203  ;;  %v3377_v40 = vmul.f32 %v6748_v8, %v3376_v32 }
 0x5ed   : > { %5205 = vrcp.f32 %v6767_v60  ;;  %3348 = vadd.xlane.f32.xlu0 %v8567_v57  ;;  %vm3399_vm15 = vcmp.eq.f32.partialorder %v3398_v58, 8.507059e+37  ;;  %vm6805_vm2 = vmor %vm2659_vm1, %vm2660_vm14  ;;  %v3383_v58 = vand.u32 2147483647, %v6722_v0  ;;  %vm2674_vm11 = vweird.f32 %v6767_v60 }
 0x5ee   : > { %v2656_v54 = vsub.f32 1.0, %v2655_v43  ;;  %5207 = vrcp.f32 %v6769_v10  ;;  %v2665_v43 = vand.u32 2147483648, %v6742_v16  ;;  %v3402_v61 = vsel %vm3399_vm15, %v3401_v45, %v3397_v28 }
 0x5ef   : > { %v3420_v16 = vmul.f32 %v6790_v17, %v6753_v11  ;;  %v3378_v28 = vadd.f32 %v6748_v8, %v3377_v40  ;;  %v3403_v63 = vmul.f32 %v3402_v61, %v3311_v14  ;;  %v2680_v40 = vand.u32 2147483648, %v6767_v60  ;;  %v6840_v14 = vpop.f32.mrf.mxu2 }
 0x5f0   : > { %v2657_v57 = vmul.f32 %v5202_v21, %v2656_v54  ;;  %v2666_v20 = vor.u32 1.1754944e-38, %v2665_v43  ;;  %8694 = vst [vmem:[#allocation19_spill] sm:$0xff] %v6840_v14  ;;  %vm3384_vm10 = vcmp.eq.f32.partialorder %v3383_v58, 8.507059e+37  ;;  %v8583_v7 = vmax.f32 %v6840_v14, 0.0 }
 0x5f1   : > { %v3421_v0 = vsub.f32 1.0, %v3420_v16  ;;  %v2681_v12 = vor.u32 1.1754944e-38, %v2680_v40  ;;  %v6857_v58 = vstv %s6751_s18  ;;  %vm3424_vm14 = vweird.f32 %v6753_v11 }
 0x5f2   : > { %v2658_v46 = vadd.f32 %v5202_v21, %v2657_v57  ;;  %3352 = vadd.xlane.f32.xlu1 %v8573_v44  ;;  %v2611_v3 = vpop.xlane.xlu1 %2610  ;;  %vm3425_vm15 = vweird.f32 %v6790_v17 }
 0x5f3   : > { %v5206_v54 = vpop.eup %5205  ;;  %v6809_v57 = vadd.f32 1e-08, %v2611_v3 }
 0x5f4   : > { %v2670_v44 = vmul.f32 %v5206_v54, %v6767_v60  ;;  %v2662_v45 = vsel %vm6805_vm2, %v5202_v21, %v2658_v46  ;;  %v6822_v3 = vpop.eup %5207  ;;  %v6827_v21 = vstv %s2912_s22  ;;  %v6831_v46 = vpop.f32.mrf.mxu0  ;;  %vm2675_vm9 = vweird.f32 %v5206_v54 }
 0x5f5   : > { %5209 = vrcp.f32 %v6809_v57  ;;  %3350 = vadd.xlane.f32.xlu0 %v8577_v37  ;;  %8691 = vst [vmem:[#allocation18_spill] sm:$0xff] %v6827_v21  ;;  %v2667_v43 = vsel %vm2664_vm6, %v2666_v20, %v2662_v45  ;;  %v8582_v37 = vmax.f32 %v6714_v19, 0.0  ;;  %v3382_v20 = vsel %vm6836_vm8, %v6748_v8, %v3378_v28  ;;  %vm2676_vm12 = vmor %vm2674_vm11, %vm2675_vm9 }
 0x5f6   : > { %v2671_v32 = vsub.f32 1.0, %v2670_v44  ;;  %v2678_v44 = vand.u32 2147483647, %v6767_v60  ;;  %v3405_v6 = vmul.f32 %v6822_v3, %v6769_v10  ;;  %v3386_v45 = vor.u32 1.1754944e-38, %v3385_v24  ;;  %vm6919_vm9 = vmor %vm3424_vm14, %vm3425_vm15 }
 0x5f7   : > { %vm2689_vm13 = vweird.f32 %v6809_v57  ;;  %vm3410_vm2 = vweird.f32 %v6822_v3 }
 0x5f8   : > { %v2672_v61 = vmul.f32 %v5206_v54, %v2671_v32  ;;  %v2668_v32 = vmul.f32 %v2667_v43, %v2590_v23  ;;  %v3387_v24 = vsel %vm3384_vm10, %v3386_v45, %v3382_v20  ;;  %vm2679_vm4 = vcmp.eq.f32.partialorder %v2678_v44, 8.507059e+37  ;;  %vm6906_vm7 = vmor %vm3409_vm3, %vm3410_vm2 }
 0x5f9   : > { %v3616_v43 = vmul.f32 %v6801_v18, %v3403_v63  ;;  %v8696_v63 = vmax.f32 %v6224_v29, 0.0 }
 0x5fa   : > { %v2673_v4 = vadd.f32 %v5206_v54, %v2672_v61  ;;  %v2613_v2 = vpop.xlane.xlu0 %2612  ;;  %3354 = vadd.xlane.f32.xlu1 %v8582_v37  ;;  %v3406_v61 = vsub.f32 1.0, %v3405_v6  ;;  %v8695_v37 = vmax.f32 %v6621_v36, 0.0  ;;  %v2895_v44 = vmul.f32 %v6857_v58, %v2668_v32 }
 0x5fb   : > { %v5210_v16 = vpop.eup %5209  ;;  %v6854_v8 = vadd.f32 1e-08, %v2613_v2  ;;  %v3634_v2 = vmul.f32 %v6792_v49, %v6224_v29  ;;  %v2915_v6 = vmul.f32 %v6827_v21, %v6621_v36  ;;  %v3388_v45 = vmul.f32 %v3387_v24, %v8696_v63 }
 0x5fc   : > { %v2685_v60 = vmul.f32 %v5210_v16, %v6809_v57  ;;  %v2677_v28 = vsel %vm2676_vm12, %v5206_v54, %v2673_v4  ;;  %v3635_v4 = vmul.f32 %v6792_v49, %v6232_v9  ;;  %v2914_v54 = vmul.f32 %v6827_v21, %v6616_v31  ;;  %v6884_v31 = vpop.f32.mrf.mxu0 }
 0x5fd   : > { %5211 = vrcp.f32 %v6854_v8  ;;  %2636 = vadd.xlane.f32.xlu0 %v8583_v7  ;;  %v2682_v23 = vsel %vm2679_vm4, %v2681_v12, %v2677_v28  ;;  %v3422_v12 = vmul.f32 %v6790_v17, %v3421_v0  ;;  %vm2690_vm5 = vweird.f32 %v5210_v16 }
 0x5fe   : > { %v2686_v40 = vsub.f32 1.0, %v2685_v60  ;;  %v2683_v20 = vmul.f32 %v2682_v23, %v8695_v37  ;;  %v3407_v37 = vmul.f32 %v6822_v3, %v3406_v61  ;;  %v2695_v9 = vand.u32 2147483648, %v6809_v57  ;;  %vm6892_vm1 = vmor %vm2689_vm13, %vm2690_vm5 }
 0x5ff   : > { %v6882_v32 = vadd.f32 %v3635_v4, %v3616_v43  ;;  %v2930_v36 = vadd.f32 %v2914_v54, %v2895_v44  ;;  %v2693_v24 = vand.u32 2147483647, %v6809_v57  ;;  %v3430_v61 = vand.u32 2147483648, %v6753_v11 }
 0x600   : > { %v2687_v60 = vmul.f32 %v5210_v16, %v2686_v40  ;;  %v2896_v28 = vmul.f32 %v6857_v58, %v2683_v20  ;;  %v3615_v40 = vmul.f32 %v6801_v18, %v3388_v45  ;;  %v3423_v20 = vadd.f32 %v6790_v17, %v3422_v12 }
 0x601   : > { %v3408_v54 = vadd.f32 %v6822_v3, %v3407_v37  ;;  %v2696_v63 = vor.u32 1.1754944e-38, %v2695_v9  ;;  %vm2694_vm6 = vcmp.eq.f32.partialorder %v2693_v24, 8.507059e+37  ;;  %v3413_v12 = vand.u32 2147483647, %v6769_v10 }
 0x602   : > { %v2931_v23 = vadd.f32 %v2915_v6, %v2896_v28  ;;  %v2688_v29 = vadd.f32 %v5210_v16, %v2687_v60  ;;  %v3415_v6 = vand.u32 2147483648, %v6769_v10  ;;  %v2946_v60 = vpack.c.bf16 %v2930_v36, %v2930_v36 }
 0x603   : > { %v5212_v0 = vpop.eup %5211  ;;  %v2710_v28 = vand.u32 2147483648, %v6854_v8  ;;  %v2708_v9 = vand.u32 2147483647, %v6854_v8  ;;  %v3428_v43 = vand.u32 2147483647, %v6753_v11  ;;  %v3412_v10 = vsel %vm6906_vm7, %v6822_v3, %v3408_v54 }
 0x604   : > { %v2700_v44 = vmul.f32 %v5212_v0, %v6854_v8  ;;  %v2947_v4 = vpack.c.bf16 %v2931_v23, %v2931_v23  ;;  %v2692_v57 = vsel %vm6892_vm1, %v5210_v16, %v2688_v29  ;;  %v3650_v23 = vadd.f32 %v3634_v2, %v3615_v40  ;;  %v6930_v54 = vpop.f32.mrf.mxu0 }
 0x605   : > { %v2697_v7 = vsel %vm2694_vm6, %v2696_v63, %v2692_v57  ;;  %vm2705_vm8 = vweird.f32 %v5212_v0  ;;  %v3416_v36 = vor.u32 1.1754944e-38, %v3415_v6  ;;  %vm2704_vm10 = vweird.f32 %v6854_v8  ;;  %8704 = vst [vmem:[#allocation20_spill] sm:$0xff] %v6930_v54 }
 0x606   : > { %v2701_v45 = vsub.f32 1.0, %v2700_v44  ;;  %v2979_v29 = vunpack.c.l.b16 %v2947_v4  ;;  %v3431_v44 = vor.u32 1.1754944e-38, %v3430_v61  ;;  %v2978_v40 = vunpack.c.l.b16 %v2946_v60  ;;  %vm2706_vm12 = vmor %vm2704_vm10, %vm2705_vm8 }
 0x607   : > { %v8703_v4 = vmax.f32 %v6626_v55, 0.0  ;;  %vm3414_vm11 = vcmp.eq.f32.partialorder %v3413_v12, 8.507059e+37  ;;  %v2711_v6 = vor.u32 1.1754944e-38, %v2710_v28  ;;  %v3666_v3 = vpack.c.bf16 %v3650_v23, %v3650_v23 }
 0x608   : > { %v2702_v37 = vmul.f32 %v5212_v0, %v2701_v45  ;;  %v3427_v11 = vsel %vm6919_vm9, %v6790_v17, %v3423_v20  ;;  %v2994_v63 = vpack.c.b16 %v2979_v29, %v2978_v40  ;;  %vm2709_vm4 = vcmp.eq.f32.partialorder %v2708_v9, 8.507059e+37 }
 0x609   : > { %v2698_v61 = vmul.f32 %v2697_v7, %v8703_v4  ;;  %v3417_v45 = vsel %vm3414_vm11, %v3416_v36, %v3412_v10  ;;  %vm3429_vm5 = vcmp.eq.f32.partialorder %v3428_v43, 8.507059e+37  ;;  %v3667_v7 = vpack.c.bf16 %v6882_v32, %v6882_v32  ;;  %v3731_v10 = vpop.permute.xlu2 %3730 }
 0x60a   : > { %v3011_v24 = vpop.permute.xlu1 %3010  ;;  %v2703_v57 = vadd.f32 %v5212_v0, %v2702_v37  ;;  %v8705_v28 = vmax.f32 %v6633_v35, 0.0  ;;  %v3432_v17 = vsel %vm3429_vm5, %v3431_v44, %v3427_v11  ;;  %v2363_v20 = vpack.c.bf16 %v6831_v46, %v6831_v46 }
 0x60b   : > { %3041 = vmatpush.bf16.msrb.mxu1 %v3011_v24  ;;  %v2897_v16 = vmul.f32 %v6857_v58, %v2698_v61  ;;  %v8706_v37 = vmax.f32 %v6394_v30, 0.0  ;;  %v2916_v9 = vmul.f32 %v6827_v21, %v6626_v55  ;;  %v2917_v32 = vmul.f32 %v6827_v21, %v6633_v35 }
 0x60c   : > { %v2707_v8 = vsel %vm2706_vm12, %v5212_v0, %v2703_v57  ;;  %v3698_v0 = vunpack.c.l.b16 %v3666_v3  ;;  %v2364_v36 = vpack.c.bf16 %v6884_v31, %v6884_v31  ;;  %v3699_v46 = vunpack.c.l.b16 %v3667_v7  ;;  %v6956_v57 = vpop.f32.mrf.mxu0 }
 0x60d   : > { %v3733_v60 = vpop.permute.xlu0 %3732  ;;  %v2712_v12 = vsel %vm2709_vm4, %v2711_v6, %v2707_v8  ;;  %v3418_v29 = vmul.f32 %v3417_v45, %v8706_v37  ;;  %v8707_v44 = vmax.f32 %v6408_v5, 0.0  ;;  %v2932_v24 = vadd.f32 %v2916_v9, %v2897_v16  ;;  %8708 = vst [vmem:[#allocation21_spill] sm:$0xff] %v6956_v57 }
 0x60e   : > { %3042 = vmatmul.bf16.vlgmr.msrb.gmra.mxu1 %v2994_v63  ;;  %3760 = vmatpush.bf16.msra.mxu0 %v3733_v60  ;;  %v2713_v23 = vmul.f32 %v2712_v12, %v8705_v28  ;;  %v3714_v55 = vpack.c.b16 %v3699_v46, %v3698_v0  ;;  %v3636_v31 = vmul.f32 %v6792_v49, %v6394_v30 }
 0x60f   : > { %v3433_v2 = vmul.f32 %v3432_v17, %v8707_v44  ;;  %v3617_v35 = vmul.f32 %v6801_v18, %v3418_v29  ;;  %v2948_v6 = vpack.c.bf16 %v2932_v24, %v2932_v24  ;;  %v3637_v3 = vmul.f32 %v6792_v49, %v6408_v5 }
 0x610   : > { %v2898_v43 = vmul.f32 %v6857_v58, %v2713_v23  ;;  %v7167_v57 = vmul.f32 %v6827_v21, %v6684_v59 }
 0x611   : > { %2395 = vrot.lane.b32.xlu0 %v2363_v20, %s5366_s23  ;;  %v3618_v61 = vmul.f32 %v6801_v18, %v3433_v2  ;;  %v3652_v11 = vadd.f32 %v3636_v31, %v3617_v35  ;;  %v3335_v45 = vpop.xlane.xlu2 %3334  ;;  %v2980_v60 = vunpack.c.l.b16 %v2948_v6 }
 0x612   : > { %3761 = vmatpush.bf16.msra.mxu0 %v3731_v10  ;;  %v2933_v40 = vadd.f32 %v2917_v32, %v2898_v43  ;;  %v3362_v16 = vadd.f32 1e-08, %v3335_v45  ;;  %8735 = vst [vmem:[#allocation36_spill] sm:$0xff] %v7167_v57 }
 0x613   : > { %2397 = vrot.lane.b32.xlu1 %v2364_v36, %s5366_s23  ;;  %v3653_v8 = vadd.f32 %v3637_v3, %v3618_v61  ;;  %v3668_v7 = vpack.c.bf16 %v3652_v11, %v3652_v11 }
 0x614   : > { %v2949_v4 = vpack.c.bf16 %v2933_v40, %v2933_v40  ;;  %v6960_v23 = vpop.f32.mrf.mxu0  ;;  %5213 = vrcp.f32 %v3362_v16  ;;  %v3445_v3 = vand.u32 2147483648, %v3362_v16  ;;  %vm3439_vm14 = vweird.f32 %v3362_v16 }
 0x615   : > { %3762 = vmatmul.bf16.vlgmr.msra.gmra.mxu0 %v3714_v55  ;;  %v3669_v28 = vpack.c.bf16 %v3653_v8, %v3653_v8  ;;  %8709 = vst [vmem:[#allocation22_spill] sm:$0xff] %v6960_v23  ;;  %v3700_v30 = vunpack.c.l.b16 %v3668_v7  ;;  %v3443_v11 = vand.u32 2147483647, %v3362_v16 }
 0x616   : > { %v2981_v63 = vunpack.c.l.b16 %v2949_v4 }
 0x617   : > { %v3701_v17 = vunpack.c.l.b16 %v3669_v28  ;;  %v3638_v28 = vmul.f32 %v6792_v49, %v6597_v38  ;;  %vm3444_vm1 = vcmp.eq.f32.partialorder %v3443_v11, 8.507059e+37 }
 0x618   : > { %v2995_v12 = vpack.c.b16 %v2981_v63, %v2980_v60 }
 0x619   : > { %v3715_v0 = vpack.c.b16 %v3701_v17, %v3700_v30  ;;  %v3446_v30 = vor.u32 1.1754944e-38, %v3445_v3  ;;  %v7001_v17 = vmul.f32 %v6792_v49, %v6640_v13 }
 0x61a   : > { %v2621_v20 = vpop.xlane.xlu2 %2620  ;;  %v5214_v29 = vpop.eup %5213 }
 0x61b   : > { %v6962_v37 = vadd.f32 1e-08, %v2621_v20  ;;  %v3435_v32 = vmul.f32 %v5214_v29, %v3362_v16  ;;  %vm3440_vm13 = vweird.f32 %v5214_v29  ;;  %v6997_v16 = vmul.f32 %v6792_v49, %v6631_v33 }
 0x61c   : > { %v6964_v5 = vpop.f32.mrf.mxu0  ;;  %vm3441_vm15 = vmor %vm3439_vm14, %vm3440_vm13 }
 0x61d   : > { %8710 = vst [vmem:[#allocation23_spill] sm:$0xff] %v6964_v5  ;;  %5215 = vrcp.f32 %v6962_v37  ;;  %v3436_v10 = vsub.f32 1.0, %v3435_v32  ;;  %vm2764_vm3 = vweird.f32 %v6962_v37  ;;  %v2768_v11 = vand.u32 2147483647, %v6962_v37 }
 0x61e   : > { %3047 = vmatmul.bf16.gmra.mxu1 %v2995_v12 }
 0x61f   : > { %v3437_v2 = vmul.f32 %v5214_v29, %v3436_v10  ;;  %vm2769_vm7 = vcmp.eq.f32.partialorder %v2768_v11, 8.507059e+37  ;;  %v7085_v11 = vmul.f32 %v6827_v21, %v6650_v47 }
 0x621   : > { %v3438_v61 = vadd.f32 %v5214_v29, %v3437_v2  ;;  %v7015_v2 = vmul.f32 %v6792_v49, %v6652_v48 }
 0x622   : > { %v2623_v9 = vpop.xlane.xlu2 %2622 }
 0x623   : > { %v6967_v43 = vadd.f32 1e-08, %v2623_v9  ;;  %v6969_v36 = vpop.eup %5215  ;;  %v3442_v7 = vsel %vm3441_vm15, %v5214_v29, %v3438_v61  ;;  %8713 = vst [vmem:[#allocation26_spill] sm:$0xff] %v7015_v2 }
 0x624   : > { %v6971_v46 = vpop.f32.mrf.mxu0  ;;  %v2760_v44 = vmul.f32 %v6969_v36, %v6962_v37  ;;  %v3447_v9 = vsel %vm3444_vm1, %v3446_v30, %v3442_v7  ;;  %vm2765_vm2 = vweird.f32 %v6969_v36  ;;  %v7032_v7 = vmul.f32 %v6792_v49, %v6666_v34 }
 0x625   : > { %3767 = vmatmul.bf16.gmra.mxu0 %v3715_v0  ;;  %8711 = vst [vmem:[#allocation24_spill] sm:$0xff] %v6971_v46  ;;  %5217 = vrcp.f32 %v6967_v43  ;;  %v8716_v30 = vmax.f32 %v6597_v38, 0.0  ;;  %vm7038_vm6 = vmor %vm2764_vm3, %vm2765_vm2  ;;  %v7052_v38 = vmul.f32 %v6792_v49, %v6673_v52  ;;  %v2785_v26 = vand.u32 2147483648, %v6967_v43 }
 0x626   : > { %v2761_v35 = vsub.f32 1.0, %v2760_v44  ;;  %v7011_v44 = vmul.f32 %v6792_v49, %v6644_v1  ;;  %8715 = vst [vmem:[#allocation28_spill] sm:$0xff] %v7032_v7  ;;  %vm2779_vm10 = vweird.f32 %v6967_v43 }
 0x627   : > { %8720 = vst [vmem:[#allocation30_spill] sm:$0xff] %v7052_v38 }
 0x628   : > { %v2762_v8 = vmul.f32 %v6969_v36, %v2761_v35 }
 0x62a   : > { %v3345_v55 = vpop.xlane.xlu2 %3344  ;;  %v2763_v32 = vadd.f32 %v6969_v36, %v2762_v8  ;;  %v7026_v8 = vmul.f32 %v6792_v49, %v6659_v41 }
 0x62b   : > { %v6979_v31 = vpop.eup %5217  ;;  %v7019_v61 = vadd.f32 1e-08, %v3345_v55  ;;  %v3448_v55 = vmul.f32 %v3447_v9, %v8716_v30  ;;  %v7056_v9 = vmul.f32 %v6792_v49, %v6688_v22 }
 0x62c   : > { %v6984_v63 = vpop.f32.mrf.mxu0  ;;  %v2775_v45 = vmul.f32 %v6979_v31, %v6967_v43  ;;  %8714 = vst [vmem:[#allocation27_spill] sm:$0xff] %v7026_v8  ;;  %v2767_v51 = vsel %vm7038_vm6, %v6969_v36, %v2763_v32  ;;  %v7067_v36 = vmul.f32 %v6827_v21, %v6638_v25  ;;  %v7072_v32 = vmul.f32 %v6827_v21, %v6642_v56 }
 0x62d   : > { %8712 = vst [vmem:[#allocation25_spill] sm:$0xff] %v6984_v63  ;;  %vm2780_vm8 = vweird.f32 %v6979_v31  ;;  %v3520_v54 = vand.u32 2147483648, %v7019_v61  ;;  %vm3514_vm3 = vweird.f32 %v7019_v61 }
 0x62e   : > { %v2776_v0 = vsub.f32 1.0, %v2775_v45  ;;  %8721 = vst [vmem:[#allocation31_spill] sm:$0xff] %v7056_v9  ;;  %vm7097_vm11 = vmor %vm2779_vm10, %vm2780_vm8 }
 0x630   : > { %v2777_v63 = vmul.f32 %v6979_v31, %v2776_v0  ;;  %v7063_v0 = vmul.f32 %v6792_v49, %v6698_v62  ;;  %v7171_v62 = vmul.f32 %v6827_v21, %v6694_v50 }
 0x632   : > { %v3347_v35 = vpop.xlane.xlu2 %3346  ;;  %8722 = vst [vmem:[#allocation32_spill] sm:$0xff] %v7063_v0 }
 0x633   : > { %v7045_v46 = vadd.f32 1e-08, %v3347_v35  ;;  %8736 = vst [vmem:[#allocation37_spill] sm:$0xff] %v7171_v62 }
 0x635   : > { %v2617_v24 = vpop.xlane.xlu1 %2616 }
 0x636   : > { %v6976_v40 = vadd.f32 1e-08, %v2617_v24  ;;  %v2770_v24 = vand.u32 2147483648, %v6962_v37  ;;  %v7042_v37 = vpop.f32.mrf.mxu0 }
 0x637   : > { %8719 = vst [vmem:[#allocation29_spill] sm:$0xff] %v7042_v37 }
 0x638   : > { %5219 = vrcp.f32 %v6976_v40  ;;  %v2615_v4 = vpop.xlane.xlu0 %2614  ;;  %v2771_v30 = vor.u32 1.1754944e-38, %v2770_v24  ;;  %v3619_v24 = vmul.f32 %v6801_v18, %v3448_v55  ;;  %vm2734_vm12 = vweird.f32 %v6976_v40 }
 0x639   : > { %v6981_v6 = vadd.f32 1e-08, %v2615_v4  ;;  %v2738_v55 = vand.u32 2147483647, %v6976_v40 }
 0x63a   : > { %v2772_v35 = vsel %vm2769_vm7, %v2771_v30, %v2767_v51  ;;  %v2921_v51 = vmul.f32 %v6827_v21, %v6654_v27  ;;  %v8725_v30 = vmax.f32 %v6654_v27, 0.0 }
 0x63b   : > { %5221 = vrcp.f32 %v6981_v6  ;;  %v2725_v27 = vand.u32 2147483648, %v6981_v6  ;;  %vm2719_vm14 = vweird.f32 %v6981_v6  ;;  %vm2739_vm1 = vcmp.eq.f32.partialorder %v2738_v55, 8.507059e+37 }
 0x63c   : > { %5223 = vrcp.f32 %v7019_v61  ;;  %v2773_v14 = vmul.f32 %v2772_v35, %v8725_v30 }
 0x63d   : > { %v6989_v60 = vpop.xlane.xlu1 %2618  ;;  %5225 = vrcp.f32 %v7045_v46 }
 0x63e   : > { %v6991_v12 = vpop.eup %5219  ;;  %v7126_v0 = vpop.f32.mrf.mxu0 }
 0x63f   : > { %v2730_v20 = vmul.f32 %v6991_v12, %v6976_v40  ;;  %vm2735_vm9 = vweird.f32 %v6991_v12  ;;  %8728 = vst [vmem:[#allocation33_spill] sm:$0xff] %v7126_v0  ;;  %v2726_v0 = vor.u32 1.1754944e-38, %v2725_v27 }
 0x640   : > { %v3337_v29 = vpop.xlane.xlu0 %3336  ;;  %vm7110_vm5 = vmor %vm2734_vm12, %vm2735_vm9 }
 0x641   : > { %v7007_v10 = vpop.eup %5221  ;;  %v2731_v4 = vsub.f32 1.0, %v2730_v20  ;;  %v7079_v20 = vadd.f32 1e-08, %v3337_v29  ;;  %v2740_v29 = vand.u32 2147483648, %v6976_v40 }
 0x642   : > { %v2715_v3 = vmul.f32 %v7007_v10, %v6981_v6  ;;  %v7105_v5 = vpop.eup %5223  ;;  %vm2720_vm4 = vweird.f32 %v7007_v10 }
 0x643   : > { %v2732_v37 = vmul.f32 %v6991_v12, %v2731_v4  ;;  %v2778_v4 = vadd.f32 %v6979_v31, %v2777_v63  ;;  %v2783_v63 = vand.u32 2147483647, %v6967_v43  ;;  %5227 = vrcp.f32 %v7079_v20  ;;  %v7124_v30 = vpop.eup %5225  ;;  %vm7136_vm15 = vmor %vm2719_vm14, %vm2720_vm4 }
 0x644   : > { %v2716_v45 = vsub.f32 1.0, %v2715_v3  ;;  %v2741_v9 = vor.u32 1.1754944e-38, %v2740_v29  ;;  %v2902_v29 = vmul.f32 %v6857_v58, %v2773_v14  ;;  %vm3515_vm6 = vweird.f32 %v7105_v5 }
 0x645   : > { %v7059_v19 = vpop.xlane.xlu1 %3340  ;;  %v2733_v23 = vadd.f32 %v6991_v12, %v2732_v37  ;;  %v3654_v37 = vadd.f32 %v3638_v28, %v3619_v24  ;;  %v2782_v40 = vsel %vm7097_vm11, %v6979_v31, %v2778_v4  ;;  %v2786_v28 = vor.u32 1.1754944e-38, %v2785_v26  ;;  %vm7241_vm8 = vmor %vm3514_vm3, %vm3515_vm6 }
 0x646   : > { %v2717_v3 = vmul.f32 %v7007_v10, %v2716_v45  ;;  %v7119_v24 = vadd.f32 1e-08, %v6989_v60  ;;  %vm2784_vm13 = vcmp.eq.f32.partialorder %v2783_v63, 8.507059e+37  ;;  %v2723_v26 = vand.u32 2147483647, %v6981_v6  ;;  %v7197_v22 = vpop.f32.mrf.mxu0 }
 0x647   : > { %v2922_v31 = vmul.f32 %v6827_v21, %v6661_v15  ;;  %v3510_v60 = vmul.f32 %v7105_v5, %v7019_v61  ;;  %v3525_v45 = vmul.f32 %v7124_v30, %v7045_v46  ;;  %v3670_v55 = vpack.c.bf16 %v3654_v37, %v3654_v37  ;;  %8739 = vst [vmem:[#allocation39_spill] sm:$0xff] %v7197_v22 }
 0x648   : > { %v7081_v49 = vpop.xlane.xlu0 %3338  ;;  %v2718_v43 = vadd.f32 %v7007_v10, %v2717_v3  ;;  %v2737_v3 = vsel %vm7110_vm5, %v6991_v12, %v2733_v23  ;;  %v2787_v23 = vsel %vm2784_vm13, %v2786_v28, %v2782_v40  ;;  %v7142_v12 = vmul.f32 %v6827_v21, %v6668_v53 }
 0x649   : > { %v2742_v63 = vsel %vm2739_vm1, %v2741_v9, %v2737_v3  ;;  %5229 = vrcp.f32 %v7119_v24  ;;  %v7151_v40 = vpop.eup %5227  ;;  %v7155_v28 = vmul.f32 %v6827_v21, %v6675_v39  ;;  %vm2724_vm2 = vcmp.eq.f32.partialorder %v2723_v26, 8.507059e+37 }
 0x64a   : > { %8731 = vst [vmem:[#allocation34_spill] sm:$0xff] %v7142_v12  ;;  %v2722_v6 = vsel %vm7136_vm15, %v7007_v10, %v2718_v43  ;;  %v8733_v10 = vmax.f32 %v6661_v15, 0.0  ;;  %v3511_v14 = vsub.f32 1.0, %v3510_v60  ;;  %v7161_v43 = vadd.f32 1e-08, %v7059_v19 }
 0x64b   : > { %8732 = vst [vmem:[#allocation35_spill] sm:$0xff] %v7155_v28  ;;  %v2727_v27 = vsel %vm2724_vm2, %v2726_v0, %v2722_v6  ;;  %v8734_v3 = vmax.f32 %v6642_v56, 0.0  ;;  %v7175_v15 = vmul.f32 %v6827_v21, %v6706_v42  ;;  %v2937_v26 = vadd.f32 %v2921_v51, %v2902_v29  ;;  %v2633_v0 = vpop.xlane.xlu2 %2632 }
 0x64c   : > { %v2788_v9 = vmul.f32 %v2787_v23, %v8733_v10  ;;  %v3526_v60 = vsub.f32 1.0, %v3525_v45  ;;  %v3535_v19 = vand.u32 2147483648, %v7045_v46  ;;  %v3450_v56 = vmul.f32 %v7151_v40, %v7079_v20 }
 0x64d   : > { %v3343_v35 = vpop.xlane.xlu1 %3342  ;;  %v2743_v37 = vmul.f32 %v2742_v63, %v8734_v3  ;;  %8737 = vst [vmem:[#allocation38_spill] sm:$0xff] %v7175_v15  ;;  %v7180_v23 = vunpack.c.l.b16 %v3670_v55  ;;  %v3518_v6 = vand.u32 2147483647, %v7019_v61  ;;  %v7185_v63 = vadd.f32 1e-08, %v7081_v49 }
 0x64e   : > { %v8738_v3 = vmax.f32 %v6638_v25, 0.0  ;;  %v2903_v29 = vmul.f32 %v6857_v58, %v2788_v9  ;;  %v3512_v21 = vmul.f32 %v7105_v5, %v3511_v14  ;;  %v7193_v15 = vor.u32 1.1754944e-38, %v3520_v54  ;;  %v7266_v50 = vpop.f32.mrf.mxu0 }
 0x64f   : > { %v7190_v45 = vpop.eup %5229  ;;  %5231 = vrcp.f32 %v7161_v43  ;;  %v2900_v55 = vmul.f32 %v6857_v58, %v2743_v37  ;;  %v7201_v25 = vadd.f32 1e-08, %v2633_v0  ;;  %v2953_v9 = vpack.c.bf16 %v2937_v26, %v2937_v26  ;;  %8748 = vst [vmem:[#allocation42_spill] sm:$0xff] %v7266_v50 }
 0x650   : > { %v2625_v4 = vpop.xlane.xlu0 %2624  ;;  %v2728_v51 = vmul.f32 %v2727_v27, %v8738_v3  ;;  %v3527_v3 = vmul.f32 %v7124_v30, %v3526_v60  ;;  %v7204_v62 = vor.u32 1.1754944e-38, %v3535_v19  ;;  %v3451_v54 = vsub.f32 1.0, %v3450_v56 }
 0x651   : > { %v7206_v14 = vadd.f32 1e-08, %v3343_v35  ;;  %v2745_v37 = vmul.f32 %v7190_v45, %v7119_v24  ;;  %5233 = vrcp.f32 %v7185_v63  ;;  %v2938_v42 = vadd.f32 %v2922_v31, %v2903_v29 }
 0x652   : > { %8740 = vst [vmem:[#allocation40_spill] sm:$0xff] %v7204_v62  ;;  %v2899_v22 = vmul.f32 %v6857_v58, %v2728_v51  ;;  %v3513_v0 = vadd.f32 %v7105_v5, %v3512_v21  ;;  %v2755_v49 = vand.u32 2147483648, %v7119_v24  ;;  %v7214_v26 = vadd.f32 1e-08, %v2625_v4 }
 0x653   : > { %v2935_v60 = vadd.f32 %v7072_v32, %v2900_v55  ;;  %v3458_v19 = vand.u32 2147483647, %v7079_v20  ;;  %5235 = vrcp.f32 %v7201_v25  ;;  %v2753_v35 = vand.u32 2147483647, %v7119_v24 }
 0x654   : > { %v7220_v56 = vunpack.c.l.b16 %v2953_v9  ;;  %vm7224_vm7 = vcmp.eq.f32.partialorder %v3518_v6, 8.507059e+37  ;;  %v7229_v21 = vadd.f32 %v7124_v30, %v3527_v3  ;;  %v3452_v4 = vmul.f32 %v7151_v40, %v3451_v54 }
 0x655   : > { %v2629_v10 = vpop.xlane.xlu1 %2628  ;;  %v7222_v38 = vpop.eup %5231  ;;  %v3460_v32 = vand.u32 2147483648, %v7079_v20  ;;  %5237 = vrcp.f32 %v7206_v14  ;;  %v2746_v51 = vsub.f32 1.0, %v2745_v37  ;;  %v2934_v55 = vadd.f32 %v7067_v36, %v2899_v22 }
 0x656   : > { %8743 = vst [vmem:[#allocation41_spill] sm:$0xff] %v7229_v21  ;;  %v7234_v29 = vadd.f32 1e-08, %v2629_v10  ;;  %v2954_v9 = vpack.c.bf16 %v2938_v42, %v2938_v42  ;;  %v7245_v3 = vor.u32 1.1754944e-38, %v2755_v49  ;;  %vm3454_vm9 = vweird.f32 %v7079_v20 }
 0x657   : > { %5239 = vrcp.f32 %v7214_v26  ;;  %v2951_v54 = vpack.c.bf16 %v2935_v60, %v2935_v60  ;;  %v7249_v10 = vpop.eup %5233  ;;  %vm7251_vm10 = vcmp.eq.f32.partialorder %v3458_v19, 8.507059e+37  ;;  %v3480_v42 = vmul.f32 %v7222_v38, %v7161_v43 }
 0x658   : > { %v2627_v27 = vpop.xlane.xlu0 %2626  ;;  %v3517_v49 = vsel %vm7241_vm8, %v7105_v5, %v3513_v0  ;;  %v3453_v37 = vadd.f32 %v7151_v40, %v3452_v4  ;;  %vm3455_vm11 = vweird.f32 %v7151_v40  ;;  %v3461_v60 = vor.u32 1.1754944e-38, %v3460_v32 }
 0x659   : > { %v7257_v61 = vadd.f32 1e-08, %v2627_v27  ;;  %v2950_v7 = vpack.c.bf16 %v2934_v55, %v2934_v55  ;;  %v7264_v19 = vpop.eup %5235  ;;  %v2747_v57 = vmul.f32 %v7190_v45, %v2746_v51  ;;  %vm2749_vm12 = vweird.f32 %v7119_v24  ;;  %vm7283_vm4 = vmor %vm3454_vm9, %vm3455_vm11 }
 0x65a   : > { %v3490_v27 = vand.u32 2147483648, %v7161_v43  ;;  %5241 = vrcp.f32 %v7234_v29  ;;  %v7272_v5 = vunpack.c.l.b16 %v2954_v9  ;;  %v3465_v4 = vmul.f32 %v7249_v10, %v7185_v63 }
 0x65b   : > { %v7274_v0 = vpop.eup %5237  ;;  %v3475_v32 = vand.u32 2147483648, %v7185_v63  ;;  %v2982_v55 = vunpack.c.l.b16 %v2950_v7  ;;  %v2983_v50 = vunpack.c.l.b16 %v2951_v54  ;;  %v3481_v52 = vsub.f32 1.0, %v3480_v42 }
 0x65c   : > { %8749 = vst [vmem:[#allocation43_spill] sm:$0xff] %v7272_v5  ;;  %v2860_v9 = vand.u32 2147483648, %v7201_v25  ;;  %5243 = vrcp.f32 %v7257_v61  ;;  %vm2750_vm5 = vweird.f32 %v7190_v45  ;;  %v2850_v7 = vmul.f32 %v7264_v19, %v7201_v25 }
 0x65d   : > { %v2631_v36 = vpop.xlane.xlu1 %2630  ;;  %v7290_v28 = vpop.eup %5239  ;;  %v2996_v54 = vpack.c.b16 %v2983_v50, %v2982_v55  ;;  %v3457_v20 = vsel %vm7283_vm4, %v7151_v40, %v3453_v37  ;;  %v7300_v34 = vor.u32 1.1754944e-38, %v3490_v27  ;;  %v3495_v59 = vmul.f32 %v7274_v0, %v7206_v14  ;;  %vm7346_vm15 = vmor %vm2749_vm12, %vm2750_vm5 }
 0x65e   : > { %v7294_v5 = vadd.f32 1e-08, %v2631_v36  ;;  %v7307_v8 = vsel %vm7224_vm7, %v7193_v15, %v3517_v49  ;;  %v3466_v62 = vsub.f32 1.0, %v3465_v4  ;;  %v3473_v50 = vand.u32 2147483647, %v7185_v63 }
 0x65f   : > { %v7310_v36 = vor.u32 1.1754944e-38, %v3475_v32  ;;  %3052 = vmatmul.bf16.gmra.mxu1 %v2996_v54  ;;  %v2748_v40 = vadd.f32 %v7190_v45, %v2747_v57  ;;  %vm7313_vm13 = vcmp.eq.f32.partialorder %v2753_v35, 8.507059e+37  ;;  %v2790_v15 = vmul.f32 %v7290_v28, %v7214_v26  ;;  %v2635_v35 = vpop.xlane.xlu2 %2634 }
 0x660   : > { %v3349_v6 = vpop.xlane.xlu0 %3348  ;;  %v7317_v27 = vpop.eup %5241  ;;  %v3462_v49 = vsel %vm7251_vm10, %v3461_v60, %v3457_v20  ;;  %v3482_v4 = vmul.f32 %v7222_v38, %v3481_v52  ;;  %v2851_v32 = vsub.f32 1.0, %v2850_v7  ;;  %v7327_v57 = vor.u32 1.1754944e-38, %v2860_v9 }
 0x661   : > { %v7322_v31 = vadd.f32 1e-08, %v3349_v6  ;;  %5245 = vrcp.f32 %v7294_v5  ;;  %v3496_v54 = vsub.f32 1.0, %v3495_v59  ;;  %v3505_v42 = vand.u32 2147483648, %v7206_v14  ;;  %v7350_v20 = vpop.f32.mrf.mxu0 }
 0x662   : > { %8754 = vst [vmem:[#allocation44_spill] sm:$0xff] %v7327_v57  ;;  %v7330_v51 = vpop.eup %5243  ;;  %v2800_v6 = vand.u32 2147483648, %v7214_v26  ;;  %v3467_v22 = vmul.f32 %v7249_v10, %v3466_v62  ;;  %vm3470_vm14 = vweird.f32 %v7249_v10  ;;  %v2798_v52 = vand.u32 2147483647, %v7214_v26 }
 0x663   : > { %v2820_v60 = vmul.f32 %v7317_v27, %v7234_v29  ;;  %v8755_v9 = vmax.f32 %v6631_v33, 0.0  ;;  %8758 = vst [vmem:[#allocation45_spill] sm:$0xff] %v7350_v20  ;;  %vm3485_vm1 = vweird.f32 %v7222_v38  ;;  %v2791_v62 = vsub.f32 1.0, %v2790_v15 }
 0x664   : > { %v7353_v55 = vadd.f32 1e-08, %v2635_v35  ;;  %5247 = vrcp.f32 %v7322_v31  ;;  %v2752_v33 = vsel %vm7346_vm15, %v7190_v45, %v2748_v40  ;;  %vm3469_vm2 = vweird.f32 %v7185_v63 }
 0x665   : > { %v3353_v39 = vpop.xlane.xlu1 %3352  ;;  %v3463_v7 = vmul.f32 %v3462_v49, %v8755_v9  ;;  %v2852_v24 = vmul.f32 %v7264_v19, %v2851_v32  ;;  %v2805_v49 = vmul.f32 %v7330_v51, %v7257_v61  ;;  %v7367_v15 = vadd.f32 %v7222_v38, %v3482_v4  ;;  %vm7439_vm11 = vmor %vm3469_vm2, %vm3470_vm14 }
 0x666   : > { %8759 = vst [vmem:[#allocation46_spill] sm:$0xff] %v7353_v55  ;;  %v7364_v20 = vadd.f32 1e-08, %v3353_v39  ;;  %vm3484_vm3 = vweird.f32 %v7161_v43  ;;  %v3497_v35 = vmul.f32 %v7274_v0, %v3496_v54  ;;  %v7371_v59 = vor.u32 1.1754944e-38, %v3505_v42 }
 0x667   : > { %v3620_v9 = vmul.f32 %v6801_v18, %v3463_v7  ;;  %v7373_v45 = vor.u32 1.1754944e-38, %v2800_v6  ;;  %v7375_v40 = vpop.eup %5245  ;;  %v7378_v32 = vadd.f32 %v7249_v10, %v3467_v22  ;;  %v2821_v2 = vsub.f32 1.0, %v2820_v60 }
 0x668   : > { %v3351_v57 = vpop.xlane.xlu0 %3350  ;;  %v2792_v4 = vmul.f32 %v7290_v28, %v2791_v62  ;;  %5249 = vrcp.f32 %v7353_v55  ;;  %v2830_v54 = vand.u32 2147483648, %v7234_v29  ;;  %v2757_v42 = vsel %vm7313_vm13, %v7245_v3, %v2752_v33  ;;  %vm7460_vm13 = vmor %vm3484_vm3, %vm3485_vm1 }
 0x669   : > { %v3655_v39 = vadd.f32 %v6997_v16, %v3620_v9  ;;  %v7381_v7 = vadd.f32 1e-08, %v3351_v57  ;;  %vm7389_vm6 = vcmp.eq.f32.partialorder %v3473_v50, 8.507059e+37  ;;  %v7394_v22 = vadd.f32 %v7264_v19, %v2852_v24  ;;  %v3357_v9 = vpop.xlane.xlu2 %3356 }
 0x66a   : > { %vm2795_vm7 = vweird.f32 %v7290_v28  ;;  %v2806_v16 = vsub.f32 1.0, %v2805_v49  ;;  %5251 = vrcp.f32 %v7364_v20  ;;  %v7398_v60 = vpop.eup %5247  ;;  %v8763_v62 = vand.u32 2147483647, %v7161_v43 }
 0x66b   : > { %8762 = vst [vmem:[#allocation47_spill] sm:$0xff] %v7394_v22  ;;  %v3671_v57 = vpack.c.bf16 %v3655_v39, %v3655_v39  ;;  %v7407_v3 = vadd.f32 %v7274_v0, %v3497_v35  ;;  %v2815_v33 = vand.u32 2147483648, %v7257_v61  ;;  %v2835_v24 = vmul.f32 %v7375_v40, %v7294_v5 }
 0x66c   : > { %vm7402_vm8 = vcmp.eq.f32.partialorder %v8763_v62, 8.507059e+37  ;;  %vm2794_vm9 = vweird.f32 %v7214_v26  ;;  %v2822_v49 = vmul.f32 %v7317_v27, %v2821_v2  ;;  %5253 = vrcp.f32 %v7381_v7 }
 0x66d   : > { %v3703_v39 = vunpack.c.l.b16 %v3671_v57  ;;  %v8766_v62 = vmax.f32 %v6650_v47, 0.0  ;;  %vm3500_vm10 = vweird.f32 %v7274_v0  ;;  %v7420_v35 = vadd.f32 %v7290_v28, %v2792_v4 }
 0x66e   : > { %v7422_v50 = vor.u32 1.1754944e-38, %v2830_v54  ;;  %v2813_v22 = vand.u32 2147483647, %v7257_v61  ;;  %v2845_v21 = vand.u32 2147483648, %v7294_v5  ;;  %v2807_v2 = vmul.f32 %v7330_v51, %v2806_v16  ;;  %v8840_v54 = vld [vmem:[#allocation36_spill] sm:$0xff] }
 0x66f   : > { %v2758_v55 = vmul.f32 %v2757_v42, %v8766_v62  ;;  %v3540_v57 = vmul.f32 %v7398_v60, %v7322_v31  ;;  %v3550_v12 = vand.u32 2147483648, %v7322_v31  ;;  %v3716_v47 = vpack.c.b16 %v3703_v39, %v7180_v23  ;;  %v7431_v42 = vpop.eup %5249  ;;  %v7433_v62 = vpop.f32.mrf.mxu0 }
 0x670   : > { %8767 = vst [vmem:[#allocation48_spill] sm:$0xff] %v7431_v42  ;;  %vm3499_vm12 = vweird.f32 %v7206_v14  ;;  %vm7444_vm4 = vcmp.eq.f32.partialorder %v2798_v52, 8.507059e+37  ;;  %v7448_v16 = vor.u32 1.1754944e-38, %v2815_v33  ;;  %v7450_v23 = vadd.f32 1e-08, %v3357_v9  ;;  %v7453_v42 = vpop.eup %5251  ;;  %v2637_v63 = vpop.xlane.xlu0 %2636 }
 0x671   : > { %8768 = vst [vmem:[#allocation49_spill] sm:$0xff] %v7433_v62  ;;  %v2836_v39 = vsub.f32 1.0, %v2835_v24  ;;  %v2901_v62 = vmul.f32 %v6857_v58, %v2758_v55  ;;  %vm3530_vm5 = vweird.f32 %v7124_v30  ;;  %v7465_v52 = vadd.f32 %v7317_v27, %v2822_v49  ;;  %3772 = vmatmul.bf16.gmra.mxu0 %v3716_v47 }
 0x672   : > { %8773 = vst [vmem:[#allocation50_spill] sm:$0xff] %v7450_v23  ;;  %v3580_v55 = vand.u32 2147483648, %v7364_v20  ;;  %v3472_v24 = vsel %vm7439_vm11, %v7249_v10, %v7378_v32  ;;  %v8776_v9 = vand.u32 2147483647, %v7206_v14  ;;  %vm2825_vm15 = vweird.f32 %v7317_v27  ;;  %v7488_v10 = vpop.eup %5253 }
 0x673   : > { %v7480_v49 = vor.u32 1.1754944e-38, %v2845_v21  ;;  %v3548_v33 = vand.u32 2147483647, %v7322_v31  ;;  %v2936_v47 = vadd.f32 %v7085_v11, %v2901_v62  ;;  %v3487_v4 = vsel %vm7460_vm13, %v7222_v38, %v7367_v15  ;;  %v3355_v62 = vpop.xlane.xlu1 %3354  ;;  %vm7518_vm13 = vmor %vm2794_vm9, %vm2795_vm7 }
 0x674   : > { %vm7475_vm14 = vcmp.eq.f32.partialorder %v8776_v9, 8.507059e+37  ;;  %vm3529_vm1 = vweird.f32 %v7045_v46  ;;  %v7492_v32 = vadd.f32 %v7330_v51, %v2807_v2  ;;  %vm2810_vm2 = vweird.f32 %v7330_v51 }
 0x675   : > { %8779 = vst [vmem:[#allocation51_spill] sm:$0xff] %v7480_v49  ;;  %v3541_v21 = vsub.f32 1.0, %v3540_v57  ;;  %v7495_v9 = vor.u32 1.1754944e-38, %v3550_v12  ;;  %vm2824_vm3 = vweird.f32 %v7234_v29  ;;  %v2837_v11 = vmul.f32 %v7375_v40, %v2836_v39 }
 0x676   : > { %v3570_v38 = vmul.f32 %v7453_v42, %v7364_v20  ;;  %v2952_v15 = vpack.c.bf16 %v2936_v47, %v2936_v47  ;;  %v3477_v2 = vsel %vm7389_vm6, %v7310_v36, %v3472_v24  ;;  %vm2809_vm11 = vweird.f32 %v7257_v61 }
 0x677   : > { %v7506_v57 = vor.u32 1.1754944e-38, %v3580_v55  ;;  %v3565_v12 = vand.u32 2147483648, %v7381_v7  ;;  %v8780_v23 = vmax.f32 %v6640_v13, 0.0  ;;  %v3492_v39 = vsel %vm7402_vm8, %v7300_v34, %v3487_v4 }
 0x678   : > { %v3555_v6 = vmul.f32 %v7488_v10, %v7381_v7  ;;  %v3563_v13 = vand.u32 2147483647, %v7381_v7  ;;  %v8783_v55 = vmax.f32 %v6644_v1, 0.0  ;;  %vm7528_vm8 = vcmp.eq.f32.partialorder %v2813_v22, 8.507059e+37 }
 0x679   : > { %v3478_v49 = vmul.f32 %v3477_v2, %v8780_v23  ;;  %v2984_v23 = vunpack.c.l.b16 %v2952_v15  ;;  %v3542_v26 = vmul.f32 %v7398_v60, %v3541_v21  ;;  %v7534_v24 = vadd.f32 1e-08, %v3355_v62  ;;  %v8825_v21 = vld [vmem:[#allocation27_spill] sm:$0xff] }
 0x67a   : > { %v3493_v37 = vmul.f32 %v3492_v39, %v8783_v55  ;;  %v2797_v4 = vsel %vm7518_vm13, %v7290_v28, %v7420_v35  ;;  %v8786_v1 = vand.u32 2147483647, %v7045_v46  ;;  %v8789_v15 = vand.u32 2147483647, %v7234_v29  ;;  %vm7564_vm13 = vmor %vm3499_vm12, %vm3500_vm10 }
 0x67b   : > { %v3621_v47 = vmul.f32 %v6801_v18, %v3478_v49  ;;  %v7554_v62 = vadd.f32 %v7375_v40, %v2837_v11  ;;  %vm2839_vm7 = vweird.f32 %v7294_v5  ;;  %v3571_v49 = vsub.f32 1.0, %v3570_v38 }
 0x67c   : > { %vm7543_vm9 = vcmp.eq.f32.partialorder %v8786_v1, 8.507059e+37  ;;  %vm7549_vm0 = vcmp.eq.f32.partialorder %v8789_v15, 8.507059e+37  ;;  %v2997_v28 = vpack.c.b16 %v7220_v56, %v2984_v23  ;;  %v7558_v35 = vadd.f32 1e-08, %v2637_v63  ;;  %v7576_v63 = vpop.f32.mrf.mxu0 }
 0x67d   : > { %vm3544_vm6 = vweird.f32 %v7322_v31  ;;  %v7569_v39 = vor.u32 1.1754944e-38, %v3565_v12  ;;  %v3622_v11 = vmul.f32 %v6801_v18, %v3493_v37  ;;  %v3656_v38 = vadd.f32 %v7001_v17, %v3621_v47 }
 0x67e   : > { %v2802_v56 = vsel %vm7444_vm4, %v7373_v45, %v2797_v4  ;;  %v3556_v36 = vsub.f32 1.0, %v3555_v6  ;;  %3057 = vmatmul.bf16.gmra.mxu1 %v2997_v28  ;;  %v8794_v14 = vmax.f32 %v6668_v53, 0.0  ;;  %v3502_v12 = vsel %vm7564_vm13, %v7274_v0, %v7407_v3  ;;  %vm7603_vm4 = vmor %vm3529_vm1, %vm3530_vm5  ;;  %v8808_v4 = vld [vmem:[#allocation34_spill] sm:$0xff] }
 0x67f   : > { %v8795_v55 = vmax.f32 %v6659_v41, 0.0  ;;  %v7589_v45 = vadd.f32 %v7398_v60, %v3542_v26  ;;  %vm7591_vm12 = vcmp.eq.f32.partialorder %v3548_v33, 8.507059e+37  ;;  %v3657_v53 = vadd.f32 %v7011_v44, %v3622_v11  ;;  %vm7633_vm5 = vmor %vm2809_vm11, %vm2810_vm2 }
 0x680   : > { %v2803_v23 = vmul.f32 %v2802_v56, %v8794_v14  ;;  %v3672_v6 = vpack.c.bf16 %v3656_v38, %v3656_v38  ;;  %v3507_v0 = vsel %vm7475_vm14, %v7371_v59, %v3502_v12  ;;  %v3572_v44 = vmul.f32 %v7453_v42, %v3571_v49  ;;  %vm7623_vm14 = vmor %vm2824_vm3, %vm2825_vm15 }
 0x681   : > { %v3523_v17 = vmul.f32 %v7307_v8, %v8795_v55  ;;  %v8800_v8 = vand.u32 2147483647, %v7294_v5  ;;  %5255 = vrcp.f32 %v7534_v24  ;;  %v8803_v33 = vmax.f32 %v6652_v48, 0.0  ;;  %v8813_v55 = vld [vmem:[#allocation26_spill] sm:$0xff]  ;;  %v8847_v5 = vld [vmem:[#allocation44_spill] sm:$0xff] }
 0x682   : > { %v2904_v59 = vmul.f32 %v6857_v58, %v2803_v23  ;;  %vm3575_vm1 = vweird.f32 %v7453_v42  ;;  %5257 = vrcp.f32 %v7558_v35  ;;  %v3673_v37 = vpack.c.bf16 %v3657_v53, %v3657_v53 }
 0x683   : > { %vm7609_vm13 = vcmp.eq.f32.partialorder %v8800_v8, 8.507059e+37  ;;  %v3508_v43 = vmul.f32 %v3507_v0, %v8803_v33  ;;  %v3704_v26 = vunpack.c.l.b16 %v3672_v6  ;;  %vm2443_vm10 = vcmask 126016   ;;  %v2396_v47 = vpop.permute.xlu0 %2395  ;;  %v8819_v0 = vld [vmem:[#allocation40_spill] sm:$0xff] }
 0x684   : > { %v3557_v29 = vmul.f32 %v7488_v10, %v3556_v36  ;;  %vm3560_vm15 = vweird.f32 %v7488_v10  ;;  %v2939_v1 = vadd.f32 %v8808_v4, %v2904_v59  ;;  %v3624_v49 = vmul.f32 %v6801_v18, %v3523_v17  ;;  %2444 = vst.msk [vmem:[#allocation2] sm:$0xf] %vm2443_vm10, %v2396_v47  ;;  %v8812_v36 = vld [vmem:[#allocation41_spill] sm:$0xff]  ;;  %v7726_v4 = vpop.f32.mrf.mxu0 }
 0x685   : > { %v3623_v15 = vmul.f32 %v6801_v18, %v3508_v43  ;;  %v8809_v28 = vand.u32 2147483647, %v7201_v25  ;;  %vm3574_vm2 = vweird.f32 %v7364_v20  ;;  %v3705_v2 = vunpack.c.l.b16 %v3673_v37  ;;  %v2398_v11 = vpop.permute.xlu1 %2397  ;;  %v8831_v37 = vld [vmem:[#allocation7_spill] sm:$0xff] }
 0x686   : > { %v2812_v38 = vsel %vm7633_vm5, %v7330_v51, %v7492_v32  ;;  %v2827_v56 = vsel %vm7623_vm14, %v7317_v27, %v7465_v52  ;;  %v3532_v14 = vsel %vm7603_vm4, %v7124_v30, %v8812_v36  ;;  %v7663_v23 = vadd.f32 %v7453_v42, %v3572_v44  ;;  %2445 = vst.msk [vmem:[#allocation2 + $0x4] sm:$0xf] %vm2443_vm10, %v2398_v11  ;;  %v8817_v52 = vld [vmem:[#allocation6_spill] sm:$0xff]  ;;  %v8826_v44 = vld [vmem:[#allocation13_spill] sm:$0xff]  ;;  %v8834_v11 = vld [vmem:[#allocation35_spill] sm:$0xff] }
 0x687   : > { %vm7645_vm3 = vcmp.eq.f32.partialorder %v8809_v28, 8.507059e+37  ;;  %vm3559_vm11 = vweird.f32 %v7381_v7  ;;  %v2955_v12 = vpack.c.bf16 %v2939_v1, %v2939_v1  ;;  %v3658_v17 = vadd.f32 %v8813_v55, %v3623_v15  ;;  %v7687_v34 = vpop.eup %5255  ;;  %v8833_v1 = vld [vmem:[#allocation43_spill] sm:$0xff] }
 0x688   : > { %v2817_v51 = vsel %vm7528_vm8, %v7448_v16, %v2812_v38  ;;  %vm8814_vm5 = vweird.f32 %v7375_v40  ;;  %v3717_v27 = vpack.c.b16 %v3705_v2, %v3704_v26  ;;  %v8818_v32 = vmax.f32 %v8817_v52, 0.0  ;;  %v7707_v43 = vpop.eup %5257 }
 0x689   : > { %vm7675_vm14 = vmor %vm2839_vm7, %vm8814_vm5  ;;  %v2832_v6 = vsel %vm7549_vm0, %v7422_v50, %v2827_v56  ;;  %v3537_v16 = vsel %vm7543_vm9, %v8819_v0, %v3532_v14  ;;  %vm8820_vm8 = vweird.f32 %v7398_v60  ;;  %v3558_v41 = vadd.f32 %v7488_v10, %v3557_v29 }
 0x68a   : > { %v2818_v53 = vmul.f32 %v2817_v51, %v8818_v32  ;;  %vm7693_vm7 = vmor %vm3544_vm6, %vm8820_vm8  ;;  %vm7700_vm4 = vcmp.eq.f32.partialorder %v3563_v13, 8.507059e+37  ;;  %v2987_v22 = vunpack.c.l.b16 %v2955_v12  ;;  %v3659_v8 = vadd.f32 %v8825_v21, %v3624_v49  ;;  %3777 = vmatmul.bf16.gmra.mxu0 %v3717_v27  ;;  %v8843_v32 = vld [vmem:[#allocation28_spill] sm:$0xff] }
 0x68b   : > { %v8827_v59 = vmax.f32 %v8826_v44, 0.0  ;;  %v8828_v31 = vand.u32 2147483647, %v7364_v20  ;;  %v8832_v26 = vmax.f32 %v8831_v37, 0.0  ;;  %v3547_v48 = vsel %vm7693_vm7, %v7398_v60, %v7589_v45  ;;  %v3043_v56 = vpop.f32.mrf.mxu1  ;;  %v8835_v60 = vld [vmem:[#allocation8_spill] sm:$0xff]  ;;  %v8848_v20 = vld [vmem:[#allocation30_spill] sm:$0xff] }
 0x68c   : > { %v2905_v13 = vmul.f32 %v6857_v58, %v2818_v53  ;;  %v2842_v29 = vsel %vm7675_vm14, %v7375_v40, %v7554_v62  ;;  %v2998_v15 = vpack.c.b16 %v2987_v22, %v8833_v1  ;;  %v3674_v49 = vpack.c.bf16 %v3658_v17, %v3658_v17  ;;  %v8837_v40 = vld [vmem:[#allocation51_spill] sm:$0xff]  ;;  %v8851_v37 = vld [vmem:[#allocation37_spill] sm:$0xff] }
 0x68d   : > { %v2833_v33 = vmul.f32 %v2832_v6, %v8827_v59  ;;  %vm7711_vm0 = vcmp.eq.f32.partialorder %v8828_v31, 8.507059e+37  ;;  %v3538_v47 = vmul.f32 %v3537_v16, %v8832_v26  ;;  %v3552_v2 = vsel %vm7591_vm12, %v7495_v9, %v3547_v48  ;;  %v8841_v17 = vld [vmem:[#allocation11_spill] sm:$0xff]  ;;  %vm7755_vm12 = vmor %vm3574_vm2, %vm3575_vm1  ;;  %v8849_v59 = vld [vmem:[#allocation12_spill] sm:$0xff] }
 0x68e   : > { %v2940_v38 = vadd.f32 %v8834_v11, %v2905_v13  ;;  %v8836_v45 = vmax.f32 %v8835_v60, 0.0  ;;  %v2847_v62 = vsel %vm7609_vm13, %v8837_v40, %v2842_v29  ;;  %vm8838_vm6 = vweird.f32 %v7264_v19  ;;  %v8844_v6 = vld [vmem:[#allocation47_spill] sm:$0xff]  ;;  %vm3561_vm13 = vmor %vm3559_vm11, %vm3560_vm15  ;;  %3062 = vmatmul.bf16.gmra.mxu1 %v2998_v15 }
 0x68f   : > { %v2906_v28 = vmul.f32 %v6857_v58, %v2833_v33  ;;  %v3625_v14 = vmul.f32 %v6801_v18, %v3538_v47  ;;  %vm8839_vm9 = vweird.f32 %v7201_v25  ;;  %v3675_v12 = vpack.c.bf16 %v3659_v8, %v3659_v8 }
 0x690   : > { %v3553_v36 = vmul.f32 %v3552_v2, %v8836_v45  ;;  %vm2856_vm5 = vmor %vm8839_vm9, %vm8838_vm6  ;;  %v3083_v55 = vpack.c.bf16 %v3043_v56, %v3043_v56  ;;  %v8842_v51 = vmax.f32 %v8841_v17, 0.0  ;;  %v2956_v27 = vpack.c.bf16 %v2940_v38, %v2940_v38  ;;  %v8852_v2 = vld [vmem:[#allocation9_spill] sm:$0xff]  ;;  %v8854_v56 = vld [vmem:[#allocation38_spill] sm:$0xff] }
 0x691   : > { %v2941_v9 = vadd.f32 %v8840_v54, %v2906_v28  ;;  %v3660_v53 = vadd.f32 %v8843_v32, %v3625_v14  ;;  %v2857_v3 = vsel %vm2856_vm5, %v7264_v19, %v8844_v6  ;;  %v3706_v0 = vunpack.c.l.b16 %v3674_v49  ;;  %v8855_v45 = vld [vmem:[#allocation10_spill] sm:$0xff]  ;;  %v8858_v17 = vld [vmem:[#allocation48_spill] sm:$0xff] }
 0x692   : > { %v2848_v30 = vmul.f32 %v2847_v62, %v8842_v51  ;;  %v3626_v52 = vmul.f32 %v6801_v18, %v3553_v36  ;;  %3115 = vrot.lane.b32.xlu2 %v3083_v55, %s5367_s24  ;;  %v2862_v22 = vsel %vm7645_vm3, %v8847_v5, %v2857_v3  ;;  %v7768_v19 = vunpack.c.l.b16 %v2956_v27  ;;  %v3763_v49 = vpop.f32.mrf.mxu0  ;;  %v8857_v55 = vld [vmem:[#allocation46_spill] sm:$0xff]  ;;  %v8863_v3 = vld [vmem:[#allocation32_spill] sm:$0xff] }
 0x693   : > { %v2957_v16 = vpack.c.bf16 %v2941_v9, %v2941_v9  ;;  %v3676_v44 = vpack.c.bf16 %v3660_v53, %v3660_v53  ;;  %v8850_v33 = vmax.f32 %v8849_v59, 0.0  ;;  %v3562_v26 = vsel %vm3561_vm13, %v7488_v10, %v3558_v41  ;;  %v3045_v38 = vpop.f32.mrf.mxu1 }
 0x694   : > { %v2907_v21 = vmul.f32 %v6857_v58, %v2848_v30  ;;  %v3661_v8 = vadd.f32 %v8848_v20, %v3626_v52  ;;  %v3577_v7 = vsel %vm7755_vm12, %v7453_v42, %v7663_v23  ;;  %v3567_v1 = vsel %vm7700_vm4, %v7569_v39, %v3562_v26  ;;  %v8859_v30 = vld [vmem:[#allocation50_spill] sm:$0xff]  ;;  %v8862_v52 = vld [vmem:[#allocation31_spill] sm:$0xff] }
 0x695   : > { %v2863_v31 = vmul.f32 %v2862_v22, %v8850_v33  ;;  %v2989_v13 = vunpack.c.l.b16 %v2957_v16  ;;  %v7779_v48 = vunpack.c.l.b16 %v3676_v44  ;;  %v8853_v10 = vmax.f32 %v8852_v2, 0.0  ;;  %v8864_v44 = vld [vmem:[#allocation21_spill] sm:$0xff] }
 0x696   : > { %v2942_v61 = vadd.f32 %v8851_v37, %v2907_v21  ;;  %v3677_v47 = vpack.c.bf16 %v3661_v8, %v3661_v8  ;;  %v3582_v42 = vsel %vm7711_vm0, %v7506_v57, %v3577_v7  ;;  %v3803_v11 = vpack.c.bf16 %v3763_v49, %v3763_v49 }
 0x697   : > { %v2908_v29 = vmul.f32 %v6857_v58, %v2863_v31  ;;  %v2999_v15 = vpack.c.b16 %v2989_v13, %v7768_v19  ;;  %v3568_v41 = vmul.f32 %v3567_v1, %v8853_v10  ;;  %v8856_v50 = vmax.f32 %v8855_v45, 0.0 }
 0x698   : > { %v2958_v28 = vpack.c.bf16 %v2942_v61, %v2942_v61  ;;  %v7791_v23 = vunpack.c.l.b16 %v3677_v47  ;;  %v2880_v36 = vmul.f32 %v7707_v43, %v7558_v35  ;;  %v3707_v14 = vunpack.c.l.b16 %v3675_v12  ;;  %3835 = vrot.lane.b32.xlu1 %v3803_v11, %s5368_s27  ;;  %v8860_v12 = vld [vmem:[#allocation20_spill] sm:$0xff] }
 0x699   : > { %v2943_v60 = vadd.f32 %v8854_v56, %v2908_v29  ;;  %v3583_v39 = vmul.f32 %v3582_v42, %v8856_v50  ;;  %v3084_v40 = vpack.c.bf16 %v3045_v38, %v3045_v38  ;;  %v3627_v62 = vmul.f32 %v6801_v18, %v3568_v41 }
 0x69a   : > { %v3719_v46 = vpack.c.b16 %v7791_v23, %v7779_v48  ;;  %v7802_v54 = vunpack.c.l.b16 %v2958_v28  ;;  %v2865_v51 = vmul.f32 %v8858_v17, %v8857_v55  ;;  %5259 = vrcp.f32 %v8859_v30  ;;  %v3765_v20 = vpop.f32.mrf.mxu0 }
 0x69b   : > { %v2959_v57 = vpack.c.bf16 %v2943_v60, %v2943_v60  ;;  %v3628_v9 = vmul.f32 %v6801_v18, %v3583_v39  ;;  %v8861_v27 = vpack.c.bf16 %v8860_v12, %v8860_v12  ;;  %3117 = vrot.lane.b32.xlu0 %v3084_v40, %s5367_s24  ;;  %v3662_v32 = vadd.f32 %v8862_v52, %v3627_v62 }
 0x69c   : > { %v3718_v53 = vpack.c.b16 %v3707_v14, %v3706_v0  ;;  %v2881_v16 = vsub.f32 1.0, %v2880_v36  ;;  %v2866_v19 = vsub.f32 1.0, %v2865_v51  ;;  %v2366_v59 = vpack.c.bf16 %v8864_v44, %v8864_v44  ;;  %v3048_v0 = vpop.f32.mrf.mxu1  ;;  %v8869_v51 = vld [vmem:[#allocation23_spill] sm:$0xff] }
 0x69d   : > { %2399 = vrot.lane.b32.xlu2 %v8861_v27, %s5366_s23  ;;  %v7814_v6 = vunpack.c.l.b16 %v2959_v57  ;;  %v3663_v25 = vadd.f32 %v8863_v3, %v3628_v9  ;;  %v3678_v5 = vpack.c.bf16 %v3662_v32, %v3662_v32  ;;  %v3804_v33 = vpack.c.bf16 %v3765_v20, %v3765_v20  ;;  %v8870_v27 = vld [vmem:[#allocation19_spill] sm:$0xff] }
 0x69e   : > { %3782 = vmatmul.bf16.gmra.mxu0 %v3718_v53  ;;  %v2882_v37 = vmul.f32 %v7707_v43, %v2881_v16  ;;  %v3585_v61 = vmul.f32 %v7687_v34, %v7534_v24  ;;  %v2867_v7 = vmul.f32 %v8858_v17, %v2866_v19  ;;  %vm2885_vm1 = vweird.f32 %v7707_v43  ;;  %3067 = vmatmul.bf16.gmra.mxu1 %v2999_v15 }
 0x69f   : > { %v3000_v22 = vpack.c.b16 %v7814_v6, %v7802_v54  ;;  %v3679_v21 = vpack.c.bf16 %v3663_v25, %v3663_v25  ;;  %v7819_v8 = vunpack.c.l.b16 %v3678_v5  ;;  %v2890_v49 = vand.u32 2147483648, %v7558_v35 }
 0x6a0   : > { %v7825_v13 = vpop.eup %5259  ;;  %2401 = vrot.lane.b32.xlu1 %v2366_v59, %s5366_s23  ;;  %v2883_v29 = vadd.f32 %v7707_v43, %v2882_v37  ;;  %v3586_v1 = vsub.f32 1.0, %v3585_v61  ;;  %v2868_v28 = vadd.f32 %v8858_v17, %v2867_v7  ;;  %vm2870_vm15 = vweird.f32 %v8858_v17  ;;  %v8887_v59 = vld [vmem:[#allocation29_spill] sm:$0xff] }
 0x6a1   : > { %v7823_v31 = vunpack.c.l.b16 %v3679_v21  ;;  %v3600_v47 = vmul.f32 %v7825_v13, %v8859_v30  ;;  %vm2884_vm3 = vweird.f32 %v7558_v35  ;;  %v2888_v2 = vand.u32 2147483647, %v7558_v35  ;;  %v8875_v21 = vld [vmem:[#allocation15_spill] sm:$0xff] }
 0x6a2   : > { %v3768_v10 = vpop.f32.mrf.mxu0  ;;  %vm2869_vm2 = vweird.f32 %v8857_v55  ;;  %v2875_v41 = vand.u32 2147483648, %v8857_v55  ;;  %vm7846_vm11 = vmor %vm2884_vm3, %vm2885_vm1  ;;  %v2873_v56 = vand.u32 2147483647, %v8857_v55  ;;  %v3085_v60 = vpack.c.bf16 %v3048_v0, %v3048_v0  ;;  %v5077_v55 = vld [vmem:[%s8509_s5 + $0x8] sm:$0xff] }
 0x6a3   : > { %v3720_v26 = vpack.c.b16 %v7823_v31, %v7819_v8  ;;  %3837 = vrot.lane.b32.xlu0 %v3804_v33, %s5368_s27  ;;  %v3601_v42 = vsub.f32 1.0, %v3600_v47  ;;  %v3805_v15 = vpack.c.bf16 %v3768_v10, %v3768_v10  ;;  %v2887_v35 = vsel %vm7846_vm11, %v7707_v43, %v2883_v29  ;;  %vm7854_vm14 = vmor %vm2869_vm2, %vm2870_vm15  ;;  %4006 = vmatpush.bf16.msra.mxu2 %v5077_v55  ;;  %v5076_v31 = vld [vmem:[%s8509_s5] sm:$0xff] }
 0x6a4   : > { %v3050_v38 = vpop.f32.mrf.mxu1  ;;  %v3587_v39 = vmul.f32 %v7687_v34, %v3586_v1  ;;  %v2891_v36 = vor.u32 1.1754944e-38, %v2890_v49  ;;  %vm2889_vm8 = vcmp.eq.f32.partialorder %v2888_v2, 8.507059e+37  ;;  %v2872_v14 = vsel %vm7854_vm14, %v8858_v17, %v2868_v28  ;;  %v8880_v28 = vld [vmem:[#allocation14_spill] sm:$0xff] }
 0x6a5   : > { %v3086_v45 = vpack.c.bf16 %v3050_v38, %v3050_v38  ;;  %v2876_v40 = vor.u32 1.1754944e-38, %v2875_v41  ;;  %v3602_v43 = vmul.f32 %v7825_v13, %v3601_v42  ;;  %vm2874_vm7 = vcmp.eq.f32.partialorder %v2873_v56, 8.507059e+37  ;;  %v8882_v41 = vld [vmem:[#allocation16_spill] sm:$0xff] }
 0x6a6   : > { %v2892_v62 = vsel %vm2889_vm8, %v2891_v36, %v2887_v35  ;;  %v3588_v57 = vadd.f32 %v7687_v34, %v3587_v39  ;;  %vm3590_vm4 = vweird.f32 %v7687_v34  ;;  %v2368_v17 = vpack.c.bf16 %v8869_v51, %v8869_v51 }
 0x6a7   : > { %3121 = vrot.lane.b32.xlu2 %v3086_v45, %s5367_s24  ;;  %v2877_v9 = vsel %vm2874_vm7, %v2876_v40, %v2872_v14  ;;  %vm3605_vm0 = vweird.f32 %v7825_v13  ;;  %v3595_v12 = vand.u32 2147483648, %v7534_v24  ;;  %v8871_v52 = vmax.f32 %v8870_v27, 0.0  ;;  %4007 = vmatpush.bf16.msra.mxu2 %v5076_v31 }
 0x6a8   : > { %3839 = vrot.lane.b32.xlu1 %v3805_v15, %s5368_s27  ;;  %v3603_v3 = vadd.f32 %v7825_v13, %v3602_v43  ;;  %vm3589_vm6 = vweird.f32 %v7534_v24  ;;  %v3593_v48 = vand.u32 2147483647, %v7534_v24  ;;  %v3610_v16 = vand.u32 2147483648, %v8859_v30 }
 0x6a9   : > { %v2893_v32 = vmul.f32 %v2892_v62, %v8871_v52  ;;  %vm7888_vm9 = vmor %vm3589_vm6, %vm3590_vm4  ;;  %v8876_v19 = vmax.f32 %v8875_v21, 0.0  ;;  %vm3604_vm5 = vweird.f32 %v8859_v30  ;;  %v3608_v24 = vand.u32 2147483647, %v8859_v30 }
 0x6aa   : > { %v3770_v53 = vpop.f32.mrf.mxu0  ;;  %v3592_v44 = vsel %vm7888_vm9, %v7687_v34, %v3588_v57  ;;  %vm7902_vm12 = vmor %vm3604_vm5, %vm3605_vm0  ;;  %v3596_v33 = vor.u32 1.1754944e-38, %v3595_v12  ;;  %vm3594_vm13 = vcmp.eq.f32.partialorder %v3593_v48, 8.507059e+37  ;;  %v8879_v34 = vld [vmem:[#allocation18_spill] sm:$0xff]  ;;  %v3611_v61 = vor.u32 1.1754944e-38, %v3610_v16 }
 0x6ab   : > { %3119 = vrot.lane.b32.xlu0 %v3085_v60, %s5367_s24  ;;  %v3806_v23 = vpack.c.bf16 %v3770_v53, %v3770_v53  ;;  %v2878_v20 = vmul.f32 %v2877_v9, %v8876_v19  ;;  %v2910_v0 = vmul.f32 %v6857_v58, %v2893_v32  ;;  %v3607_v30 = vsel %vm7902_vm12, %v7825_v13, %v3603_v3  ;;  %v8886_v32 = vld [vmem:[#allocation25_spill] sm:$0xff] }
 0x6ac   : > { %v2929_v37 = vmul.f32 %v8879_v34, %v8870_v27  ;;  %v3597_v47 = vsel %vm3594_vm13, %v3596_v33, %v3592_v44  ;;  %vm3609_vm1 = vcmp.eq.f32.partialorder %v3608_v24, 8.507059e+37  ;;  %v2928_v29 = vmul.f32 %v8879_v34, %v8875_v21 }
 0x6ad   : > { %v2909_v7 = vmul.f32 %v6857_v58, %v2878_v20  ;;  %v3612_v49 = vsel %vm3609_vm1, %v3611_v61, %v3607_v30  ;;  %v8881_v2 = vmax.f32 %v8880_v28, 0.0  ;;  %v8883_v42 = vmax.f32 %v8882_v41, 0.0  ;;  %v8884_v58 = vld [vmem:[#allocation17_spill] sm:$0xff] }
 0x6ae   : > { %3787 = vmatmul.bf16.gmra.mxu0 %v3719_v46  ;;  %v8872_v46 = vld [vmem:[#allocation22_spill] sm:$0xff]  ;;  %3072 = vmatmul.bf16.gmra.mxu1 %v3000_v22  ;;  %v2945_v1 = vadd.f32 %v2929_v37, %v2910_v0  ;;  %v3648_v22 = vmul.f32 %v8884_v58, %v8880_v28  ;;  %v3649_v60 = vmul.f32 %v8884_v58, %v8882_v41  ;;  %vm3163_vm15 = vcmask 191616   ;;  %v8888_v30 = vld [vmem:[#allocation33_spill] sm:$0xff] }
 0x6af   : > { %v2367_v25 = vpack.c.bf16 %v8872_v46, %v8872_v46  ;;  %v3598_v13 = vmul.f32 %v3597_v47, %v8881_v2  ;;  %v2944_v10 = vadd.f32 %v2928_v29, %v2909_v7  ;;  %v3613_v11 = vmul.f32 %v3612_v49, %v8883_v42  ;;  %v8890_v42 = vld [vmem:[#allocation39_spill] sm:$0xff] }
 0x6b0   : > { %2405 = vrot.lane.b32.xlu1 %v2368_v17, %s5366_s23  ;;  %v2961_v15 = vpack.c.bf16 %v2945_v1, %v2945_v1  ;;  %v8885_v17 = vld [vmem:[#allocation24_spill] sm:$0xff]  ;;  %v2370_v53 = vpack.c.bf16 %v8886_v32, %v8886_v32  ;;  %vm3883_vm3 = vcmask 257216   ;;  %v2371_v33 = vpack.c.bf16 %v8887_v59, %v8887_v59 }
 0x6b1   : > { %2403 = vrot.lane.b32.xlu2 %v2367_v25, %s5366_s23  ;;  %v3629_v54 = vmul.f32 %v6801_v18, %v3598_v13  ;;  %v2960_v6 = vpack.c.bf16 %v2944_v10, %v2944_v10  ;;  %v3630_v38 = vmul.f32 %v6801_v18, %v3613_v11  ;;  %v2369_v12 = vpack.c.bf16 %v8885_v17, %v8885_v17 }
 0x6b2   : > { %v2993_v56 = vunpack.c.l.b16 %v2961_v15  ;;  %v2372_v34 = vpack.c.bf16 %v8888_v30, %v8888_v30  ;;  %vm8889_vm2 = vcmask 261120   ;;  %v2373_v11 = vpack.c.bf16 %v8890_v42, %v8890_v42 }
 0x6b3   : > { %3841 = vrot.lane.b32.xlu0 %v3806_v23, %s5368_s27  ;;  %v3664_v45 = vadd.f32 %v3648_v22, %v3629_v54  ;;  %v2992_v35 = vunpack.c.l.b16 %v2960_v6  ;;  %v3665_v50 = vadd.f32 %v3649_v60, %v3630_v38  ;;  %v8891_v54 = vld [vmem:[#allocation42_spill] sm:$0xff]  ;;  %vm8892_vm11 = vmmov %vm8889_vm2  ;;  %v2377_v17 = vpack.c.bf16 %v7576_v63, %v7576_v63 }
 0x6b4   : > { %v2374_v6 = vpack.c.bf16 %v8891_v54, %v8891_v54  ;;  %vm8895_vm14 = vmmov %vm8889_vm2 }
 0x6b5   : > { %v3001_v39 = vpack.c.b16 %v2993_v56, %v2992_v35  ;;  %v3680_v36 = vpack.c.bf16 %v3664_v45, %v3664_v45  ;;  %v3681_v14 = vpack.c.bf16 %v3665_v50, %v3665_v50  ;;  %vm8896_vm8 = vmmov %vm8889_vm2 }
 0x6b6   : > { %vm8897_vm7 = vmmov %vm8889_vm2 }
 0x6b7   : > { %v3712_v40 = vunpack.c.l.b16 %v3680_v36  ;;  %v3713_v43 = vunpack.c.l.b16 %v3681_v14  ;;  %v8893_v14 = vld [vmem:[#allocation45_spill] sm:$0xff]  ;;  %vm8898_vm4 = vmmov %vm8889_vm2 }
 0x6b8   : > { %vm8899_vm0 = vmmov %vm8889_vm2 }
 0x6b9   : > { %v3721_v62 = vpack.c.b16 %v3713_v43, %v3712_v40  ;;  %v2375_v40 = vpack.c.bf16 %v8893_v14, %v8893_v14  ;;  %vm8900_vm6 = vmmov %vm8899_vm0 }
 0x6ba   : > { %vm8902_vm9 = vmmov %vm8899_vm0 }
 0x6bb   : > { %vm8903_vm5 = vmmov %vm8899_vm0 }
 0x6bc   : > { %vm8904_vm12 = vmmov %vm8899_vm0 }
 0x6bd   : > { %vm8905_vm13 = vmmov %vm8899_vm0 }
 0x6be   : > { %3792 = vmatmul.bf16.gmra.mxu0 %v3720_v26  ;;  %3077 = vmatmul.bf16.gmra.mxu1 %v3001_v39  ;;  %vm8906_vm1 = vmmov %vm8899_vm0 }
 0x6ce   : > { %3797 = vmatmul.bf16.gmra.mxu0 %v3721_v62  ;;  %v8894_v62 = vld [vmem:[#allocation49_spill] sm:$0xff] }
 0x6dc   : > { %v3053_v57 = vpop.f32.mrf.mxu1 }
 0x6dd   : > { %v3087_v8 = vpack.c.bf16 %v3053_v57, %v3053_v57  ;;  %v2376_v57 = vpack.c.bf16 %v8894_v62, %v8894_v62 }
 0x6df   : > { %3123 = vrot.lane.b32.xlu0 %v3087_v8, %s5367_s24 }
 0x6e4   : > { %v3055_v26 = vpop.f32.mrf.mxu1 }
 0x6e5   : > { %v3088_v9 = vpack.c.bf16 %v3055_v26, %v3055_v26 }
 0x6e7   : > { %3125 = vrot.lane.b32.xlu2 %v3088_v9, %s5367_s24 }
 0x6ec   : > { %v3116_v18 = vpop.permute.xlu2 %3115 }
 0x6ed   : > { %3164 = vst.msk [vmem:[#allocation2] sm:$0xf] %vm3163_vm15, %v3116_v18 }
 0x6ee   : > { %v3773_v51 = vpop.f32.mrf.mxu0 }
 0x6ef   : > { %v3807_v27 = vpack.c.bf16 %v3773_v51, %v3773_v51  ;;  %2407 = vrot.lane.b32.xlu2 %v2369_v12, %s5366_s23 }
 0x6f1   : > { %3843 = vrot.lane.b32.xlu1 %v3807_v27, %s5368_s27  ;;  %v2378_v27 = vpack.c.bf16 %v7726_v4, %v7726_v4 }
 0x6f6   : > { %v3775_v52 = vpop.f32.mrf.mxu0 }
 0x6f7   : > { %v2400_v55 = vpop.permute.xlu2 %2399  ;;  %v3808_v48 = vpack.c.bf16 %v3775_v52, %v3775_v52 }
 0x6f8   : > { %2446 = vst.msk [vmem:[#allocation2 + $0x8] sm:$0xf] %vm2443_vm10, %v2400_v55 }
 0x6f9   : > { %2409 = vrot.lane.b32.xlu1 %v2370_v53, %s5366_s23  ;;  %3845 = vrot.lane.b32.xlu0 %v3808_v48, %s5368_s27 }
 0x6fb   : > { %v3058_v3 = vpop.f32.mrf.mxu1 }
 0x6fc   : > { %v3089_v46 = vpack.c.bf16 %v3058_v3, %v3058_v3 }
 0x701   : > { %v3122_v23 = vpop.permute.xlu2 %3121  ;;  %3127 = vrot.lane.b32.xlu0 %v3089_v46, %s5367_s24 }
 0x703   : > { %v3060_v25 = vpop.f32.mrf.mxu1 }
 0x704   : > { %v3090_v16 = vpack.c.bf16 %v3060_v25, %v3060_v25 }
 0x706   : > { %3129 = vrot.lane.b32.xlu2 %v3090_v16, %s5367_s24 }
 0x707   : > { %v3778_v5 = vpop.f32.mrf.mxu0 }
 0x708   : > { %v3809_v21 = vpack.c.bf16 %v3778_v5, %v3778_v5 }
 0x70a   : > { %v3836_v19 = vpop.permute.xlu1 %3835  ;;  %3847 = vrot.lane.b32.xlu1 %v3809_v21, %s5368_s27 }
 0x70b   : > { %3884 = vst.msk [vmem:[#allocation2] sm:$0xf] %vm3883_vm3, %v3836_v19  ;;  %v2404_v24 = vpop.permute.xlu2 %2403  ;;  %v3063_v44 = vpop.f32.mrf.mxu1 }
 0x70c   : > { %2448 = vst.msk [vmem:[#allocation2 + $0x10] sm:$0xf] %vm2443_vm10, %v2404_v24  ;;  %v3091_v49 = vpack.c.bf16 %v3063_v44, %v3063_v44 }
 0x70d   : > { %v3118_v20 = vpop.permute.xlu0 %3117 }
 0x70e   : > { %3165 = vst.msk [vmem:[#allocation2 + $0x4] sm:$0xf] %vm3163_vm15, %v3118_v20  ;;  %2411 = vrot.lane.b32.xlu2 %v2371_v33, %s5366_s23 }
 0x70f   : > { %v3780_v0 = vpop.f32.mrf.mxu0 }
 0x710   : > { %v3810_v37 = vpack.c.bf16 %v3780_v0, %v3780_v0 }
 0x712   : > { %v2402_v61 = vpop.permute.xlu1 %2401  ;;  %2413 = vrot.lane.b32.xlu1 %v2372_v34, %s5366_s23  ;;  %3849 = vrot.lane.b32.xlu0 %v3810_v37, %s5368_s27 }
 0x713   : > { %2447 = vst.msk [vmem:[#allocation2 + $0xc] sm:$0xf] %vm2443_vm10, %v2402_v61  ;;  %v3065_v47 = vpop.f32.mrf.mxu1 }
 0x714   : > { %3167 = vst.msk [vmem:[#allocation2 + $0xc] sm:$0xf] %vm3163_vm15, %v3122_v23  ;;  %v3092_v29 = vpack.c.bf16 %v3065_v47, %v3065_v47 }
 0x715   : > { %v3838_v7 = vpop.permute.xlu0 %3837 }
 0x716   : > { %3885 = vst.msk [vmem:[#allocation2 + $0x4] sm:$0xf] %vm3883_vm3, %v3838_v7  ;;  %3133 = vrot.lane.b32.xlu2 %v3092_v29, %s5367_s24 }
 0x71a   : > { %v3840_v2 = vpop.permute.xlu1 %3839  ;;  %3131 = vrot.lane.b32.xlu0 %v3091_v49, %s5367_s24 }
 0x71b   : > { %v3783_v1 = vpop.f32.mrf.mxu0  ;;  %v3068_v41 = vpop.f32.mrf.mxu1 }
 0x71c   : > { %v3811_v28 = vpack.c.bf16 %v3783_v1, %v3783_v1  ;;  %v3093_v35 = vpack.c.bf16 %v3068_v41, %v3068_v41 }
 0x71d   : > { %v3120_v13 = vpop.permute.xlu0 %3119  ;;  %v5068_v10 = vld [vmem:[#allocation2] sm:$0xff] }
 0x71e   : > { %3851 = vrot.lane.b32.xlu1 %v3811_v28, %s5368_s27  ;;  %3166 = vst.msk [vmem:[#allocation2 + $0x8] sm:$0xf] %vm3163_vm15, %v3120_v13  ;;  %5014 = vmatmul.msk.bf16.vlgmr.msra.gmra.mxu2 %vm8889_vm2, %v5068_v10  ;;  %vm8909_vm2 = vmmov %vm8899_vm0 }
 0x71f   : > { %3886 = vst.msk [vmem:[#allocation2 + $0x8] sm:$0xf] %vm3883_vm3, %v3840_v2  ;;  %2415 = vrot.lane.b32.xlu2 %v2373_v11, %s5366_s23 }
 0x722   : > { %v2406_v22 = vpop.permute.xlu1 %2405 }
 0x723   : > { %v3785_v15 = vpop.f32.mrf.mxu0  ;;  %2449 = vst.msk [vmem:[#allocation2 + $0x14] sm:$0xf] %vm2443_vm10, %v2406_v22  ;;  %v3070_v56 = vpop.f32.mrf.mxu1 }
 0x724   : > { %v3812_v58 = vpack.c.bf16 %v3785_v15, %v3785_v15  ;;  %v3094_v60 = vpack.c.bf16 %v3070_v56, %v3070_v56  ;;  %v8043_v56 = vld [vmem:[%s8510_s6] ss:$0 sm:$0xff] }
 0x725   : > { %v3842_v38 = vpop.permute.xlu0 %3841 }
 0x726   : > { %2417 = vrot.lane.b32.xlu1 %v2374_v6, %s5366_s23  ;;  %3853 = vrot.lane.b32.xlu0 %v3812_v58, %s5368_s27  ;;  %3887 = vst.msk [vmem:[#allocation2 + $0xc] sm:$0xf] %vm3883_vm3, %v3842_v38 }
 0x727   : > { %3137 = vrot.lane.b32.xlu2 %v3094_v60, %s5367_s24  ;;  %v458_v60 = vld [vmem:[%s5458_s17 + $0x10] sm:$0xff] }
 0x72b   : > { %v3788_v45 = vpop.f32.mrf.mxu0  ;;  %v3073_v36 = vpop.f32.mrf.mxu1 }
 0x72c   : > { %v3813_v50 = vpack.c.bf16 %v3788_v45, %v3788_v45  ;;  %v3095_v9 = vpack.c.bf16 %v3073_v36, %v3073_v36 }
 0x72d   : > { %v5069_v39 = vld [vmem:[#allocation2 + $0x8] sm:$0xff] }
 0x72e   : > { %3855 = vrot.lane.b32.xlu1 %v3813_v50, %s5368_s27  ;;  %3135 = vrot.lane.b32.xlu0 %v3093_v35, %s5367_s24 }
 0x72f   : > { %5015 = vmatmul.msk.bf16.gmra.mxu2 %vm8892_vm11, %v5069_v39  ;;  %2419 = vrot.lane.b32.xlu2 %v2375_v40, %s5366_s23  ;;  %vm8910_vm11 = vmmov %vm8899_vm0 }
 0x733   : > { %v3790_v43 = vpop.f32.mrf.mxu0  ;;  %v3075_v18 = vpop.f32.mrf.mxu1 }
 0x734   : > { %v3814_v8 = vpack.c.bf16 %v3790_v43, %v3790_v43  ;;  %v3096_v31 = vpack.c.bf16 %v3075_v18, %v3075_v18  ;;  %v459_v43 = vld [vmem:[%s5458_s17 + $0x18] sm:$0xff] }
 0x736   : > { %2421 = vrot.lane.b32.xlu1 %v2376_v57, %s5366_s23  ;;  %3857 = vrot.lane.b32.xlu0 %v3814_v8, %s5368_s27 }
 0x737   : > { %3141 = vrot.lane.b32.xlu2 %v3096_v31, %s5367_s24 }
 0x73b   : > { %v3793_v26 = vpop.f32.mrf.mxu0  ;;  %v3078_v51 = vpop.f32.mrf.mxu1 }
 0x73c   : > { %v3815_v55 = vpack.c.bf16 %v3793_v26, %v3793_v26  ;;  %v3097_v48 = vpack.c.bf16 %v3078_v51, %v3078_v51 }
 0x73e   : > { %3139 = vrot.lane.b32.xlu0 %v3095_v9, %s5367_s24  ;;  %3859 = vrot.lane.b32.xlu1 %v3815_v55, %s5368_s27 }
 0x73f   : > { %2423 = vrot.lane.b32.xlu2 %v2377_v17, %s5366_s23  ;;  %v460_v17 = vld [vmem:[%s5458_s17 + $0x20] sm:$0xff] }
 0x741   : > { %v3126_v63 = vpop.permute.xlu2 %3125 }
 0x742   : > { %3169 = vst.msk [vmem:[#allocation2 + $0x14] sm:$0xf] %vm3163_vm15, %v3126_v63 }
 0x743   : > { %v3795_v12 = vpop.f32.mrf.mxu0  ;;  %v3080_v32 = vpop.f32.mrf.mxu1 }
 0x744   : > { %v3816_v52 = vpack.c.bf16 %v3795_v12, %v3795_v12  ;;  %v3098_v53 = vpack.c.bf16 %v3080_v32, %v3080_v32 }
 0x746   : > { %2425 = vrot.lane.b32.xlu1 %v2378_v27, %s5366_s23  ;;  %3861 = vrot.lane.b32.xlu0 %v3816_v52, %s5368_s27 }
 0x747   : > { %3145 = vrot.lane.b32.xlu2 %v3098_v53, %s5367_s24  ;;  %v461_v53 = vld [vmem:[%s5458_s17 + $0x28] sm:$0xff] }
 0x749   : > { %v2408_v25 = vpop.permute.xlu2 %2407 }
 0x74a   : > { %2450 = vst.msk [vmem:[#allocation2 + $0x18] sm:$0xf] %vm2443_vm10, %v2408_v25 }
 0x74b   : > { %v3798_v3 = vpop.f32.mrf.mxu0 }
 0x74c   : > { %v3817_v23 = vpack.c.bf16 %v3798_v3, %v3798_v3 }
 0x74e   : > { %3143 = vrot.lane.b32.xlu0 %v3097_v48, %s5367_s24  ;;  %3863 = vrot.lane.b32.xlu1 %v3817_v23, %s5368_s27 }
 0x751   : > { %v3124_v16 = vpop.permute.xlu0 %3123 }
 0x752   : > { %3168 = vst.msk [vmem:[#allocation2 + $0x10] sm:$0xf] %vm3163_vm15, %v3124_v16 }
 0x753   : > { %v3800_v4 = vpop.f32.mrf.mxu0 }
 0x754   : > { %v3818_v46 = vpack.c.bf16 %v3800_v4, %v3800_v4  ;;  %v462_v4 = vld [vmem:[%s5458_s17 + $0x30] sm:$0xff] }
 0x756   : > { %3865 = vrot.lane.b32.xlu0 %v3818_v46, %s5368_s27 }
 0x760   : > { %v3130_v5 = vpop.permute.xlu2 %3129 }
 0x763   : > { %v3844_v21 = vpop.permute.xlu1 %3843 }
 0x764   : > { %3888 = vst.msk [vmem:[#allocation2 + $0x10] sm:$0xf] %vm3883_vm3, %v3844_v21  ;;  %v463_v21 = vld [vmem:[%s5458_s17 + $0x38] sm:$0xff] }
 0x768   : > { %v2412_v19 = vpop.permute.xlu2 %2411 }
 0x769   : > { %2452 = vst.msk [vmem:[#allocation2 + $0x20] sm:$0xf] %vm2443_vm10, %v2412_v19 }
 0x76b   : > { %v3846_v20 = vpop.permute.xlu0 %3845  ;;  %v2410_v24 = vpop.permute.xlu1 %2409 }
 0x76c   : > { %3889 = vst.msk [vmem:[#allocation2 + $0x14] sm:$0xf] %vm3883_vm3, %v3846_v20 }
 0x76d   : > { %2451 = vst.msk [vmem:[#allocation2 + $0x1c] sm:$0xf] %vm2443_vm10, %v2410_v24 }
 0x76e   : > { %3171 = vst.msk [vmem:[#allocation2 + $0x1c] sm:$0xf] %vm3163_vm15, %v3130_v5 }
 0x770   : > { %v3134_v44 = vpop.permute.xlu2 %3133 }
 0x773   : > { %v3128_v59 = vpop.permute.xlu0 %3127  ;;  %v5070_v33 = vld [vmem:[#allocation2 + $0x10] sm:$0xff] }
 0x774   : > { %3170 = vst.msk [vmem:[#allocation2 + $0x18] sm:$0xf] %vm3163_vm15, %v3128_v59  ;;  %5016 = vmatmul.msk.bf16.gmra.mxu2 %vm8895_vm14, %v5070_v33  ;;  %v464_v59 = vld [vmem:[%s5458_s17 + $0x40] sm:$0xff]  ;;  %vm8911_vm14 = vmmov %vm8899_vm0 }
 0x779   : > { %v2416_v0 = vpop.permute.xlu2 %2415 }
 0x77a   : > { %2454 = vst.msk [vmem:[#allocation2 + $0x28] sm:$0xf] %vm2443_vm10, %v2416_v0 }
 0x77c   : > { %v3848_v30 = vpop.permute.xlu1 %3847 }
 0x77d   : > { %3890 = vst.msk [vmem:[#allocation2 + $0x18] sm:$0xf] %vm3883_vm3, %v3848_v30 }
 0x781   : > { %v3138_v34 = vpop.permute.xlu2 %3137 }
 0x784   : > { %v3850_v37 = vpop.permute.xlu0 %3849  ;;  %v2414_v61 = vpop.permute.xlu1 %2413 }
 0x785   : > { %3891 = vst.msk [vmem:[#allocation2 + $0x1c] sm:$0xf] %vm3883_vm3, %v3850_v37 }
 0x786   : > { %2453 = vst.msk [vmem:[#allocation2 + $0x24] sm:$0xf] %vm2443_vm10, %v2414_v61 }
 0x787   : > { %3173 = vst.msk [vmem:[#allocation2 + $0x24] sm:$0xf] %vm3163_vm15, %v3134_v44 }
 0x789   : > { %v2420_v7 = vpop.permute.xlu2 %2419 }
 0x78a   : > { %2456 = vst.msk [vmem:[#allocation2 + $0x30] sm:$0xf] %vm2443_vm10, %v2420_v7 }
 0x78c   : > { %v3132_v47 = vpop.permute.xlu0 %3131  ;;  %v5071_v1 = vld [vmem:[#allocation2 + $0x18] sm:$0xff] }
 0x78d   : > { %3172 = vst.msk [vmem:[#allocation2 + $0x20] sm:$0xf] %vm3163_vm15, %v3132_v47  ;;  %5017 = vmatmul.msk.bf16.gmra.mxu2 %vm8896_vm8, %v5071_v1  ;;  %vm8912_vm8 = vmmov %vm8899_vm0 }
 0x790   : > { %v3852_v29 = vpop.permute.xlu1 %3851 }
 0x791   : > { %3892 = vst.msk [vmem:[#allocation2 + $0x20] sm:$0xf] %vm3883_vm3, %v3852_v29  ;;  %v3142_v49 = vpop.permute.xlu2 %3141 }
 0x798   : > { %v3854_v28 = vpop.permute.xlu0 %3853  ;;  %v2418_v2 = vpop.permute.xlu1 %2417 }
 0x799   : > { %3893 = vst.msk [vmem:[#allocation2 + $0x24] sm:$0xf] %vm3883_vm3, %v3854_v28  ;;  %v2424_v13 = vpop.permute.xlu2 %2423  ;;  %v465_v28 = vld [vmem:[%s5458_s17 + $0x48] sm:$0xff] }
 0x79a   : > { %2455 = vst.msk [vmem:[#allocation2 + $0x2c] sm:$0xf] %vm2443_vm10, %v2418_v2 }
 0x79b   : > { %3175 = vst.msk [vmem:[#allocation2 + $0x2c] sm:$0xf] %vm3163_vm15, %v3138_v34 }
 0x79c   : > { %2458 = vst.msk [vmem:[#allocation2 + $0x38] sm:$0xf] %vm2443_vm10, %v2424_v13 }
 0x7a0   : > { %v3136_v10 = vpop.permute.xlu0 %3135  ;;  %v3856_v41 = vpop.permute.xlu1 %3855  ;;  %v5072_v42 = vld [vmem:[#allocation2 + $0x20] sm:$0xff] }
 0x7a1   : > { %3174 = vst.msk [vmem:[#allocation2 + $0x28] sm:$0xf] %vm3163_vm15, %v3136_v10  ;;  %5018 = vmatmul.msk.bf16.gmra.mxu2 %vm8897_vm7, %v5072_v42  ;;  %v8030_v11 = vpop.f32.mrf.mxu2  ;;  %v3146_v40 = vpop.permute.xlu2 %3145  ;;  %vm8913_vm7 = vmmov %vm8899_vm0 }
 0x7a2   : > { %3894 = vst.msk [vmem:[#allocation2 + $0x28] sm:$0xf] %vm3883_vm3, %v3856_v41 }
 0x7a8   : > { %v3858_v15 = vpop.permute.xlu0 %3857  ;;  %v2422_v54 = vpop.permute.xlu1 %2421 }
 0x7a9   : > { %3895 = vst.msk [vmem:[#allocation2 + $0x2c] sm:$0xf] %vm3883_vm3, %v3858_v15  ;;  %v8035_v6 = vpop.f32.mrf.mxu2 }
 0x7aa   : > { %2457 = vst.msk [vmem:[#allocation2 + $0x34] sm:$0xf] %vm2443_vm10, %v2422_v54 }
 0x7ab   : > { %3177 = vst.msk [vmem:[#allocation2 + $0x34] sm:$0xf] %vm3163_vm15, %v3142_v49 }
 0x7b0   : > { %v3140_v58 = vpop.permute.xlu0 %3139  ;;  %v3860_v22 = vpop.permute.xlu1 %3859  ;;  %v5073_v38 = vld [vmem:[#allocation2 + $0x28] sm:$0xff] }
 0x7b1   : > { %3176 = vst.msk [vmem:[#allocation2 + $0x30] sm:$0xf] %vm3163_vm15, %v3140_v58  ;;  %5019 = vmatmul.msk.bf16.gmra.mxu2 %vm8898_vm4, %v5073_v38  ;;  %v466_v38 = vld [vmem:[%s5458_s17 + $0x50] sm:$0xff]  ;;  %vm8914_vm4 = vmmov %vm8899_vm0 }
 0x7b2   : > { %3896 = vst.msk [vmem:[#allocation2 + $0x30] sm:$0xf] %vm3883_vm3, %v3860_v22  ;;  %v4014_v45 = vpop.f32.mrf.mxu2 }
 0x7b3   : > { %v4015_v35 = vadd.f32 %v8043_v56, %v4014_v45 }
 0x7b5   : > { %v4051_v50 = vadd.f32 %v4015_v35, %v458_v60 }
 0x7b7   : > { %v4073_v14 = vsel %vm8899_vm0, %v4051_v50, 0.0 }
 0x7b8   : > { %v3862_v39 = vpop.permute.xlu0 %3861  ;;  %v2426_v36 = vpop.permute.xlu1 %2425  ;;  %4074 = vadd.xlane.f32.xlu2 %v4073_v14 }
 0x7b9   : > { %3897 = vst.msk [vmem:[#allocation2 + $0x34] sm:$0xf] %vm3883_vm3, %v3862_v39 }
 0x7ba   : > { %2459 = vst.msk [vmem:[#allocation2 + $0x3c] sm:$0xf] %vm2443_vm10, %v2426_v36  ;;  %v4016_v62 = vpop.f32.mrf.mxu2  ;;  %vm8901_vm10 = vmmov %vm8899_vm0 }
 0x7bb   : > { %3179 = vst.msk [vmem:[#allocation2 + $0x3c] sm:$0xf] %vm3163_vm15, %v3146_v40  ;;  %v4017_v57 = vadd.f32 %v8043_v56, %v4016_v62  ;;  %v467_v62 = vld [vmem:[%s5458_s17 + $0x58] sm:$0xff] }
 0x7bd   : > { %v4052_v8 = vadd.f32 %v4017_v57, %v459_v43 }
 0x7bf   : > { %v4076_v9 = vsel %vm8900_vm6, %v4052_v8, 0.0  ;;  %vm8915_vm6 = vmmov %vm8899_vm0 }
 0x7c0   : > { %v3144_v18 = vpop.permute.xlu0 %3143  ;;  %v3864_v31 = vpop.permute.xlu1 %3863  ;;  %v5074_v26 = vld [vmem:[#allocation2 + $0x30] sm:$0xff]  ;;  %4077 = vadd.xlane.f32.xlu1 %v4076_v9 }
 0x7c1   : > { %3178 = vst.msk [vmem:[#allocation2 + $0x38] sm:$0xf] %vm3163_vm15, %v3144_v18  ;;  %5020 = vmatmul.msk.bf16.gmra.mxu2 %vm8901_vm10, %v5074_v26  ;;  %vm8907_vm15 = vmmov %vm8899_vm0 }
 0x7c2   : > { %3898 = vst.msk [vmem:[#allocation2 + $0x38] sm:$0xf] %vm3883_vm3, %v3864_v31  ;;  %vm8916_vm10 = vmmov %vm8899_vm0 }
 0x7c8   : > { %v3866_v55 = vpop.permute.xlu0 %3865 }
 0x7c9   : > { %3899 = vst.msk [vmem:[#allocation2 + $0x3c] sm:$0xf] %vm3883_vm3, %v3866_v55  ;;  %vm8908_vm3 = vmmov %vm8899_vm0 }
 0x7d0   : > { %v5075_v51 = vld [vmem:[#allocation2 + $0x38] sm:$0xff] }
 0x7d1   : > { %5021 = vmatmul.msk.bf16.gmra.mxu2 %vm8902_vm9, %v5075_v51  ;;  %vm8917_vm9 = vmmov %vm8899_vm0 }
 0x7f7   : > { %v4019_v12 = vpop.f32.mrf.mxu2 }
 0x7f8   : > { %v4020_v27 = vadd.f32 %v8043_v56, %v4019_v12  ;;  %v468_v12 = vld [vmem:[%s5458_s17 + $0x60] sm:$0xff] }
 0x7fa   : > { %v4053_v52 = vadd.f32 %v4020_v27, %v460_v17 }
 0x7fc   : > { %v4079_v32 = vsel %vm8903_vm5, %v4053_v52, 0.0  ;;  %vm8918_vm5 = vmmov %vm8899_vm0 }
 0x7fd   : > { %4080 = vadd.xlane.f32.xlu0 %v4079_v32 }
 0x7ff   : > { %v4021_v3 = vpop.f32.mrf.mxu2 }
 0x800   : > { %v4022_v48 = vadd.f32 %v8043_v56, %v4021_v3 }
 0x802   : > { %v4054_v23 = vadd.f32 %v4022_v48, %v461_v53 }
 0x804   : > { %v4082_v63 = vsel %vm8904_vm12, %v4054_v23, 0.0  ;;  %vm8919_vm12 = vmmov %vm8899_vm0 }
 0x805   : > { %4083 = vadd.xlane.f32.xlu2 %v4082_v63 }
 0x810   : > { %v4024_v46 = vpop.f32.mrf.mxu2 }
 0x811   : > { %v4025_v25 = vadd.f32 %v8043_v56, %v4024_v46  ;;  %v469_v46 = vld [vmem:[%s5458_s17 + $0x68] sm:$0xff] }
 0x813   : > { %v8067_v16 = vadd.f32 %v4025_v25, %v462_v4 }
 0x815   : > { %v4085_v5 = vsel %vm8905_vm13, %v8067_v16, 0.0  ;;  %vm8920_vm13 = vmmov %vm8899_vm0 }
 0x816   : > { %4086 = vadd.xlane.f32.xlu1 %v4085_v5 }
 0x818   : > { %v4026_v19 = vpop.f32.mrf.mxu2 }
 0x819   : > { %v4027_v20 = vadd.f32 %v8043_v56, %v4026_v19 }
 0x81b   : > { %v8073_v24 = vadd.f32 %v4027_v20, %v463_v21 }
 0x81d   : > { %v4088_v44 = vsel %vm8906_vm1, %v8073_v24, 0.0  ;;  %vm8921_vm1 = vmmov %vm8899_vm0 }
 0x81e   : > { %4089 = vadd.xlane.f32.xlu0 %v4088_v44 }
 0x824   : > { %v4029_v33 = vpop.f32.mrf.mxu2 }
 0x825   : > { %v4030_v0 = vadd.f32 %v8043_v56, %v4029_v33 }
 0x827   : > { %v8079_v30 = vadd.f32 %v4030_v0, %v464_v59  ;;  %v470_v0 = vld [vmem:[%s5458_s17 + $0x70] sm:$0xff] }
 0x829   : > { %v4091_v34 = vsel %vm8907_vm15, %v8079_v30, 0.0  ;;  %vm8922_vm15 = vmmov %vm8899_vm0 }
 0x82a   : > { %4092 = vadd.xlane.f32.xlu0 %v4091_v34 }
 0x82b   : > { %v4075_v37 = vpop.xlane.xlu2 %4074 }
 0x82c   : > { %v4117_v61 = vmul.f32 0.03125, %v4075_v37  ;;  %v4031_v7 = vpop.f32.mrf.mxu2 }
 0x82d   : > { %v4032_v1 = vadd.f32 %v8043_v56, %v4031_v7 }
 0x82e   : > { %v8083_v47 = vsub.f32 %v4051_v50, %v4117_v61 }
 0x82f   : > { %v8090_v10 = vadd.f32 %v4032_v1, %v465_v28  ;;  %v4012_v1 = vadd.f32 %v8043_v56, %v8035_v6  ;;  %v5079_v6 = vld [vmem:[%s8513_s9 + $0x8] sm:$0xff] }
 0x830   : > { %v4149_v29 = vmul.f32 %v8083_v47, %v8083_v47  ;;  %5084 = vmatpush.bf16.msra.mxu1 %v5079_v6  ;;  %4515 = vmatpush.bf16.msrb.mxu0 %v5079_v6 }
 0x831   : > { %v4094_v58 = vsel %vm8909_vm2, %v8090_v10, 0.0 }
 0x832   : > { %v4169_v49 = vsel %vm8908_vm3, %v4149_v29, 0.0 }
 0x833   : > { %4170 = vadd.xlane.f32.xlu2 %v4169_v49  ;;  %v4078_v2 = vpop.xlane.xlu1 %4077 }
 0x834   : > { %v4118_v13 = vmul.f32 0.03125, %v4078_v2  ;;  %v4034_v42 = vpop.f32.mrf.mxu2 }
 0x835   : > { %v4035_v54 = vadd.f32 %v8043_v56, %v4034_v42  ;;  %v471_v42 = vld [vmem:[%s5458_s17 + $0x78] sm:$0xff] }
 0x836   : > { %v8092_v41 = vsub.f32 %v4052_v8, %v4118_v13  ;;  %v457_v13 = vld [vmem:[%s5458_s17 + $0x8] sm:$0xff] }
 0x837   : > { %v8101_v60 = vadd.f32 %v4035_v54, %v466_v38  ;;  %v8162_v54 = vadd.f32 %v4012_v1, %v457_v13 }
 0x838   : > { %v4150_v15 = vmul.f32 %v8092_v41, %v8092_v41 }
 0x839   : > { %v4097_v45 = vsel %vm8911_vm14, %v8101_v60, 0.0  ;;  %vm8923_vm14 = vmmov %vm8899_vm0 }
 0x83a   : > { %v4172_v22 = vsel %vm8910_vm11, %v4150_v15, 0.0 }
 0x83b   : > { %4095 = vadd.xlane.f32.xlu2 %v4094_v58  ;;  %4173 = vadd.xlane.f32.xlu1 %v4172_v22 }
 0x83c   : > { %v4036_v35 = vpop.f32.mrf.mxu2 }
 0x83d   : > { %v4037_v40 = vadd.f32 %v8043_v56, %v4036_v35 }
 0x83f   : > { %v8112_v31 = vadd.f32 %v4037_v40, %v467_v62 }
 0x841   : > { %v4100_v17 = vsel %vm8914_vm4, %v8112_v31, 0.0 }
 0x843   : > { %4098 = vadd.xlane.f32.xlu2 %v4097_v45  ;;  %v4070_v45 = vsel %vm8921_vm1, %v8162_v54, 0.0 }
 0x844   : > { %v4039_v57 = vpop.f32.mrf.mxu2 }
 0x845   : > { %v4040_v55 = vadd.f32 %v8043_v56, %v4039_v57 }
 0x847   : > { %v8123_v32 = vadd.f32 %v4040_v55, %v468_v12  ;;  %v4010_v55 = vadd.f32 %v8043_v56, %v8030_v11 }
 0x849   : > { %v4103_v48 = vsel %vm8899_vm0, %v8123_v32, 0.0 }
 0x84c   : > { %v4041_v27 = vpop.f32.mrf.mxu2 }
 0x84d   : > { %v4042_v63 = vadd.f32 %v8043_v56, %v4041_v27 }
 0x84f   : > { %v8135_v19 = vadd.f32 %v4042_v63, %v469_v46 }
 0x851   : > { %v4106_v33 = vsel %vm8917_vm9, %v8135_v19, 0.0 }
 0x854   : > { %v4044_v21 = vpop.f32.mrf.mxu2 }
 0x855   : > { %v4045_v44 = vadd.f32 %v8043_v56, %v4044_v21 }
 0x857   : > { %v8147_v61 = vadd.f32 %v4045_v44, %v470_v0  ;;  %v8204_v0 = vld [vmem:[%s8512_s8] ss:$0 sm:$0xff] }
 0x859   : > { %v4109_v2 = vsel %vm8919_vm12, %v8147_v61, 0.0 }
 0x85c   : > { %v4046_v7 = vpop.f32.mrf.mxu2 }
 0x85d   : > { %v4047_v49 = vadd.f32 %v8043_v56, %v4046_v7 }
 0x85f   : > { %v8164_v58 = vadd.f32 %v4047_v49, %v471_v42 }
 0x861   : > { %v4112_v38 = vsel %vm8920_vm13, %v8164_v58, 0.0  ;;  %vm8927_vm13 = vmmov %vm8921_vm1 }
 0x870   : > { %v4081_v50 = vpop.xlane.xlu0 %4080 }
 0x871   : > { %v4119_v39 = vmul.f32 0.03125, %v4081_v50 }
 0x873   : > { %v8105_v36 = vsub.f32 %v4053_v52, %v4119_v39  ;;  %v5078_v39 = vld [vmem:[%s8513_s9] sm:$0xff] }
 0x874   : > { %5085 = vmatpush.bf16.msra.mxu1 %v5078_v39  ;;  %4516 = vmatpush.bf16.msrb.mxu0 %v5078_v39 }
 0x875   : > { %v4151_v14 = vmul.f32 %v8105_v36, %v8105_v36 }
 0x877   : > { %v4175_v43 = vsel %vm8912_vm8, %v4151_v14, 0.0  ;;  %vm8924_vm8 = vmmov %vm8899_vm0 }
 0x878   : > { %v4084_v8 = vpop.xlane.xlu2 %4083  ;;  %4176 = vadd.xlane.f32.xlu1 %v4175_v43 }
 0x879   : > { %v4120_v18 = vmul.f32 0.03125, %v4084_v8 }
 0x87b   : > { %v8114_v26 = vsub.f32 %v4054_v23, %v4120_v18 }
 0x87d   : > { %v4152_v9 = vmul.f32 %v8114_v26, %v8114_v26 }
 0x87f   : > { %v4178_v51 = vsel %vm8913_vm7, %v4152_v9, 0.0 }
 0x880   : > { %4179 = vadd.xlane.f32.xlu0 %v4178_v51  ;;  %4101 = vadd.xlane.f32.xlu1 %v4100_v17 }
 0x888   : > { %4104 = vadd.xlane.f32.xlu1 %v4103_v48 }
 0x889   : > { %v4087_v52 = vpop.xlane.xlu1 %4086 }
 0x88a   : > { %v4121_v53 = vmul.f32 0.03125, %v4087_v52 }
 0x88c   : > { %v8126_v3 = vsub.f32 %v8067_v16, %v4121_v53  ;;  %v5325_v53 = vld [vmem:[%s5458_s17] sm:$0xff] }
 0x88d   : > { %v8185_v48 = vadd.f32 %v5325_v53, %v4010_v55 }
 0x88e   : > { %v4153_v23 = vmul.f32 %v8126_v3, %v8126_v3 }
 0x890   : > { %v4181_v4 = vsel %vm8915_vm6, %v4153_v23, 0.0  ;;  %vm8925_vm6 = vmmov %vm8921_vm1 }
 0x891   : > { %v4090_v25 = vpop.xlane.xlu0 %4089  ;;  %4182 = vadd.xlane.f32.xlu0 %v4181_v4 }
 0x892   : > { %v4122_v5 = vmul.f32 0.03125, %v4090_v25  ;;  %v4067_v25 = vsel %vm8924_vm8, %v8185_v48, 0.0 }
 0x894   : > { %v8138_v16 = vsub.f32 %v8073_v24, %v4122_v5 }
 0x896   : > { %v4154_v20 = vmul.f32 %v8138_v16, %v8138_v16 }
 0x898   : > { %v4184_v59 = vsel %vm8916_vm10, %v4154_v20, 0.0  ;;  %v8198_v20 = vld [vmem:[%s8511_s7] ss:$0 sm:$0xff]  ;;  %vm8926_vm10 = vmmov %vm8921_vm1 }
 0x899   : > { %4185 = vadd.xlane.f32.xlu2 %v4184_v59  ;;  %4107 = vadd.xlane.f32.xlu0 %v4106_v33 }
 0x89d   : > { %v4093_v34 = vpop.xlane.xlu0 %4092 }
 0x89e   : > { %v4123_v37 = vmul.f32 0.03125, %v4093_v34 }
 0x8a0   : > { %v8150_v24 = vsub.f32 %v8079_v30, %v4123_v37 }
 0x8a1   : > { %4110 = vadd.xlane.f32.xlu0 %v4109_v2 }
 0x8a2   : > { %v4155_v29 = vmul.f32 %v8150_v24, %v8150_v24 }
 0x8a4   : > { %v4187_v28 = vsel %vm8918_vm5, %v4155_v29, 0.0 }
 0x8a5   : > { %4188 = vadd.xlane.f32.xlu2 %v4187_v28 }
 0x8a6   : > { %v4171_v30 = vpop.xlane.xlu2 %4170 }
 0x8a7   : > { %v4213_v15 = vmul.f32 0.03125, %v4171_v30 }
 0x8a9   : > { %v4229_v22 = vadd.f32 1e-05, %v4213_v15  ;;  %4071 = vadd.xlane.f32.xlu0 %v4070_v45 }
 0x8ab   : > { %5261 = vrsqrt.f32 %v4229_v22  ;;  %vm4269_vm2 = vweird.f32 %v4229_v22 }
 0x8ad   : > { %4113 = vadd.xlane.f32.xlu2 %v4112_v38 }
 0x8ae   : > { %v4096_v35 = vpop.xlane.xlu2 %4095  ;;  %v4174_v50 = vpop.xlane.xlu1 %4173 }
 0x8af   : > { %v4124_v14 = vmul.f32 0.03125, %v4096_v35  ;;  %v4214_v40 = vmul.f32 0.03125, %v4174_v50 }
 0x8b1   : > { %v5262_v43 = vpop.eup %5261  ;;  %v8177_v62 = vsub.f32 %v8090_v10, %v4124_v14  ;;  %v4230_v57 = vadd.f32 1e-05, %v4214_v40 }
 0x8b2   : > { %v4264_v8 = vmul.f32 %v5262_v43, %v4229_v22  ;;  %vm4270_vm3 = vweird.f32 %v5262_v43 }
 0x8b3   : > { %5263 = vrsqrt.f32 %v4230_v57  ;;  %v4156_v18 = vmul.f32 %v8177_v62, %v8177_v62  ;;  %vm4271_vm11 = vmor %vm4269_vm2, %vm4270_vm3  ;;  %vm4279_vm4 = vweird.f32 %v4230_v57 }
 0x8b4   : > { %v4265_v9 = vmul.f32 %v5262_v43, %v4264_v8  ;;  %vm8928_vm2 = vmmov %vm8925_vm6 }
 0x8b5   : > { %v4190_v51 = vsel %vm8922_vm15, %v4156_v18, 0.0 }
 0x8b6   : > { %v4266_v17 = vmul.f32 0.5, %v4265_v9  ;;  %v4099_v12 = vpop.xlane.xlu2 %4098  ;;  %4191 = vadd.xlane.f32.xlu1 %v4190_v51 }
 0x8b7   : > { %v4125_v10 = vmul.f32 0.03125, %v4099_v12 }
 0x8b8   : > { %v4267_v27 = vsub.f32 1.5, %v4266_v17 }
 0x8b9   : > { %v5264_v52 = vpop.eup %5263  ;;  %v8188_v23 = vsub.f32 %v8101_v60, %v4125_v10 }
 0x8ba   : > { %v4268_v63 = vmul.f32 %v5262_v43, %v4267_v27  ;;  %v4274_v4 = vmul.f32 %v5264_v52, %v4230_v57  ;;  %vm4280_vm7 = vweird.f32 %v5264_v52 }
 0x8bb   : > { %v4157_v11 = vmul.f32 %v8188_v23, %v8188_v23  ;;  %vm4281_vm0 = vmor %vm4279_vm4, %vm4280_vm7 }
 0x8bc   : > { %v4275_v56 = vmul.f32 %v5264_v52, %v4274_v4  ;;  %v4272_v5 = vsel %vm4271_vm11, %v5262_v43, %v4268_v63  ;;  %vm8930_vm4 = vmmov %vm8928_vm2 }
 0x8bd   : > { %v4193_v46 = vsel %vm8923_vm14, %v4157_v11, 0.0  ;;  %v4405_v44 = vmul.f32 %v4272_v5, %v8083_v47  ;;  %vm8929_vm14 = vmmov %vm8928_vm2 }
 0x8be   : > { %v4276_v21 = vmul.f32 0.5, %v4275_v56  ;;  %4194 = vadd.xlane.f32.xlu2 %v4193_v46  ;;  %4068 = vadd.xlane.f32.xlu1 %v4067_v25 }
 0x8bf   : > { %v4424_v34 = vmul.f32 %v8198_v20, %v4405_v44 }
 0x8c0   : > { %v4277_v60 = vsub.f32 1.5, %v4276_v21 }
 0x8c1   : > { %v8210_v29 = vadd.f32 %v8204_v0, %v4424_v34 }
 0x8c2   : > { %v4278_v59 = vmul.f32 %v5264_v52, %v4277_v60 }
 0x8c4   : > { %v4282_v33 = vsel %vm4281_vm0, %v5264_v52, %v4278_v59 }
 0x8c5   : > { %v4406_v37 = vmul.f32 %v4282_v33, %v8092_v41 }
 0x8c7   : > { %v4425_v7 = vmul.f32 %v8198_v20, %v4406_v37 }
 0x8c9   : > { %v8213_v47 = vadd.f32 %v8204_v0, %v4425_v7 }
 0x8cb   : > { %v4458_v1 = vpack.c.bf16 %v8213_v47, %v8210_v29 }
 0x8cd   : > { %5031 = vmatmul.msk.bf16.vlgmr.msra.gmra.mxu1 %vm8925_vm6, %v4458_v1 }
 0x8eb   : > { %v4177_v49 = vpop.xlane.xlu1 %4176 }
 0x8ec   : > { %v4215_v28 = vmul.f32 0.03125, %v4177_v49 }
 0x8ee   : > { %v4231_v2 = vadd.f32 1e-05, %v4215_v28 }
 0x8f0   : > { %5265 = vrsqrt.f32 %v4231_v2  ;;  %vm4289_vm5 = vweird.f32 %v4231_v2 }
 0x8f3   : > { %v4180_v13 = vpop.xlane.xlu0 %4179  ;;  %v4102_v42 = vpop.xlane.xlu1 %4101 }
 0x8f4   : > { %v4216_v41 = vmul.f32 0.03125, %v4180_v13  ;;  %v4126_v30 = vmul.f32 0.03125, %v4102_v42 }
 0x8f6   : > { %v5266_v15 = vpop.eup %5265  ;;  %v4232_v22 = vadd.f32 1e-05, %v4216_v41  ;;  %v8219_v6 = vsub.f32 %v8112_v31, %v4126_v30 }
 0x8f7   : > { %v4284_v38 = vmul.f32 %v5266_v15, %v4231_v2  ;;  %vm4290_vm9 = vweird.f32 %v5266_v15 }
 0x8f8   : > { %5267 = vrsqrt.f32 %v4232_v22  ;;  %v4158_v45 = vmul.f32 %v8219_v6, %v8219_v6  ;;  %vm4291_vm12 = vmor %vm4289_vm5, %vm4290_vm9  ;;  %vm4299_vm15 = vweird.f32 %v4232_v22 }
 0x8f9   : > { %v4285_v35 = vmul.f32 %v5266_v15, %v4284_v38  ;;  %vm8931_vm9 = vmmov %vm8928_vm2 }
 0x8fa   : > { %v4196_v50 = vsel %vm8926_vm10, %v4158_v45, 0.0  ;;  %vm8932_vm5 = vmmov %vm8928_vm2 }
 0x8fb   : > { %v4286_v39 = vmul.f32 0.5, %v4285_v35  ;;  %4197 = vadd.xlane.f32.xlu1 %v4196_v50  ;;  %v4105_v14 = vpop.xlane.xlu1 %4104 }
 0x8fc   : > { %v4127_v40 = vmul.f32 0.03125, %v4105_v14 }
 0x8fd   : > { %v4287_v43 = vsub.f32 1.5, %v4286_v39 }
 0x8fe   : > { %v5268_v8 = vpop.eup %5267  ;;  %v8225_v9 = vsub.f32 %v8123_v32, %v4127_v40 }
 0x8ff   : > { %v4288_v31 = vmul.f32 %v5266_v15, %v4287_v43  ;;  %v4294_v55 = vmul.f32 %v5268_v8, %v4232_v22  ;;  %vm4300_vm1 = vweird.f32 %v5268_v8 }
 0x900   : > { %v4159_v17 = vmul.f32 %v8225_v9, %v8225_v9  ;;  %vm4301_vm3 = vmor %vm4299_vm15, %vm4300_vm1 }
 0x901   : > { %v4295_v12 = vmul.f32 %v5268_v8, %v4294_v55  ;;  %v4292_v27 = vsel %vm4291_vm12, %v5266_v15, %v4288_v31  ;;  %vm8933_vm12 = vmmov %vm8928_vm2 }
 0x902   : > { %v4199_v10 = vsel %vm8927_vm13, %v4159_v17, 0.0  ;;  %v4407_v4 = vmul.f32 %v4292_v27, %v8105_v36 }
 0x903   : > { %v4296_v52 = vmul.f32 0.5, %v4295_v12  ;;  %4200 = vadd.xlane.f32.xlu0 %v4199_v10 }
 0x904   : > { %v4183_v57 = vpop.xlane.xlu0 %4182  ;;  %v4426_v36 = vmul.f32 %v8198_v20, %v4407_v4 }
 0x905   : > { %v4217_v18 = vmul.f32 0.03125, %v4183_v57  ;;  %v4297_v53 = vsub.f32 1.5, %v4296_v52 }
 0x906   : > { %v8241_v13 = vadd.f32 %v8204_v0, %v4426_v36 }
 0x907   : > { %v4233_v51 = vadd.f32 1e-05, %v4217_v18  ;;  %v4298_v46 = vmul.f32 %v5268_v8, %v4297_v53 }
 0x909   : > { %5269 = vrsqrt.f32 %v4233_v51  ;;  %v4302_v60 = vsel %vm4301_vm3, %v5268_v8, %v4298_v46  ;;  %vm4309_vm8 = vweird.f32 %v4233_v51  ;;  %vm8934_vm3 = vmmov %vm8928_vm2 }
 0x90a   : > { %v4408_v59 = vmul.f32 %v4302_v60, %v8114_v26 }
 0x90c   : > { %v4186_v32 = vpop.xlane.xlu2 %4185  ;;  %v4108_v63 = vpop.xlane.xlu0 %4107  ;;  %v4427_v7 = vmul.f32 %v8198_v20, %v4408_v59 }
 0x90d   : > { %v4218_v11 = vmul.f32 0.03125, %v4186_v32  ;;  %v4128_v56 = vmul.f32 0.03125, %v4108_v63 }
 0x90e   : > { %v8244_v26 = vadd.f32 %v8204_v0, %v4427_v7 }
 0x90f   : > { %v5270_v25 = vpop.eup %5269  ;;  %v4234_v5 = vadd.f32 1e-05, %v4218_v11  ;;  %v8232_v21 = vsub.f32 %v8135_v19, %v4128_v56 }
 0x910   : > { %v4304_v44 = vmul.f32 %v5270_v25, %v4233_v51  ;;  %v4459_v22 = vpack.c.bf16 %v8244_v26, %v8241_v13  ;;  %vm4310_vm11 = vweird.f32 %v5270_v25 }
 0x911   : > { %5271 = vrsqrt.f32 %v4234_v5  ;;  %v4160_v33 = vmul.f32 %v8232_v21, %v8232_v21  ;;  %vm4311_vm7 = vmor %vm4309_vm8, %vm4310_vm11  ;;  %vm4319_vm6 = vweird.f32 %v4234_v5 }
 0x912   : > { %v4305_v34 = vmul.f32 %v5270_v25, %v4304_v44  ;;  %5032 = vmatmul.msk.bf16.gmra.mxu1 %vm8929_vm14, %v4459_v22  ;;  %vm8935_vm8 = vmmov %vm8934_vm3 }
 0x913   : > { %v4202_v37 = vsel %vm8928_vm2, %v4160_v33, 0.0 }
 0x914   : > { %v4306_v1 = vmul.f32 0.5, %v4305_v34  ;;  %4203 = vadd.xlane.f32.xlu2 %v4202_v37  ;;  %v4111_v19 = vpop.xlane.xlu0 %4110 }
 0x915   : > { %v4129_v2 = vmul.f32 0.03125, %v4111_v19 }
 0x916   : > { %v4307_v42 = vsub.f32 1.5, %v4306_v1 }
 0x917   : > { %v5272_v41 = vpop.eup %5271  ;;  %v8247_v15 = vsub.f32 %v8147_v61, %v4129_v2 }
 0x918   : > { %v4189_v49 = vpop.xlane.xlu2 %4188  ;;  %v4308_v38 = vmul.f32 %v5270_v25, %v4307_v42  ;;  %v4314_v45 = vmul.f32 %v5272_v41, %v4234_v5  ;;  %vm4320_vm0 = vweird.f32 %v5272_v41 }
 0x919   : > { %v4219_v28 = vmul.f32 0.03125, %v4189_v49  ;;  %v4161_v35 = vmul.f32 %v8247_v15, %v8247_v15  ;;  %vm4321_vm10 = vmor %vm4319_vm6, %vm4320_vm0 }
 0x91a   : > { %v4315_v50 = vmul.f32 %v5272_v41, %v4314_v45  ;;  %v4312_v14 = vsel %vm4311_vm7, %v5270_v25, %v4308_v38  ;;  %vm4746_vm7 = vcmask 523264  }
 0x91b   : > { %v4235_v30 = vadd.f32 1e-05, %v4219_v28  ;;  %v4205_v39 = vsel %vm8930_vm4, %v4161_v35, 0.0  ;;  %v4409_v55 = vmul.f32 %v4312_v14, %v8126_v3 }
 0x91c   : > { %v4316_v61 = vmul.f32 0.5, %v4315_v50  ;;  %v4072_v43 = vpop.xlane.xlu0 %4071  ;;  %4206 = vadd.xlane.f32.xlu1 %v4205_v39 }
 0x91d   : > { %5273 = vrsqrt.f32 %v4235_v30  ;;  %v4116_v8 = vmul.f32 0.03125, %v4072_v43  ;;  %vm4329_vm1 = vweird.f32 %v4235_v30  ;;  %v5082_v43 = vld [vmem:[%s8515_s11 + $0x10] sm:$0xff] }
 0x91e   : > { %v4317_v18 = vsub.f32 1.5, %v4316_v61  ;;  %v5083_v61 = vld [vmem:[%s8515_s11 + $0x18] sm:$0xff] }
 0x91f   : > { %v8260_v51 = vsub.f32 %v8162_v54, %v4116_v8  ;;  %v4428_v54 = vmul.f32 %v8198_v20, %v4409_v55  ;;  %5086 = vmatpush.bf16.msra.mxu3 %v5083_v61  ;;  %4775 = vmatpush.bf16.msra.mxu0 %v5083_v61 }
 0x920   : > { %v4114_v40 = vpop.xlane.xlu2 %4113  ;;  %v4318_v12 = vmul.f32 %v5272_v41, %v4317_v18 }
 0x921   : > { %v4130_v57 = vmul.f32 0.03125, %v4114_v40  ;;  %v4148_v27 = vmul.f32 %v8260_v51, %v8260_v51  ;;  %v8272_v46 = vadd.f32 %v8204_v0, %v4428_v54 }
 0x922   : > { %v4322_v53 = vsel %vm4321_vm10, %v5272_v41, %v4318_v12 }
 0x923   : > { %v5274_v31 = vpop.eup %5273  ;;  %v8257_v17 = vsub.f32 %v8164_v58, %v4130_v57  ;;  %v4410_v32 = vmul.f32 %v4322_v53, %v8138_v16  ;;  %v4166_v3 = vsel %vm8931_vm9, %v4148_v27, 0.0  ;;  %5087 = vmatpush.bf16.msra.mxu3 %v5082_v43  ;;  %4776 = vmatpush.bf16.msra.mxu0 %v5082_v43 }
 0x924   : > { %v4324_v10 = vmul.f32 %v5274_v31, %v4235_v30  ;;  %4167 = vadd.xlane.f32.xlu1 %v4166_v3  ;;  %vm4330_vm13 = vweird.f32 %v5274_v31 }
 0x925   : > { %v4162_v52 = vmul.f32 %v8257_v17, %v8257_v17  ;;  %v4429_v4 = vmul.f32 %v8198_v20, %v4410_v32  ;;  %vm4331_vm15 = vmor %vm4329_vm1, %vm4330_vm13 }
 0x926   : > { %v4325_v63 = vmul.f32 %v5274_v31, %v4324_v10  ;;  %vm8936_vm13 = vmmov %vm8934_vm3 }
 0x927   : > { %v4208_v58 = vsel %vm8932_vm5, %v4162_v52, 0.0  ;;  %v8275_v25 = vadd.f32 %v8204_v0, %v4429_v4 }
 0x928   : > { %4209 = vadd.xlane.f32.xlu0 %v4208_v58  ;;  %v4326_v5 = vmul.f32 0.5, %v4325_v63 }
 0x929   : > { %v4192_v11 = vpop.xlane.xlu1 %4191  ;;  %v4460_v60 = vpack.c.bf16 %v8275_v25, %v8272_v46 }
 0x92a   : > { %v4220_v56 = vmul.f32 0.03125, %v4192_v11  ;;  %v4327_v44 = vsub.f32 1.5, %v4326_v5 }
 0x92b   : > { %5033 = vmatmul.msk.bf16.gmra.mxu1 %vm8933_vm12, %v4460_v60  ;;  %v5081_v60 = vld [vmem:[%s8515_s11 + $0x8] sm:$0xff] }
 0x92c   : > { %v4236_v16 = vadd.f32 1e-05, %v4220_v56  ;;  %v4328_v37 = vmul.f32 %v5274_v31, %v4327_v44  ;;  %5088 = vmatpush.bf16.msra.mxu3 %v5081_v60  ;;  %4777 = vmatpush.bf16.msra.mxu0 %v5081_v60 }
 0x92e   : > { %5275 = vrsqrt.f32 %v4236_v16  ;;  %v4332_v28 = vsel %vm4331_vm15, %v5274_v31, %v4328_v37  ;;  %vm4339_vm11 = vweird.f32 %v4236_v16 }
 0x92f   : > { %v4411_v41 = vmul.f32 %v4332_v28, %v8150_v24  ;;  %v8301_v24 = vld [vmem:[%s8514_s10] ss:$0 sm:$0xff] }
 0x931   : > { %v4069_v59 = vpop.xlane.xlu1 %4068  ;;  %v4430_v45 = vmul.f32 %v8198_v20, %v4411_v41  ;;  %v4195_v3 = vpop.xlane.xlu2 %4194 }
 0x932   : > { %v4115_v33 = vmul.f32 0.03125, %v4069_v59  ;;  %v4221_v58 = vmul.f32 0.03125, %v4195_v3 }
 0x933   : > { %v8291_v35 = vadd.f32 %v8204_v0, %v4430_v45 }
 0x934   : > { %v5276_v36 = vpop.eup %5275  ;;  %v8281_v34 = vsub.f32 %v8185_v48, %v4115_v33  ;;  %v4237_v4 = vadd.f32 1e-05, %v4221_v58  ;;  %v5080_v33 = vld [vmem:[%s8515_s11] sm:$0xff] }
 0x935   : > { %v4334_v7 = vmul.f32 %v5276_v36, %v4236_v16  ;;  %vm4340_vm2 = vweird.f32 %v5276_v36  ;;  %5089 = vmatpush.bf16.msra.mxu3 %v5080_v33  ;;  %4778 = vmatpush.bf16.msra.mxu0 %v5080_v33 }
 0x936   : > { %v4147_v1 = vmul.f32 %v8281_v34, %v8281_v34  ;;  %vm4341_vm14 = vmor %vm4339_vm11, %vm4340_vm2  ;;  %vm4349_vm0 = vweird.f32 %v4237_v4 }
 0x937   : > { %v4335_v49 = vmul.f32 %v5276_v36, %v4334_v7 }
 0x938   : > { %v4163_v19 = vsel %vm8934_vm3, %v4147_v1, 0.0 }
 0x939   : > { %v4336_v2 = vmul.f32 0.5, %v4335_v49  ;;  %4164 = vadd.xlane.f32.xlu2 %v4163_v19 }
 0x93b   : > { %v4337_v42 = vsub.f32 1.5, %v4336_v2 }
 0x93d   : > { %v4338_v48 = vmul.f32 %v5276_v36, %v4337_v42 }
 0x93f   : > { %v4342_v22 = vsel %vm4341_vm14, %v5276_v36, %v4338_v48 }
 0x940   : > { %v4412_v38 = vmul.f32 %v4342_v22, %v8177_v62 }
 0x942   : > { %v4431_v30 = vmul.f32 %v8198_v20, %v4412_v38 }
 0x944   : > { %v8294_v50 = vadd.f32 %v8204_v0, %v4431_v30 }
 0x946   : > { %v4461_v39 = vpack.c.bf16 %v8294_v50, %v8291_v35 }
 0x948   : > { %5034 = vmatmul.msk.bf16.gmra.mxu1 %vm8935_vm8, %v4461_v39 }
 0x94a   : > { %v4523_v62 = vpop.f32.mrf.mxu1 }
 0x94b   : > { %v4524_v14 = vadd.f32 %v8301_v24, %v4523_v62 }
 0x94d   : > { %v4560_v40 = vmul.f32 %v4524_v14, %v4524_v14 }
 0x94f   : > { %v4576_v57 = vmul.f32 %v4560_v40, %v4524_v14 }
 0x951   : > { %v4592_v55 = vmul.f32 0.044715, %v4576_v57 }
 0x952   : > { %v4525_v8 = vpop.f32.mrf.mxu1 }
 0x953   : > { %v4526_v18 = vadd.f32 %v8301_v24, %v4525_v8  ;;  %v4608_v27 = vadd.f32 %v4592_v55, %v4524_v14 }
 0x955   : > { %v4561_v31 = vmul.f32 %v4526_v18, %v4526_v18  ;;  %v4624_v32 = vmul.f32 0.7978846, %v4608_v27 }
 0x957   : > { %v4577_v12 = vmul.f32 %v4561_v31, %v4526_v18 }
 0x959   : > { %v4593_v10 = vmul.f32 0.044715, %v4577_v12 }
 0x95b   : > { %v4609_v52 = vadd.f32 %v4593_v10, %v4526_v18 }
 0x95d   : > { %v4625_v53 = vmul.f32 0.7978846, %v4609_v52 }
 0x95f   : > { %5277 = vtanh.f32 %v4625_v53 }
 0x960   : > { %5279 = vtanh.f32 %v4624_v32 }
 0x961   : > { %5281 = vrsqrt.f32 %v4237_v4 }
 0x965   : > { %v5278_v54 = vpop.eup %5277 }
 0x966   : > { %v5280_v63 = vpop.eup %5279  ;;  %v4657_v11 = vadd.f32 1.0, %v5278_v54 }
 0x967   : > { %v4656_v56 = vadd.f32 1.0, %v5280_v63  ;;  %v5282_v59 = vpop.eup %5281 }
 0x968   : > { %v4673_v16 = vmul.f32 0.5, %v4657_v11  ;;  %v4344_v37 = vmul.f32 %v5282_v59, %v4237_v4  ;;  %vm4350_vm4 = vweird.f32 %v5282_v59 }
 0x969   : > { %v4672_v5 = vmul.f32 0.5, %v4656_v56  ;;  %vm4351_vm6 = vmor %vm4349_vm0, %vm4350_vm4 }
 0x96a   : > { %v4689_v44 = vmul.f32 %v4673_v16, %v4526_v18  ;;  %v4345_v1 = vmul.f32 %v5282_v59, %v4344_v37  ;;  %vm8937_vm0 = vmmov %vm8936_vm13 }
 0x96b   : > { %v4688_v36 = vmul.f32 %v4672_v5, %v4524_v14 }
 0x96c   : > { %v4346_v2 = vmul.f32 0.5, %v4345_v1 }
 0x96d   : > { %v4703_v7 = vpack.c.bf16 %v4689_v44, %v4688_v36 }
 0x96e   : > { %v4198_v49 = vpop.xlane.xlu1 %4197  ;;  %v4347_v42 = vsub.f32 1.5, %v4346_v2 }
 0x96f   : > { %5055 = vmatmul.msk.bf16.vlgmr.msra.gmra.mxu3 %vm4746_vm7, %v4703_v7  ;;  %v4222_v19 = vmul.f32 0.03125, %v4198_v49 }
 0x970   : > { %v4348_v45 = vmul.f32 %v5282_v59, %v4347_v42 }
 0x971   : > { %v4238_v28 = vadd.f32 1e-05, %v4222_v19 }
 0x972   : > { %v4352_v62 = vsel %vm4351_vm6, %v5282_v59, %v4348_v45 }
 0x973   : > { %5283 = vrsqrt.f32 %v4238_v28  ;;  %v4413_v57 = vmul.f32 %v4352_v62, %v8188_v23  ;;  %vm4359_vm9 = vweird.f32 %v4238_v28 }
 0x975   : > { %v4432_v52 = vmul.f32 %v8198_v20, %v4413_v57 }
 0x976   : > { %v4201_v41 = vpop.xlane.xlu0 %4200 }
 0x977   : > { %v4223_v48 = vmul.f32 0.03125, %v4201_v41  ;;  %v8324_v23 = vadd.f32 %v8204_v0, %v4432_v52 }
 0x979   : > { %v5284_v22 = vpop.eup %5283  ;;  %v4239_v38 = vadd.f32 1e-05, %v4223_v48 }
 0x97a   : > { %v4354_v30 = vmul.f32 %v5284_v22, %v4238_v28  ;;  %vm4360_vm10 = vweird.f32 %v5284_v22 }
 0x97b   : > { %5285 = vrsqrt.f32 %v4239_v38  ;;  %vm4361_vm5 = vmor %vm4359_vm9, %vm4360_vm10  ;;  %vm4369_vm1 = vweird.f32 %v4239_v38 }
 0x97c   : > { %v4355_v39 = vmul.f32 %v5284_v22, %v4354_v30 }
 0x97e   : > { %v4356_v14 = vmul.f32 0.5, %v4355_v39 }
 0x980   : > { %v4357_v61 = vsub.f32 1.5, %v4356_v14 }
 0x981   : > { %v5286_v43 = vpop.eup %5285 }
 0x982   : > { %v4358_v18 = vmul.f32 %v5284_v22, %v4357_v61  ;;  %v4364_v31 = vmul.f32 %v5286_v43, %v4239_v38  ;;  %vm4370_vm12 = vweird.f32 %v5286_v43 }
 0x983   : > { %vm4371_vm15 = vmor %vm4369_vm1, %vm4370_vm12 }
 0x984   : > { %v4362_v12 = vsel %vm4361_vm5, %v5284_v22, %v4358_v18  ;;  %v4365_v10 = vmul.f32 %v5286_v43, %v4364_v31 }
 0x985   : > { %v4414_v27 = vmul.f32 %v4362_v12, %v8219_v6 }
 0x986   : > { %v4366_v53 = vmul.f32 0.5, %v4365_v10 }
 0x987   : > { %v4204_v40 = vpop.xlane.xlu2 %4203  ;;  %v4433_v32 = vmul.f32 %v8198_v20, %v4414_v27 }
 0x988   : > { %v4224_v8 = vmul.f32 0.03125, %v4204_v40  ;;  %v4367_v3 = vsub.f32 1.5, %v4366_v53 }
 0x989   : > { %v8327_v63 = vadd.f32 %v8204_v0, %v4433_v32 }
 0x98a   : > { %v4240_v55 = vadd.f32 1e-05, %v4224_v8  ;;  %v4368_v56 = vmul.f32 %v5286_v43, %v4367_v3 }
 0x98b   : > { %v4462_v6 = vpack.c.bf16 %v8327_v63, %v8324_v23 }
 0x98c   : > { %5287 = vrsqrt.f32 %v4240_v55  ;;  %v4372_v44 = vsel %vm4371_vm15, %v5286_v43, %v4368_v56  ;;  %vm4379_vm2 = vweird.f32 %v4240_v55 }
 0x98d   : > { %5035 = vmatmul.msk.bf16.gmra.mxu1 %vm8936_vm13, %v4462_v6  ;;  %v4415_v2 = vmul.f32 %v4372_v44, %v8225_v9  ;;  %vm8938_vm13 = vmmov %vm8937_vm0 }
 0x98f   : > { %v4207_v58 = vpop.xlane.xlu1 %4206  ;;  %v4528_v60 = vpop.f32.mrf.mxu1  ;;  %v4434_v9 = vmul.f32 %v8198_v20, %v4415_v2 }
 0x990   : > { %v4225_v54 = vmul.f32 0.03125, %v4207_v58  ;;  %v8333_v37 = vadd.f32 %v8301_v24, %v4528_v60 }
 0x991   : > { %v8352_v12 = vadd.f32 %v8204_v0, %v4434_v9 }
 0x992   : > { %v5288_v4 = vpop.eup %5287  ;;  %v4241_v11 = vadd.f32 1e-05, %v4225_v54  ;;  %v4562_v19 = vmul.f32 %v8333_v37, %v8333_v37 }
 0x993   : > { %v4374_v16 = vmul.f32 %v5288_v4, %v4240_v55  ;;  %vm4380_vm3 = vweird.f32 %v5288_v4 }
 0x994   : > { %5289 = vrsqrt.f32 %v4241_v11  ;;  %v4578_v38 = vmul.f32 %v4562_v19, %v8333_v37  ;;  %vm4381_vm11 = vmor %vm4379_vm2, %vm4380_vm3  ;;  %vm4389_vm8 = vweird.f32 %v4241_v11 }
 0x995   : > { %v4375_v5 = vmul.f32 %v5288_v4, %v4374_v16 }
 0x996   : > { %v4594_v39 = vmul.f32 0.044715, %v4578_v38 }
 0x997   : > { %v4376_v59 = vmul.f32 0.5, %v4375_v5  ;;  %v4168_v36 = vpop.xlane.xlu1 %4167  ;;  %v4530_v14 = vpop.f32.mrf.mxu1 }
 0x998   : > { %v4212_v1 = vmul.f32 0.03125, %v4168_v36  ;;  %v4610_v40 = vadd.f32 %v4594_v39, %v8333_v37  ;;  %v8346_v43 = vadd.f32 %v8301_v24, %v4530_v14 }
 0x999   : > { %v4377_v49 = vsub.f32 1.5, %v4376_v59 }
 0x99a   : > { %v5290_v28 = vpop.eup %5289  ;;  %v8338_v41 = vadd.f32 1e-05, %v4212_v1  ;;  %v4563_v18 = vmul.f32 %v8346_v43, %v8346_v43  ;;  %v4626_v55 = vmul.f32 0.7978846, %v4610_v40 }
 0x99b   : > { %v4210_v33 = vpop.xlane.xlu0 %4209  ;;  %v4378_v48 = vmul.f32 %v5288_v4, %v4377_v49  ;;  %v4384_v22 = vmul.f32 %v5290_v28, %v4241_v11  ;;  %vm4390_vm14 = vweird.f32 %v5290_v28 }
 0x99c   : > { %v4226_v7 = vmul.f32 0.03125, %v4210_v33  ;;  %v4579_v32 = vmul.f32 %v4563_v18, %v8346_v43  ;;  %vm4391_vm4 = vmor %vm4389_vm8, %vm4390_vm14  ;;  %vm4259_vm12 = vweird.f32 %v8338_v41 }
 0x99d   : > { %v4382_v45 = vsel %vm4381_vm11, %v5288_v4, %v4378_v48  ;;  %v4385_v30 = vmul.f32 %v5290_v28, %v4384_v22  ;;  %vm8939_vm11 = vmmov %vm8937_vm0 }
 0x99e   : > { %v4242_v42 = vadd.f32 1e-05, %v4226_v7  ;;  %v4416_v62 = vmul.f32 %v4382_v45, %v8232_v21  ;;  %v4595_v54 = vmul.f32 0.044715, %v4579_v32  ;;  %vm8940_vm14 = vmmov %vm8937_vm0 }
 0x99f   : > { %v4386_v61 = vmul.f32 0.5, %v4385_v30  ;;  %vm8941_vm8 = vmmov %vm8937_vm0 }
 0x9a0   : > { %5291 = vrsqrt.f32 %v4242_v42  ;;  %v4435_v57 = vmul.f32 %v8198_v20, %v4416_v62  ;;  %v4611_v16 = vadd.f32 %v4595_v54, %v8346_v43  ;;  %vm4399_vm10 = vweird.f32 %v4242_v42 }
 0x9a1   : > { %5293 = vrsqrt.f32 %v8338_v41  ;;  %v4387_v8 = vsub.f32 1.5, %v4386_v61 }
 0x9a2   : > { %v8355_v21 = vadd.f32 %v8204_v0, %v4435_v57  ;;  %5295 = vtanh.f32 %v4626_v55  ;;  %v4627_v36 = vmul.f32 0.7978846, %v4611_v16 }
 0x9a3   : > { %v4388_v27 = vmul.f32 %v5290_v28, %v4387_v8 }
 0x9a4   : > { %v4463_v3 = vpack.c.bf16 %v8355_v21, %v8352_v12  ;;  %5297 = vtanh.f32 %v4627_v36 }
 0x9a5   : > { %v4392_v4 = vsel %vm4391_vm4, %v5290_v28, %v4388_v27  ;;  %vm8942_vm4 = vmmov %vm8937_vm0 }
 0x9a6   : > { %v5292_v31 = vpop.eup %5291  ;;  %5036 = vmatmul.msk.bf16.gmra.mxu1 %vm8937_vm0, %v4463_v3  ;;  %v4417_v33 = vmul.f32 %v4392_v4, %v8247_v15 }
 0x9a7   : > { %v8357_v10 = vpop.eup %5293  ;;  %v4394_v52 = vmul.f32 %v5292_v31, %v4242_v42  ;;  %vm4400_vm6 = vweird.f32 %v5292_v31 }
 0x9a8   : > { %v4254_v53 = vmul.f32 %v8357_v10, %v8338_v41  ;;  %v4533_v5 = vpop.f32.mrf.mxu1  ;;  %v5296_v19 = vpop.eup %5295  ;;  %vm4401_vm9 = vmor %vm4399_vm10, %vm4400_vm6  ;;  %v4436_v38 = vmul.f32 %v8198_v20, %v4417_v33  ;;  %vm4260_vm5 = vweird.f32 %v8357_v10 }
 0x9a9   : > { %v4395_v58 = vmul.f32 %v5292_v31, %v4394_v52  ;;  %v8368_v59 = vadd.f32 %v8301_v24, %v4533_v5  ;;  %v4658_v15 = vadd.f32 1.0, %v5296_v19  ;;  %vm4261_vm1 = vmor %vm4259_vm12, %vm4260_vm5 }
 0x9aa   : > { %v4255_v56 = vmul.f32 %v8357_v10, %v4254_v53  ;;  %v5298_v9 = vpop.eup %5297  ;;  %v8380_v61 = vadd.f32 %v8204_v0, %v4436_v38  ;;  %vm8943_vm6 = vmmov %vm8937_vm0 }
 0x9ab   : > { %v4396_v6 = vmul.f32 0.5, %v4395_v58  ;;  %v4564_v1 = vmul.f32 %v8368_v59, %v8368_v59  ;;  %v4674_v57 = vmul.f32 0.5, %v4658_v15  ;;  %v4659_v8 = vadd.f32 1.0, %v5298_v9  ;;  %vm8944_vm10 = vmmov %vm8937_vm0 }
 0x9ac   : > { %v4165_v60 = vpop.xlane.xlu2 %4164  ;;  %v4256_v28 = vmul.f32 0.5, %v4255_v56  ;;  %vm8946_vm5 = vmmov %vm8937_vm0 }
 0x9ad   : > { %v4397_v44 = vsub.f32 1.5, %v4396_v6  ;;  %v4211_v11 = vmul.f32 0.03125, %v4165_v60  ;;  %v4580_v48 = vmul.f32 %v4564_v1, %v8368_v59  ;;  %v4675_v53 = vmul.f32 0.5, %v4659_v8  ;;  %vm8948_vm12 = vmmov %vm8937_vm0 }
 0x9ae   : > { %v4257_v30 = vsub.f32 1.5, %v4256_v28  ;;  %v4690_v58 = vmul.f32 %v4674_v57, %v8333_v37 }
 0x9af   : > { %v4398_v7 = vmul.f32 %v5292_v31, %v4397_v44  ;;  %v4227_v49 = vadd.f32 1e-05, %v4211_v11  ;;  %v4596_v45 = vmul.f32 0.044715, %v4580_v48  ;;  %v4691_v54 = vmul.f32 %v4675_v53, %v8346_v43 }
 0x9b0   : > { %v4535_v39 = vpop.f32.mrf.mxu1  ;;  %v4258_v55 = vmul.f32 %v8357_v10, %v4257_v30 }
 0x9b1   : > { %v4402_v2 = vsel %vm4401_vm9, %v5292_v31, %v4398_v7  ;;  %5299 = vrsqrt.f32 %v4227_v49  ;;  %v4612_v62 = vadd.f32 %v4596_v45, %v8368_v59  ;;  %v4536_v14 = vadd.f32 %v8301_v24, %v4535_v39  ;;  %vm8945_vm9 = vmmov %vm8937_vm0 }
 0x9b2   : > { %v4418_v22 = vmul.f32 %v4402_v2, %v8257_v17  ;;  %v4262_v6 = vsel %vm4261_vm1, %v8357_v10, %v4258_v55  ;;  %v4704_v5 = vpack.c.bf16 %v4691_v54, %v4690_v58  ;;  %vm4249_vm3 = vweird.f32 %v4227_v49  ;;  %v8416_v54 = vld [vmem:[%s8516_s12] ss:$0 sm:$0xff]  ;;  %vm8950_vm1 = vmmov %vm8937_vm0 }
 0x9b3   : > { %v4628_v18 = vmul.f32 0.7978846, %v4612_v62  ;;  %v4565_v31 = vmul.f32 %v4536_v14, %v4536_v14  ;;  %v4404_v44 = vmul.f32 %v4262_v6, %v8260_v51 }
 0x9b4   : > { %v4437_v42 = vmul.f32 %v8198_v20, %v4418_v22  ;;  %5056 = vmatmul.msk.bf16.gmra.mxu3 %vm4746_vm7, %v4704_v5 }
 0x9b5   : > { %v4581_v32 = vmul.f32 %v4565_v31, %v4536_v14  ;;  %5301 = vtanh.f32 %v4628_v18  ;;  %v4423_v43 = vmul.f32 %v8198_v20, %v4404_v44 }
 0x9b6   : > { %v8383_v40 = vadd.f32 %v8204_v0, %v4437_v42 }
 0x9b7   : > { %v5300_v17 = vpop.eup %5299  ;;  %v4597_v4 = vmul.f32 0.044715, %v4581_v32  ;;  %v8401_v28 = vadd.f32 %v8204_v0, %v4423_v43 }
 0x9b8   : > { %v4464_v27 = vpack.c.bf16 %v8383_v40, %v8380_v61  ;;  %v4244_v52 = vmul.f32 %v5300_v17, %v4227_v49  ;;  %vm4250_vm15 = vweird.f32 %v5300_v17 }
 0x9b9   : > { %v4613_v16 = vadd.f32 %v4597_v4, %v4536_v14  ;;  %vm4251_vm2 = vmor %vm4249_vm3, %vm4250_vm15 }
 0x9ba   : > { %5037 = vmatmul.msk.bf16.gmra.mxu1 %vm8938_vm13, %v4464_v27  ;;  %v4245_v3 = vmul.f32 %v5300_v17, %v4244_v52  ;;  %vm8949_vm13 = vmmov %vm8937_vm0 }
 0x9bb   : > { %v4629_v41 = vmul.f32 0.7978846, %v4613_v16  ;;  %v5302_v33 = vpop.eup %5301  ;;  %vm8951_vm15 = vmmov %vm8937_vm0 }
 0x9bc   : > { %v4246_v56 = vmul.f32 0.5, %v4245_v3  ;;  %v4660_v36 = vadd.f32 1.0, %v5302_v33  ;;  %vm8952_vm3 = vmmov %vm8937_vm0 }
 0x9bd   : > { %5303 = vtanh.f32 %v4629_v41 }
 0x9be   : > { %v4247_v60 = vsub.f32 1.5, %v4246_v56  ;;  %v4676_v2 = vmul.f32 0.5, %v4660_v36 }
 0x9c0   : > { %v4248_v11 = vmul.f32 %v5300_v17, %v4247_v60 }
 0x9c2   : > { %v4252_v37 = vsel %vm4251_vm2, %v5300_v17, %v4248_v11  ;;  %vm8953_vm2 = vmmov %vm8937_vm0 }
 0x9c3   : > { %v4403_v10 = vmul.f32 %v4252_v37, %v8281_v34  ;;  %v5304_v51 = vpop.eup %5303 }
 0x9c4   : > { %v4661_v48 = vadd.f32 1.0, %v5304_v51 }
 0x9c5   : > { %v4422_v7 = vmul.f32 %v8198_v20, %v4403_v10  ;;  %v4538_v1 = vpop.f32.mrf.mxu1  ;;  %v4692_v20 = vmul.f32 %v4676_v2, %v8368_v59 }
 0x9c6   : > { %v4539_v19 = vadd.f32 %v8301_v24, %v4538_v1  ;;  %v4677_v34 = vmul.f32 0.5, %v4661_v48 }
 0x9c7   : > { %v8404_v49 = vadd.f32 %v8204_v0, %v4422_v7 }
 0x9c8   : > { %v4566_v22 = vmul.f32 %v4539_v19, %v4539_v19  ;;  %v4693_v45 = vmul.f32 %v4677_v34, %v4536_v14 }
 0x9c9   : > { %v4457_v38 = vpack.c.bf16 %v8401_v28, %v8404_v49 }
 0x9ca   : > { %v4582_v15 = vmul.f32 %v4566_v22, %v4539_v19  ;;  %v4705_v39 = vpack.c.bf16 %v4693_v45, %v4692_v20 }
 0x9cb   : > { %5030 = vmatmul.msk.bf16.vlgmr.msrb.gmra.mxu0 %vm8939_vm11, %v4457_v38  ;;  %vm8954_vm11 = vmmov %vm8937_vm0 }
 0x9cc   : > { %v4598_v42 = vmul.f32 0.044715, %v4582_v15  ;;  %5057 = vmatmul.msk.bf16.gmra.mxu3 %vm4746_vm7, %v4705_v39 }
 0x9cd   : > { %v4540_v30 = vpop.f32.mrf.mxu1 }
 0x9ce   : > { %v4614_v62 = vadd.f32 %v4598_v42, %v4539_v19  ;;  %v4541_v0 = vadd.f32 %v8301_v24, %v4540_v30 }
 0x9d0   : > { %v4630_v9 = vmul.f32 0.7978846, %v4614_v62  ;;  %v4567_v17 = vmul.f32 %v4541_v0, %v4541_v0 }
 0x9d2   : > { %v4583_v57 = vmul.f32 %v4567_v17, %v4541_v0  ;;  %5305 = vtanh.f32 %v4630_v9 }
 0x9d4   : > { %v4599_v8 = vmul.f32 0.044715, %v4583_v57 }
 0x9d6   : > { %v4615_v18 = vadd.f32 %v4599_v8, %v4541_v0 }
 0x9d8   : > { %v4631_v31 = vmul.f32 0.7978846, %v4615_v18  ;;  %v5306_v55 = vpop.eup %5305 }
 0x9d9   : > { %v4662_v59 = vadd.f32 1.0, %v5306_v55 }
 0x9da   : > { %5307 = vtanh.f32 %v4631_v31 }
 0x9db   : > { %v4678_v27 = vmul.f32 0.5, %v4662_v59 }
 0x9dd   : > { %v4694_v32 = vmul.f32 %v4678_v27, %v4539_v19 }
 0x9e0   : > { %v5308_v14 = vpop.eup %5307 }
 0x9e1   : > { %v4663_v52 = vadd.f32 1.0, %v5308_v14 }
 0x9e3   : > { %v4679_v53 = vmul.f32 0.5, %v4663_v52 }
 0x9e5   : > { %v4695_v3 = vmul.f32 %v4679_v53, %v4541_v0 }
 0x9e7   : > { %v4706_v58 = vpack.c.bf16 %v4695_v3, %v4694_v32 }
 0x9e9   : > { %5058 = vmatmul.msk.bf16.gmra.mxu3 %vm4746_vm7, %v4706_v58 }
 0x9f2   : > { %v4785_v4 = vpop.f32.mrf.mxu3 }
 0x9f3   : > { %v4786_v6 = vadd.f32 %v8416_v54, %v4785_v4 }
 0x9f5   : > { %v4822_v56 = vadd.f32 %v4786_v6, %v8210_v29 }
 0x9f7   : > { %4838 = vst.msk [vmem:[%s8424_s28 + $0x10] sm:$0xff] %vm8940_vm14, %v4822_v56 }
 0x9fa   : > { %v4787_v16 = vpop.f32.mrf.mxu3 }
 0x9fb   : > { %v4788_v5 = vadd.f32 %v8416_v54, %v4787_v16 }
 0x9fd   : > { %v4823_v60 = vadd.f32 %v4788_v5, %v8213_v47 }
 0x9ff   : > { %4839 = vst.msk [vmem:[%s8424_s28 + $0x18] sm:$0xff] %vm8941_vm8, %v4823_v60 }
 0xa0a   : > { %v4543_v44 = vpop.f32.mrf.mxu1 }
 0xa0b   : > { %v4544_v41 = vadd.f32 %v8301_v24, %v4543_v44 }
 0xa0d   : > { %v4568_v11 = vmul.f32 %v4544_v41, %v4544_v41 }
 0xa0f   : > { %v4584_v33 = vmul.f32 %v4568_v11, %v4544_v41 }
 0xa11   : > { %v4600_v37 = vmul.f32 0.044715, %v4584_v33 }
 0xa12   : > { %v4545_v43 = vpop.f32.mrf.mxu1 }
 0xa13   : > { %v4616_v10 = vadd.f32 %v4600_v37, %v4544_v41  ;;  %v4546_v36 = vadd.f32 %v8301_v24, %v4545_v43 }
 0xa15   : > { %v4632_v29 = vmul.f32 0.7978846, %v4616_v10  ;;  %v4569_v7 = vmul.f32 %v4546_v36, %v4546_v36 }
 0xa17   : > { %v4585_v1 = vmul.f32 %v4569_v7, %v4546_v36  ;;  %5309 = vtanh.f32 %v4632_v29 }
 0xa19   : > { %v4601_v19 = vmul.f32 0.044715, %v4585_v1 }
 0xa1b   : > { %v4617_v51 = vadd.f32 %v4601_v19, %v4546_v36 }
 0xa1d   : > { %v4633_v47 = vmul.f32 0.7978846, %v4617_v51  ;;  %v5310_v22 = vpop.eup %5309 }
 0xa1e   : > { %v4664_v15 = vadd.f32 1.0, %v5310_v22 }
 0xa1f   : > { %5311 = vtanh.f32 %v4633_v47 }
 0xa20   : > { %v4680_v62 = vmul.f32 0.5, %v4664_v15 }
 0xa22   : > { %v4696_v18 = vmul.f32 %v4680_v62, %v4544_v41 }
 0xa23   : > { %v4548_v2 = vpop.f32.mrf.mxu1 }
 0xa24   : > { %v4549_v48 = vadd.f32 %v8301_v24, %v4548_v2 }
 0xa25   : > { %v5312_v42 = vpop.eup %5311 }
 0xa26   : > { %v4570_v38 = vmul.f32 %v4549_v48, %v4549_v48  ;;  %v4665_v0 = vadd.f32 1.0, %v5312_v42 }
 0xa28   : > { %v4586_v34 = vmul.f32 %v4570_v38, %v4549_v48  ;;  %v4681_v57 = vmul.f32 0.5, %v4665_v0 }
 0xa2a   : > { %v4602_v20 = vmul.f32 0.044715, %v4586_v34  ;;  %v4697_v31 = vmul.f32 %v4681_v57, %v4546_v36 }
 0xa2b   : > { %v4550_v45 = vpop.f32.mrf.mxu1 }
 0xa2c   : > { %v4618_v30 = vadd.f32 %v4602_v20, %v4549_v48  ;;  %v4551_v39 = vadd.f32 %v8301_v24, %v4550_v45  ;;  %v4707_v14 = vpack.c.bf16 %v4697_v31, %v4696_v18 }
 0xa2e   : > { %v4634_v9 = vmul.f32 0.7978846, %v4618_v30  ;;  %v4571_v17 = vmul.f32 %v4551_v39, %v4551_v39  ;;  %5059 = vmatmul.msk.bf16.gmra.mxu3 %vm4746_vm7, %v4707_v14 }
 0xa30   : > { %v4587_v8 = vmul.f32 %v4571_v17, %v4551_v39  ;;  %5313 = vtanh.f32 %v4634_v9 }
 0xa32   : > { %v4603_v55 = vmul.f32 0.044715, %v4587_v8 }
 0xa34   : > { %v4619_v27 = vadd.f32 %v4603_v55, %v4551_v39 }
 0xa36   : > { %v4635_v53 = vmul.f32 0.7978846, %v4619_v27  ;;  %v5314_v3 = vpop.eup %5313 }
 0xa37   : > { %v4553_v59 = vpop.f32.mrf.mxu1  ;;  %v4666_v6 = vadd.f32 1.0, %v5314_v3  ;;  %v4790_v11 = vpop.f32.mrf.mxu3 }
 0xa38   : > { %v4554_v52 = vadd.f32 %v8301_v24, %v4553_v59  ;;  %5315 = vtanh.f32 %v4635_v53  ;;  %v4791_v43 = vadd.f32 %v8416_v54, %v4790_v11 }
 0xa39   : > { %v4682_v33 = vmul.f32 0.5, %v4666_v6 }
 0xa3a   : > { %v4572_v32 = vmul.f32 %v4554_v52, %v4554_v52  ;;  %v4824_v29 = vadd.f32 %v4791_v43, %v8241_v13 }
 0xa3b   : > { %v4698_v1 = vmul.f32 %v4682_v33, %v4549_v48 }
 0xa3c   : > { %v4588_v58 = vmul.f32 %v4572_v32, %v4554_v52  ;;  %4840 = vst.msk [vmem:[%s8424_s28 + $0x20] sm:$0xff] %vm8942_vm4, %v4824_v29 }
 0xa3e   : > { %v4604_v4 = vmul.f32 0.044715, %v4588_v58  ;;  %v5316_v60 = vpop.eup %5315 }
 0xa3f   : > { %v4555_v56 = vpop.f32.mrf.mxu1  ;;  %v4667_v37 = vadd.f32 1.0, %v5316_v60  ;;  %v4792_v34 = vpop.f32.mrf.mxu3 }
 0xa40   : > { %v4620_v16 = vadd.f32 %v4604_v4, %v4554_v52  ;;  %v4556_v5 = vadd.f32 %v8301_v24, %v4555_v56  ;;  %v4793_v15 = vadd.f32 %v8416_v54, %v4792_v34 }
 0xa41   : > { %v4683_v36 = vmul.f32 0.5, %v4667_v37 }
 0xa42   : > { %v4636_v44 = vmul.f32 0.7978846, %v4620_v16  ;;  %v4573_v41 = vmul.f32 %v4556_v5, %v4556_v5  ;;  %v4825_v48 = vadd.f32 %v4793_v15, %v8244_v26 }
 0xa43   : > { %v4699_v19 = vmul.f32 %v4683_v36, %v4551_v39 }
 0xa44   : > { %v4589_v10 = vmul.f32 %v4573_v41, %v4556_v5  ;;  %5317 = vtanh.f32 %v4636_v44  ;;  %4841 = vst.msk [vmem:[%s8424_s28 + $0x28] sm:$0xff] %vm8937_vm0, %v4825_v48 }
 0xa45   : > { %v4708_v47 = vpack.c.bf16 %v4699_v19, %v4698_v1 }
 0xa46   : > { %v4605_v7 = vmul.f32 0.044715, %v4589_v10 }
 0xa47   : > { %5060 = vmatmul.msk.bf16.gmra.mxu3 %vm4746_vm7, %v4708_v47 }
 0xa48   : > { %v4621_v51 = vadd.f32 %v4605_v7, %v4556_v5  ;;  %v4518_v2 = vpop.f32.mrf.mxu0 }
 0xa49   : > { %v4519_v22 = vadd.f32 %v8301_v24, %v4518_v2 }
 0xa4a   : > { %v4637_v38 = vmul.f32 0.7978846, %v4621_v51  ;;  %v5318_v13 = vpop.eup %5317 }
 0xa4b   : > { %v4558_v20 = vmul.f32 %v4519_v22, %v4519_v22  ;;  %v4668_v42 = vadd.f32 1.0, %v5318_v13 }
 0xa4c   : > { %5319 = vtanh.f32 %v4637_v38 }
 0xa4d   : > { %v4574_v45 = vmul.f32 %v4558_v20, %v4519_v22  ;;  %v4684_v17 = vmul.f32 0.5, %v4668_v42 }
 0xa4f   : > { %v4590_v30 = vmul.f32 0.044715, %v4574_v45  ;;  %v4795_v8 = vpop.f32.mrf.mxu3  ;;  %v4700_v27 = vmul.f32 %v4684_v17, %v4554_v52 }
 0xa50   : > { %v4520_v39 = vpop.f32.mrf.mxu0  ;;  %v4796_v55 = vadd.f32 %v8416_v54, %v4795_v8 }
 0xa51   : > { %v4606_v62 = vadd.f32 %v4590_v30, %v4519_v22  ;;  %v4521_v0 = vadd.f32 %v8301_v24, %v4520_v39 }
 0xa52   : > { %v5320_v9 = vpop.eup %5319  ;;  %v4826_v14 = vadd.f32 %v4796_v55, %v8272_v46 }
 0xa53   : > { %v4669_v57 = vadd.f32 1.0, %v5320_v9  ;;  %v4622_v18 = vmul.f32 0.7978846, %v4606_v62  ;;  %v4559_v31 = vmul.f32 %v4521_v0, %v4521_v0 }
 0xa54   : > { %4842 = vst.msk [vmem:[%s8424_s28 + $0x30] sm:$0xff] %vm8943_vm6, %v4826_v14 }
 0xa55   : > { %v4685_v59 = vmul.f32 0.5, %v4669_v57  ;;  %v4575_v26 = vmul.f32 %v4559_v31, %v4521_v0  ;;  %5321 = vtanh.f32 %v4622_v18 }
 0xa57   : > { %v4701_v53 = vmul.f32 %v4685_v59, %v4556_v5  ;;  %v4591_v32 = vmul.f32 0.044715, %v4575_v26  ;;  %v4797_v58 = vpop.f32.mrf.mxu3 }
 0xa58   : > { %v4798_v6 = vadd.f32 %v8416_v54, %v4797_v58 }
 0xa59   : > { %v4709_v24 = vpack.c.bf16 %v4701_v53, %v4700_v27  ;;  %v4607_v3 = vadd.f32 %v4591_v32, %v4521_v0 }
 0xa5a   : > { %v4827_v16 = vadd.f32 %v4798_v6, %v8275_v25 }
 0xa5b   : > { %5061 = vmatmul.msk.bf16.gmra.mxu3 %vm4746_vm7, %v4709_v24  ;;  %v4623_v4 = vmul.f32 0.7978846, %v4607_v3  ;;  %v5322_v56 = vpop.eup %5321 }
 0xa5c   : > { %4843 = vst.msk [vmem:[%s8424_s28 + $0x38] sm:$0xff] %vm8944_vm10, %v4827_v16  ;;  %v4654_v46 = vadd.f32 1.0, %v5322_v56 }
 0xa5d   : > { %5323 = vtanh.f32 %v4623_v4 }
 0xa5e   : > { %v4670_v5 = vmul.f32 0.5, %v4654_v46 }
 0xa60   : > { %v4686_v41 = vmul.f32 %v4670_v5, %v4519_v22 }
 0xa63   : > { %v5324_v52 = vpop.eup %5323 }
 0xa64   : > { %v4655_v60 = vadd.f32 1.0, %v5324_v52 }
 0xa66   : > { %v4671_v44 = vmul.f32 0.5, %v4655_v60 }
 0xa68   : > { %v4687_v11 = vmul.f32 %v4671_v44, %v4521_v0 }
 0xa6a   : > { %v4702_v33 = vpack.c.bf16 %v4687_v11, %v4686_v41 }
 0xa6c   : > { %5054 = vmatmul.msk.bf16.vlgmr.msra.gmra.mxu0 %vm4746_vm7, %v4702_v33  ;;  %v4800_v37 = vpop.f32.mrf.mxu3  ;;  %vm8947_vm7 = vmmov %vm8937_vm0 }
 0xa6d   : > { %v4801_v43 = vadd.f32 %v8416_v54, %v4800_v37 }
 0xa6f   : > { %v4828_v25 = vadd.f32 %v4801_v43, %v8291_v35 }
 0xa71   : > { %4844 = vst.msk [vmem:[%s8424_s28 + $0x40] sm:$0xff] %vm8945_vm9, %v4828_v25 }
 0xa74   : > { %v4802_v10 = vpop.f32.mrf.mxu3 }
 0xa75   : > { %v4803_v36 = vadd.f32 %v8416_v54, %v4802_v10 }
 0xa77   : > { %v4829_v29 = vadd.f32 %v4803_v36, %v8294_v50 }
 0xa79   : > { %4845 = vst.msk [vmem:[%s8424_s28 + $0x48] sm:$0xff] %vm8946_vm5, %v4829_v29 }
 0xab1   : > { %v4805_v7 = vpop.f32.mrf.mxu3 }
 0xab2   : > { %v4806_v1 = vadd.f32 %v8416_v54, %v4805_v7 }
 0xab4   : > { %v4830_v19 = vadd.f32 %v4806_v1, %v8324_v23 }
 0xab6   : > { %4846 = vst.msk [vmem:[%s8424_s28 + $0x50] sm:$0xff] %vm8947_vm7, %v4830_v19 }
 0xab9   : > { %v4807_v35 = vpop.f32.mrf.mxu3 }
 0xaba   : > { %v4808_v51 = vadd.f32 %v8416_v54, %v4807_v35 }
 0xabc   : > { %v4831_v2 = vadd.f32 %v4808_v51, %v8327_v63 }
 0xabe   : > { %4847 = vst.msk [vmem:[%s8424_s28 + $0x58] sm:$0xff] %vm8948_vm12, %v4831_v2 }
 0xaca   : > { %v4810_v47 = vpop.f32.mrf.mxu3 }
 0xacb   : > { %v4811_v50 = vadd.f32 %v8416_v54, %v4810_v47 }
 0xacd   : > { %v4832_v22 = vadd.f32 %v4811_v50, %v8352_v12 }
 0xacf   : > { %4848 = vst.msk [vmem:[%s8424_s28 + $0x60] sm:$0xff] %vm8949_vm13, %v4832_v22 }
 0xad2   : > { %v4812_v23 = vpop.f32.mrf.mxu3 }
 0xad3   : > { %v4813_v38 = vadd.f32 %v8416_v54, %v4812_v23 }
 0xad5   : > { %v4833_v34 = vadd.f32 %v4813_v38, %v8355_v21 }
 0xad7   : > { %4849 = vst.msk [vmem:[%s8424_s28 + $0x68] sm:$0xff] %vm8950_vm1, %v4833_v34 }
 0xade   : > { %v4815_v63 = vpop.f32.mrf.mxu3 }
 0xadf   : > { %v4816_v15 = vadd.f32 %v8416_v54, %v4815_v63 }
 0xae1   : > { %v4834_v20 = vadd.f32 %v4816_v15, %v8380_v61 }
 0xae3   : > { %4850 = vst.msk [vmem:[%s8424_s28 + $0x70] sm:$0xff] %vm8951_vm15, %v4834_v20 }
 0xae6   : > { %v4817_v13 = vpop.f32.mrf.mxu3 }
 0xae7   : > { %v4818_v12 = vadd.f32 %v8416_v54, %v4817_v13 }
 0xae9   : > { %v4835_v48 = vadd.f32 %v4818_v12, %v8383_v40  ;;  %v4780_v45 = vpop.f32.mrf.mxu0 }
 0xaea   : > { %v4781_v42 = vadd.f32 %v8416_v54, %v4780_v45 }
 0xaeb   : > { %4851 = vst.msk [vmem:[%s8424_s28 + $0x78] sm:$0xff] %vm8952_vm3, %v4835_v48 }
 0xaec   : > { %v4820_v21 = vadd.f32 %v4781_v42, %v8404_v49 }
 0xaee   : > { %4836 = vst.msk [vmem:[%s8424_s28] sm:$0xff] %vm8953_vm2, %v4820_v21 }
 0xaf1   : > { %v4782_v30 = vpop.f32.mrf.mxu0 }
 0xaf2   : > { %v4783_v39 = vadd.f32 %v8416_v54, %v4782_v30 }
 0xaf4   : > { %v4821_v61 = vadd.f32 %v4783_v39, %v8401_v28 }
 0xaf6   : > { %4837 = vst.msk [vmem:[%s8424_s28 + $0x8] sm:$0xff] %vm8954_vm11, %v4821_v61 }
 0xaf7 PF: > { %s24_s25 = sadd.s32 1, %s5351_s25  }
 0xaf8   : > { %p21_p7 = scmp.ge.s32.totalorder %s24_s25, 4  }
 0xafa   :  { %23 = sbr.rel (!%p21_p7) target bundleno = 1 (0x1), region = 107 }
 0xaff   :  { %4873 = vsyncpa [#allocation4], 1 }
 0xb00   :  { %4875 = vsyncpa [#allocation4 + $0x1], 1 }

</bundles_post_ra>
